<compile_context>
chip_gen: v6e
topology: v6e:2x2x1
jax: 0.10.0
libtpu: 0.0.40
codegen_flags: <defaults>
</compile_context>

<pallas_src>
import functools

import jax
import jax.numpy as jnp
from jax.experimental import pallas as pl
from jax.experimental.pallas import tpu as pltpu


def _round_up(x, m):
    return (x + m - 1) // m * m


# ----------------------------------------------------------------------------
# Pallas kernel: tiled (over M) matmul + bias + fused activation
#   A (bf16) @ W (bf16) -> f32 MXU accumulate -> +bias, act in f32 -> store
# ----------------------------------------------------------------------------
def _matmul_bias_act_kernel(a_ref, w_ref, b_ref, o_ref, *, act):
    acc = jnp.dot(a_ref[...], w_ref[...], preferred_element_type=jnp.float32)
    acc = acc + b_ref[...]
    if act == "relu":
        acc = jnp.maximum(acc, 0.0)
    elif act == "tanh":
        acc = jnp.tanh(acc)
    o_ref[...] = acc.astype(o_ref.dtype)


def matmul_bias_act(a, w, b, act="none", out_dtype=jnp.float32, tm=256):
    """out = act(a @ w + b).  a:(M,K), w:(K,N) bf16, b:(N,) f32.
    K and N must already be multiples of 128 (weights are pre-padded at prep time)."""
    M, K = a.shape
    K2, N = w.shape
    assert K == K2 and b.shape == (N,), (a.shape, w.shape, b.shape)
    assert K % 128 == 0 and N % 128 == 0, (K, N)

    if M >= 2 * tm:                       # large-M layers: tile M (>=2 steps -> v7x megacore)
        Mp, tm_eff = _round_up(M, tm), tm
    else:                                 # tiny-M layers: one step, minimal (x8) padding
        Mp = _round_up(M, 8)
        tm_eff = Mp
    a_p = a.astype(jnp.bfloat16)
    if Mp != M:
        a_p = jnp.pad(a_p, ((0, Mp - M), (0, 0)))

    out = pl.pallas_call(
        functools.partial(_matmul_bias_act_kernel, act=act),
        out_shape=jax.ShapeDtypeStruct((Mp, N), out_dtype),
        grid_spec=pltpu.PrefetchScalarGridSpec(
            num_scalar_prefetch=0,
            grid=(Mp // tm_eff,),
            in_specs=[
                pl.BlockSpec((tm_eff, K), lambda i: (i, 0)),
                pl.BlockSpec((K, N), lambda i: (0, 0)),
                pl.BlockSpec((1, N), lambda i: (0, 0)),
            ],
            out_specs=pl.BlockSpec((tm_eff, N), lambda i: (i, 0)),
        ),
        compiler_params=pltpu.CompilerParams(dimension_semantics=("parallel",)),
    )(a_p, w.astype(jnp.bfloat16), b.astype(jnp.float32).reshape(1, N))
    return out[:M] if Mp != M else out


# ----------------------------------------------------------------------------
# One-time parameter preparation (BN folding, sub-pixel weights, padding, bf16)
# ----------------------------------------------------------------------------
def fold_bn(w, b, bn, eps=1e-5):
    """Fold eval-mode BatchNorm2d into ConvTranspose2d weight (Cin,Cout,kH,kW) / bias (Cout,)."""
    if bn is None:
        return w, b
    gamma, beta, mean, var = bn
    scale = gamma / jnp.sqrt(var + eps)
    return w * scale[None, :, None, None], (b - mean) * scale + beta


def _subpixel_weight(w, b, bn, cout_pad=None):
    """ConvTranspose2d(k=4,s=2,p=1) as a 2x2 conv ('sub-pixel') weight matrix.

    Rows ordered (dh, dw, ci): taps inside the 2x2 window of the 1-padded input.
    Cols ordered (sh, sw, co): output sub-pixel slot within the over-complete
    (2H+2, 2W+2) grid; real output is its [1:2H+1, 1:2W+1] crop.
    Tap -> original kernel index: kh = 2 + sh - 2*dh (same for kw)."""
    w, b = fold_bn(w, b, bn)
    cin, cout = w.shape[0], w.shape[1]
    cp = cout if cout_pad is None else cout_pad
    rows = []
    for dh in (0, 1):
        for dw in (0, 1):
            cols = []
            for sh in (0, 1):
                for sw in (0, 1):
                    blk = w[:, :, 2 + sh - 2 * dh, 2 + sw - 2 * dw]   # (cin, cout)
                    if cp > cout:
                        blk = jnp.pad(blk, ((0, 0), (0, cp - cout)))
                    cols.append(blk)
            rows.append(jnp.concatenate(cols, axis=1))                # (cin, 4*cp)
    w_mat = jnp.concatenate(rows, axis=0)                             # (4*cin, 4*cp)
    b_p = b if cp == cout else jnp.pad(b, (0, cp - cout))
    return w_mat.astype(jnp.bfloat16), jnp.tile(b_p, 4).astype(jnp.float32)


def init_params(key, hidden_size=64, emb_size=32, num_classes=10, img_channels=1):
    ks = jax.random.split(key, 6)
    n = lambda k, shape: 0.02 * jax.random.normal(k, shape, jnp.float32)
    bn = lambda c: (jnp.ones((c,)), jnp.zeros((c,)), jnp.zeros((c,)), jnp.ones((c,)))
    return {
        "emb": jax.random.normal(ks[0], (num_classes, emb_size), jnp.float32),  # nn.Embedding default
        "w1": n(ks[1], (hidden_size, 256, 4, 4)), "b1": jnp.zeros((256,)), "bn1": bn(256),
        "wl": n(ks[2], (emb_size, 128, 4, 4)),    "bl": jnp.zeros((128,)), "bnl": bn(128),
        "w2": n(ks[3], (256 + 128, 128, 4, 4)),   "b2": jnp.zeros((128,)), "bn2": bn(128),
        "w3": n(ks[4], (128, 64, 4, 4)),          "b3": jnp.zeros((64,)),  "bn3": bn(64),
        "wo": n(ks[5], (64, img_channels, 4, 4)), "bo": jnp.zeros((img_channels,)),
    }


def prepare_params(p):
    """Called once, outside the jitted forward."""
    # Fused (conv_transpose_1 | conv_label) weight: both act on a 1x1 spatial input, so the
    # pair is one matmul (B, hidden+emb) @ (Kp, 16 * (256+128)) with a block-diagonal weight.
    w1, b1 = fold_bn(p["w1"], p["b1"], p["bn1"])      # (64, 256, 4, 4)
    wl, bl = fold_bn(p["wl"], p["bl"], p["bnl"])      # (32, 128, 4, 4)
    c1, cl = w1.shape[1], wl.shape[1]
    k_in = w1.shape[0] + wl.shape[0]
    kp = _round_up(k_in, 128)
    w1m = jnp.pad(jnp.transpose(w1, (0, 2, 3, 1)), ((0, 0), (0, 0), (0, 0), (0, cl)))
    wlm = jnp.pad(jnp.transpose(wl, (0, 2, 3, 1)), ((0, 0), (0, 0), (0, 0), (c1, 0)))
    wf = jnp.concatenate([w1m, wlm], axis=0)          # (96, 4, 4, 384)
    wf = jnp.pad(wf, ((0, kp - k_in), (0, 0), (0, 0), (0, 0))).reshape(kp, 16 * (c1 + cl))
    bf_ = jnp.tile(jnp.concatenate([b1, bl]), 16)     # (6144,), order (kh, kw, co)

    w2m, b2m = _subpixel_weight(p["w2"], p["b2"], p["bn2"])                     # K=1536, N=512
    w3m, b3m = _subpixel_weight(p["w3"], p["b3"], p["bn3"])                     # K=512,  N=256
    img_c = p["wo"].shape[1]
    wom, bom = _subpixel_weight(p["wo"], p["bo"], None,
                                cout_pad=_round_up(img_c, 32))                  # K=256,  N=128
    return {
        "emb": p["emb"],
        "w1m": wf.astype(jnp.bfloat16), "b1m": bf_.astype(jnp.float32),
        "w2m": w2m, "b2m": b2m,
        "w3m": w3m, "b3m": b3m,
        "wom": wom, "bom": bom,
    }


# ----------------------------------------------------------------------------
# Forward pass (Pallas matmuls + thin XLA glue)
# ----------------------------------------------------------------------------
def _conv_transpose_s2p1(x, w_mat, b_vec, act, out_dtype):
    """ConvTranspose2d(k=4,s=2,p=1) on NHWC x via sub-pixel 2x2 conv:
    4-tap im2col (glue) -> Pallas matmul (N = 4*Cout) -> depth_to_space + crop (glue)."""
    B, H, W, C = x.shape
    hb, wb = H + 1, W + 1
    cp = w_mat.shape[1] // 4
    xp = jnp.pad(x, ((0, 0), (1, 1), (1, 1), (0, 0)))
    taps = [xp[:, dh:dh + hb, dw:dw + wb, :] for dh in (0, 1) for dw in (0, 1)]
    a = jnp.concatenate(taps, axis=-1).reshape(B * hb * wb, 4 * C)   # row=(b,m,n), col=(dh,dw,ci)
    y = matmul_bias_act(a, w_mat, b_vec, act=act, out_dtype=out_dtype)
    y = y.reshape(B, hb, wb, 2, 2, cp)                               # (..., sh, sw, co)
    y = jnp.transpose(y, (0, 1, 3, 2, 4, 5)).reshape(B, 2 * hb, 2 * wb, cp)
    return y[:, 1:2 * H + 1, 1:2 * W + 1, :]


@functools.partial(jax.jit, static_argnames=("img_channels",))
def convcgenerator_forward(pp, z, cond_class, img_channels=1):
    """z: (B, hidden) f32, cond_class: (B,) int32.  Returns NCHW (B, img_channels, 32, 32)."""
    B = z.shape[0]
    embs = pp["emb"][cond_class]                                     # embedding gather (glue)
    kp, n1 = pp["w1m"].shape
    a0 = jnp.concatenate([z, embs], axis=1)
    a0 = jnp.pad(a0, ((0, 0), (0, kp - a0.shape[1])))
    x = matmul_bias_act(a0, pp["w1m"], pp["b1m"], act="relu",
                        out_dtype=jnp.bfloat16)                      # fused conv1 + conv_label
    x = x.reshape(B, 4, 4, n1 // 16)                                 # (B, 4, 4, 384) NHWC
    x = _conv_transpose_s2p1(x, pp["w2m"], pp["b2m"], "relu", jnp.bfloat16)   # (B, 8, 8, 128)
    x = _conv_transpose_s2p1(x, pp["w3m"], pp["b3m"], "relu", jnp.bfloat16)   # (B, 16, 16, 64)
    x = _conv_transpose_s2p1(x, pp["wom"], pp["bom"], "tanh", jnp.float32)    # (B, 32, 32, 32)
    return jnp.transpose(x[..., :img_channels], (0, 3, 1, 2))        # NCHW


# ----------------------------------------------------------------------------
# Pure-JAX f32 reference (for correctness check)
# ----------------------------------------------------------------------------
def _ref_conv_transpose(x, w, b, stride, pad):
    B, H, Wd, Cin = x.shape
    Cout, K = w.shape[1], w.shape[2]
    Hf, Wf = (H - 1) * stride + K, (Wd - 1) * stride + K
    full = jnp.zeros((B, Hf, Wf, Cout), jnp.float32)
    for kh in range(K):
        for kw in range(K):
            c = jnp.einsum("bhwc,cd->bhwd", x, w[:, :, kh, kw])
            full = full.at[:, kh:kh + stride * (H - 1) + 1:stride,
                           kw:kw + stride * (Wd - 1) + 1:stride, :].add(c)
    full = full + b
    return full[:, pad:Hf - pad, pad:Wf - pad, :]


def _ref_bn_relu(x, bn, eps=1e-5):
    gamma, beta, mean, var = bn
    return jnp.maximum((x - mean) / jnp.sqrt(var + eps) * gamma + beta, 0.0)


def reference_forward(p, z, cond_class):
    embs = p["emb"][cond_class]
    x1 = _ref_bn_relu(_ref_conv_transpose(z[:, None, None, :], p["w1"], p["b1"], 1, 0), p["bn1"])
    x2 = _ref_bn_relu(_ref_conv_transpose(embs[:, None, None, :], p["wl"], p["bl"], 1, 0), p["bnl"])
    x = jnp.concatenate([x1, x2], axis=-1)
    x = _ref_bn_relu(_ref_conv_transpose(x, p["w2"], p["b2"], 2, 1), p["bn2"])
    x = _ref_bn_relu(_ref_conv_transpose(x, p["w3"], p["b3"], 2, 1), p["bn3"])
    x = jnp.tanh(_ref_conv_transpose(x, p["wo"], p["bo"], 2, 1))
    return jnp.transpose(x, (0, 3, 1, 2))


if __name__ == "__main__":
    key = jax.random.PRNGKey(0)
    k_param, k_z, k_c = jax.random.split(key, 3)

    B, HIDDEN, EMB, NUM_CLASSES, IMG_C = 2, 64, 32, 10, 1
    params = init_params(k_param, HIDDEN, EMB, NUM_CLASSES, IMG_C)
    prepped = prepare_params(params)                                 # one-time weight prep
    z = jax.random.normal(k_z, (B, HIDDEN), jnp.float32)
    cond_class = jax.random.randint(k_c, (B,), 0, NUM_CLASSES, jnp.int32)

    imgs = jax.block_until_ready(
        convcgenerator_forward(prepped, z, cond_class, img_channels=IMG_C))
    assert imgs.shape == (B, IMG_C, 32, 32), imgs.shape

    ref = jax.block_until_ready(reference_forward(params, z, cond_class))
    err = float(jnp.max(jnp.abs(imgs - ref)))
    scale = float(jnp.max(jnp.abs(ref)))
    # bf16 MXU inputs with f32 accumulation -> bf16-appropriate tolerance vs the f32 reference.
    assert err <= 0.05 * scale + 1e-3, (err, scale)

    print("KERNEL_OK")
</pallas_src>

<mosaic_0001>
module attributes {stable_mosaic.version = 11 : i64} {
  func.func @_matmul_bias_act_kernel(%arg0: i32, %arg1: memref<56x1536xbf16, #tpu.memory_space<vmem>>, %arg2: memref<1536x512xbf16, #tpu.memory_space<vmem>>, %arg3: memref<1x512xf32, #tpu.memory_space<vmem>>, %arg4: memref<56x512xbf16, #tpu.memory_space<vmem>>) attributes {dimension_semantics = [#tpu.dimension_semantics<parallel>], iteration_bounds = array<i64: 1>, scalar_prefetch = 0 : i64, scratch_operands = 0 : i64, tpu.core_type = #tpu.core_type<tc>, window_params = [{transform_indices = @transform_0, window_bounds = array<i64: 56, 1536>}, {pipeline_mode = #tpu.pipeline_mode<synchronous>, transform_indices = @transform_1, window_bounds = array<i64: 1536, 512>}, {pipeline_mode = #tpu.pipeline_mode<synchronous>, transform_indices = @transform_2, window_bounds = array<i64: 1, 512>}, {transform_indices = @transform_3, window_bounds = array<i64: 56, 512>}]} {
    %c0 = arith.constant 0 : index
    %c0_0 = arith.constant 0 : index
    %0 = vector.load %arg1[%c0, %c0_0] : memref<56x1536xbf16, #tpu.memory_space<vmem>>, vector<56x1536xbf16>
    %c0_1 = arith.constant 0 : index
    %c0_2 = arith.constant 0 : index
    %1 = vector.load %arg2[%c0_1, %c0_2] : memref<1536x512xbf16, #tpu.memory_space<vmem>>, vector<1536x512xbf16>
    %cst = arith.constant dense<0.000000e+00> : vector<56x512xf32>
    %2 = tpu.matmul %0, %1, %cst {dimension_numbers = #tpu.dot_dimension_numbers<[1], [0], [0], [1], [0, 0, 1, 1], [], []>} : vector<56x1536xbf16>, vector<1536x512xbf16>, vector<56x512xf32> -> vector<56x512xf32>
    %c0_3 = arith.constant 0 : index
    %c0_4 = arith.constant 0 : index
    %3 = vector.load %arg3[%c0_3, %c0_4] : memref<1x512xf32, #tpu.memory_space<vmem>>, vector<1x512xf32>
    %4 = vector.broadcast %3 : vector<1x512xf32> to vector<56x512xf32>
    %5 = arith.addf %2, %4 : vector<56x512xf32>
    %cst_5 = arith.constant 0.000000e+00 : f32
    %6 = vector.broadcast %cst_5 : f32 to vector<56x512xf32>
    %7 = arith.maximumf %5, %6 : vector<56x512xf32>
    %8 = arith.truncf %7 : vector<56x512xf32> to vector<56x512xbf16>
    %c0_6 = arith.constant 0 : index
    %c0_7 = arith.constant 0 : index
    %9 = vector.load %arg4[%c0_6, %c0_7] : memref<56x512xbf16, #tpu.memory_space<vmem>>, vector<56x512xbf16>
    tpu.vector_store %arg4[%c0_6, %c0_7], %8 {strides = array<i32>} : memref<56x512xbf16, #tpu.memory_space<vmem>>, vector<56x512xbf16>,
    return
  }
  func.func @transform_0(%arg0: i32) -> (i32, i32) {
    %c0_i32 = arith.constant 0 : i32
    %c0_i32_0 = arith.constant 0 : i32
    return %arg0, %c0_i32 : i32, i32
  }
  func.func @transform_1(%arg0: i32) -> (i32, i32) {
    %c0_i32 = arith.constant 0 : i32
    %c0_i32_0 = arith.constant 0 : i32
    %c0_i32_1 = arith.constant 0 : i32
    return %c0_i32, %c0_i32_0 : i32, i32
  }
  func.func @transform_2(%arg0: i32) -> (i32, i32) {
    %c0_i32 = arith.constant 0 : i32
    %c0_i32_0 = arith.constant 0 : i32
    %c0_i32_1 = arith.constant 0 : i32
    return %c0_i32, %c0_i32_0 : i32, i32
  }
  func.func @transform_3(%arg0: i32) -> (i32, i32) {
    %c0_i32 = arith.constant 0 : i32
    %c0_i32_0 = arith.constant 0 : i32
    return %arg0, %c0_i32 : i32, i32
  }
}

module attributes {stable_mosaic.version = 11 : i64} {
  func.func @_matmul_bias_act_kernel(%arg0: i32, %arg1: memref<8x128xbf16, #tpu.memory_space<vmem>>, %arg2: memref<128x6144xbf16, #tpu.memory_space<vmem>>, %arg3: memref<1x6144xf32, #tpu.memory_space<vmem>>, %arg4: memref<8x6144xbf16, #tpu.memory_space<vmem>>) attributes {dimension_semantics = [#tpu.dimension_semantics<parallel>], iteration_bounds = array<i64: 1>, scalar_prefetch = 0 : i64, scratch_operands = 0 : i64, tpu.core_type = #tpu.core_type<tc>, window_params = [{transform_indices = @transform_0, window_bounds = array<i64: 8, 128>}, {pipeline_mode = #tpu.pipeline_mode<synchronous>, transform_indices = @transform_1, window_bounds = array<i64: 128, 6144>}, {pipeline_mode = #tpu.pipeline_mode<synchronous>, transform_indices = @transform_2, window_bounds = array<i64: 1, 6144>}, {transform_indices = @transform_3, window_bounds = array<i64: 8, 6144>}]} {
    %c0 = arith.constant 0 : index
    %c0_0 = arith.constant 0 : index
    %0 = vector.load %arg1[%c0, %c0_0] : memref<8x128xbf16, #tpu.memory_space<vmem>>, vector<8x128xbf16>
    %c0_1 = arith.constant 0 : index
    %c0_2 = arith.constant 0 : index
    %1 = vector.load %arg2[%c0_1, %c0_2] : memref<128x6144xbf16, #tpu.memory_space<vmem>>, vector<128x6144xbf16>
    %cst = arith.constant dense<0.000000e+00> : vector<8x6144xf32>
    %2 = tpu.matmul %0, %1, %cst {dimension_numbers = #tpu.dot_dimension_numbers<[1], [0], [0], [1], [0, 0, 1, 1], [], []>} : vector<8x128xbf16>, vector<128x6144xbf16>, vector<8x6144xf32> -> vector<8x6144xf32>
    %c0_3 = arith.constant 0 : index
    %c0_4 = arith.constant 0 : index
    %3 = vector.load %arg3[%c0_3, %c0_4] : memref<1x6144xf32, #tpu.memory_space<vmem>>, vector<1x6144xf32>
    %4 = vector.broadcast %3 : vector<1x6144xf32> to vector<8x6144xf32>
    %5 = arith.addf %2, %4 : vector<8x6144xf32>
    %cst_5 = arith.constant 0.000000e+00 : f32
    %6 = vector.broadcast %cst_5 : f32 to vector<8x6144xf32>
    %7 = arith.maximumf %5, %6 : vector<8x6144xf32>
    %8 = arith.truncf %7 : vector<8x6144xf32> to vector<8x6144xbf16>
    %c0_6 = arith.constant 0 : index
    %c0_7 = arith.constant 0 : index
    %9 = vector.load %arg4[%c0_6, %c0_7] : memref<8x6144xbf16, #tpu.memory_space<vmem>>, vector<8x6144xbf16>
    tpu.vector_store %arg4[%c0_6, %c0_7], %8 {strides = array<i32>} : memref<8x6144xbf16, #tpu.memory_space<vmem>>, vector<8x6144xbf16>,
    return
  }
  func.func @transform_0(%arg0: i32) -> (i32, i32) {
    %c0_i32 = arith.constant 0 : i32
    %c0_i32_0 = arith.constant 0 : i32
    return %arg0, %c0_i32 : i32, i32
  }
  func.func @transform_1(%arg0: i32) -> (i32, i32) {
    %c0_i32 = arith.constant 0 : i32
    %c0_i32_0 = arith.constant 0 : i32
    %c0_i32_1 = arith.constant 0 : i32
    return %c0_i32, %c0_i32_0 : i32, i32
  }
  func.func @transform_2(%arg0: i32) -> (i32, i32) {
    %c0_i32 = arith.constant 0 : i32
    %c0_i32_0 = arith.constant 0 : i32
    %c0_i32_1 = arith.constant 0 : i32
    return %c0_i32, %c0_i32_0 : i32, i32
  }
  func.func @transform_3(%arg0: i32) -> (i32, i32) {
    %c0_i32 = arith.constant 0 : i32
    %c0_i32_0 = arith.constant 0 : i32
    return %arg0, %c0_i32 : i32, i32
  }
}

module attributes {stable_mosaic.version = 11 : i64} {
  func.func @_matmul_bias_act_kernel(%arg0: i32, %arg1: memref<168x512xbf16, #tpu.memory_space<vmem>>, %arg2: memref<512x256xbf16, #tpu.memory_space<vmem>>, %arg3: memref<1x256xf32, #tpu.memory_space<vmem>>, %arg4: memref<168x256xbf16, #tpu.memory_space<vmem>>) attributes {dimension_semantics = [#tpu.dimension_semantics<parallel>], iteration_bounds = array<i64: 1>, scalar_prefetch = 0 : i64, scratch_operands = 0 : i64, tpu.core_type = #tpu.core_type<tc>, window_params = [{transform_indices = @transform_0, window_bounds = array<i64: 168, 512>}, {pipeline_mode = #tpu.pipeline_mode<synchronous>, transform_indices = @transform_1, window_bounds = array<i64: 512, 256>}, {pipeline_mode = #tpu.pipeline_mode<synchronous>, transform_indices = @transform_2, window_bounds = array<i64: 1, 256>}, {transform_indices = @transform_3, window_bounds = array<i64: 168, 256>}]} {
    %c0 = arith.constant 0 : index
    %c0_0 = arith.constant 0 : index
    %0 = vector.load %arg1[%c0, %c0_0] : memref<168x512xbf16, #tpu.memory_space<vmem>>, vector<168x512xbf16>
    %c0_1 = arith.constant 0 : index
    %c0_2 = arith.constant 0 : index
    %1 = vector.load %arg2[%c0_1, %c0_2] : memref<512x256xbf16, #tpu.memory_space<vmem>>, vector<512x256xbf16>
    %cst = arith.constant dense<0.000000e+00> : vector<168x256xf32>
    %2 = tpu.matmul %0, %1, %cst {dimension_numbers = #tpu.dot_dimension_numbers<[1], [0], [0], [1], [0, 0, 1, 1], [], []>} : vector<168x512xbf16>, vector<512x256xbf16>, vector<168x256xf32> -> vector<168x256xf32>
    %c0_3 = arith.constant 0 : index
    %c0_4 = arith.constant 0 : index
    %3 = vector.load %arg3[%c0_3, %c0_4] : memref<1x256xf32, #tpu.memory_space<vmem>>, vector<1x256xf32>
    %4 = vector.broadcast %3 : vector<1x256xf32> to vector<168x256xf32>
    %5 = arith.addf %2, %4 : vector<168x256xf32>
    %cst_5 = arith.constant 0.000000e+00 : f32
    %6 = vector.broadcast %cst_5 : f32 to vector<168x256xf32>
    %7 = arith.maximumf %5, %6 : vector<168x256xf32>
    %8 = arith.truncf %7 : vector<168x256xf32> to vector<168x256xbf16>
    %c0_6 = arith.constant 0 : index
    %c0_7 = arith.constant 0 : index
    %9 = vector.load %arg4[%c0_6, %c0_7] : memref<168x256xbf16, #tpu.memory_space<vmem>>, vector<168x256xbf16>
    tpu.vector_store %arg4[%c0_6, %c0_7], %8 {strides = array<i32>} : memref<168x256xbf16, #tpu.memory_space<vmem>>, vector<168x256xbf16>,
    return
  }
  func.func @transform_0(%arg0: i32) -> (i32, i32) {
    %c0_i32 = arith.constant 0 : i32
    %c0_i32_0 = arith.constant 0 : i32
    return %arg0, %c0_i32 : i32, i32
  }
  func.func @transform_1(%arg0: i32) -> (i32, i32) {
    %c0_i32 = arith.constant 0 : i32
    %c0_i32_0 = arith.constant 0 : i32
    %c0_i32_1 = arith.constant 0 : i32
    return %c0_i32, %c0_i32_0 : i32, i32
  }
  func.func @transform_2(%arg0: i32) -> (i32, i32) {
    %c0_i32 = arith.constant 0 : i32
    %c0_i32_0 = arith.constant 0 : i32
    %c0_i32_1 = arith.constant 0 : i32
    return %c0_i32, %c0_i32_0 : i32, i32
  }
  func.func @transform_3(%arg0: i32) -> (i32, i32) {
    %c0_i32 = arith.constant 0 : i32
    %c0_i32_0 = arith.constant 0 : i32
    return %arg0, %c0_i32 : i32, i32
  }
}

module attributes {stable_mosaic.version = 11 : i64} {
  func.func @_matmul_bias_act_kernel(%arg0: i32, %arg1: memref<256x256xbf16, #tpu.memory_space<vmem>>, %arg2: memref<256x128xbf16, #tpu.memory_space<vmem>>, %arg3: memref<1x128xf32, #tpu.memory_space<vmem>>, %arg4: memref<256x128xf32, #tpu.memory_space<vmem>>) attributes {dimension_semantics = [#tpu.dimension_semantics<parallel>], iteration_bounds = array<i64: 3>, scalar_prefetch = 0 : i64, scratch_operands = 0 : i64, tpu.core_type = #tpu.core_type<tc>, window_params = [{transform_indices = @transform_0, window_bounds = array<i64: 256, 256>}, {pipeline_mode = #tpu.pipeline_mode<synchronous>, transform_indices = @transform_1, window_bounds = array<i64: 256, 128>}, {pipeline_mode = #tpu.pipeline_mode<synchronous>, transform_indices = @transform_2, window_bounds = array<i64: 1, 128>}, {transform_indices = @transform_3, window_bounds = array<i64: 256, 128>}]} {
    %c0 = arith.constant 0 : index
    %c0_0 = arith.constant 0 : index
    %0 = vector.load %arg1[%c0, %c0_0] : memref<256x256xbf16, #tpu.memory_space<vmem>>, vector<256x256xbf16>
    %c0_1 = arith.constant 0 : index
    %c0_2 = arith.constant 0 : index
    %1 = vector.load %arg2[%c0_1, %c0_2] : memref<256x128xbf16, #tpu.memory_space<vmem>>, vector<256x128xbf16>
    %cst = arith.constant dense<0.000000e+00> : vector<256x128xf32>
    %2 = tpu.matmul %0, %1, %cst {dimension_numbers = #tpu.dot_dimension_numbers<[1], [0], [0], [1], [0, 0, 1, 1], [], []>} : vector<256x256xbf16>, vector<256x128xbf16>, vector<256x128xf32> -> vector<256x128xf32>
    %c0_3 = arith.constant 0 : index
    %c0_4 = arith.constant 0 : index
    %3 = vector.load %arg3[%c0_3, %c0_4] : memref<1x128xf32, #tpu.memory_space<vmem>>, vector<1x128xf32>
    %4 = vector.broadcast %3 : vector<1x128xf32> to vector<256x128xf32>
    %5 = arith.addf %2, %4 : vector<256x128xf32>
    %6 = math.tanh %5 : vector<256x128xf32>
    %c0_5 = arith.constant 0 : index
    %c0_6 = arith.constant 0 : index
    %7 = vector.load %arg4[%c0_5, %c0_6] : memref<256x128xf32, #tpu.memory_space<vmem>>, vector<256x128xf32>
    tpu.vector_store %arg4[%c0_5, %c0_6], %6 {strides = array<i32>} : memref<256x128xf32, #tpu.memory_space<vmem>>, vector<256x128xf32>,
    return
  }
  func.func @transform_0(%arg0: i32) -> (i32, i32) {
    %c0_i32 = arith.constant 0 : i32
    %c0_i32_0 = arith.constant 0 : i32
    return %arg0, %c0_i32 : i32, i32
  }
  func.func @transform_1(%arg0: i32) -> (i32, i32) {
    %c0_i32 = arith.constant 0 : i32
    %c0_i32_0 = arith.constant 0 : i32
    %c0_i32_1 = arith.constant 0 : i32
    return %c0_i32, %c0_i32_0 : i32, i32
  }
  func.func @transform_2(%arg0: i32) -> (i32, i32) {
    %c0_i32 = arith.constant 0 : i32
    %c0_i32_0 = arith.constant 0 : i32
    %c0_i32_1 = arith.constant 0 : i32
    return %c0_i32, %c0_i32_0 : i32, i32
  }
  func.func @transform_3(%arg0: i32) -> (i32, i32) {
    %c0_i32 = arith.constant 0 : i32
    %c0_i32_0 = arith.constant 0 : i32
    return %arg0, %c0_i32 : i32, i32
  }
}

</mosaic_0001>

<bundles_post_ra>
// kernel: convcgenerator_forward.5
= control target key start
LH: loop header
LB: loop body
LE: loop exit
PB: predicated region body
PF: predicated region fallthrough
CT: control target
= control target key end

     0   :  { %s6408_s1 = inlined_call_operand.vmem [shape: bf16[1536,512], index: 1, kind: input, shape index: {}]   ;;  %s6409_s0 = inlined_call_operand.vmem [shape: bf16[56,1536], index: 0, kind: input, shape index: {}]   ;;  %s6410_s2 = inlined_call_operand.vmem [shape: f32[1,512], index: 2, kind: input, shape index: {}]   ;;  %s6411_s3 = inlined_call_operand.vmem [shape: bf16[56,512], index: 3, kind: output, shape index: {}]  }
   0x1   :  { %v4050_v0 = vld [vmem:[%s6408_s1 + $0xe4] ss:$16 sps:$4 sm:$0xff]   ;;  %v4054_v2 = vld [vmem:[%s6408_s1 + $0xe0] ss:$16 sps:$4 sm:$0xff]   ;;  %v4151_v51 = vld [vmem:[%s6409_s0 + $0xc] ss:$48 sps:$4 sm:$0xff]  }
   0x2   :  { %v4052_v1 = vld [vmem:[%s6408_s1 + $0x2e4] ss:$16 sps:$4 sm:$0xff]   ;;  %2604 = vmatprep.subr.bf16.mxu0 %v4050_v0  ;;  %v4055_v3 = vld [vmem:[%s6408_s1 + $0x2e0] ss:$16 sps:$4 sm:$0xff]   ;;  %2707 = vmatprep.mubr.bf16.mxu1 %v4151_v51 }
   0x3   :  { %2675 = vmatprep.subr.bf16.mxu1 %v4052_v1  ;;  %v4056_v4 = vld [vmem:[%s6408_s1 + $0xc4] ss:$16 sps:$4 sm:$0xff]   ;;  %2605 = vmatpush1.bf16.msra.mxu0 %v4054_v2  ;;  %v4060_v6 = vld [vmem:[%s6408_s1 + $0xc0] ss:$16 sps:$4 sm:$0xff]  }
   0x4   :  { %2676 = vmatpush1.bf16.msra.mxu1 %v4055_v3  ;;  %v4058_v5 = vld [vmem:[%s6408_s1 + $0x2c4] ss:$16 sps:$4 sm:$0xff]   ;;  %2606 = vmatprep.subr.bf16.mxu0 %v4056_v4  ;;  %v4061_v7 = vld [vmem:[%s6408_s1 + $0x2c0] ss:$16 sps:$4 sm:$0xff]  }
   0x5   :  { %2677 = vmatprep.subr.bf16.mxu1 %v4058_v5  ;;  %v4062_v8 = vld [vmem:[%s6408_s1 + $0xa4] ss:$16 sps:$4 sm:$0xff]   ;;  %v4066_v10 = vld [vmem:[%s6408_s1 + $0xa0] ss:$16 sps:$4 sm:$0xff]   ;;  %v4149_v5 = vld [vmem:[%s6409_s0 + $0x8] ss:$48 sps:$4 sm:$0xff]  }
   0x6   :  { %v4064_v9 = vld [vmem:[%s6408_s1 + $0x2a4] ss:$16 sps:$4 sm:$0xff]   ;;  %v4067_v11 = vld [vmem:[%s6408_s1 + $0x2a0] ss:$16 sps:$4 sm:$0xff]  }
   0x7   :  { %2607 = vmatpush1.bf16.msra.mxu0 %v4060_v6  ;;  %v4068_v12 = vld [vmem:[%s6408_s1 + $0x84] ss:$16 sps:$4 sm:$0xff]   ;;  %v4072_v14 = vld [vmem:[%s6408_s1 + $0x80] ss:$16 sps:$4 sm:$0xff]  }
   0x8   :  { %2678 = vmatpush1.bf16.msra.mxu1 %v4061_v7  ;;  %2608 = vmatprep.subr.bf16.mxu0 %v4062_v8  ;;  %v4070_v13 = vld [vmem:[%s6408_s1 + $0x284] ss:$16 sps:$4 sm:$0xff]   ;;  %v4073_v15 = vld [vmem:[%s6408_s1 + $0x280] ss:$16 sps:$4 sm:$0xff]  }
   0x9   :  { %2679 = vmatprep.subr.bf16.mxu1 %v4064_v9  ;;  %v4074_v16 = vld [vmem:[%s6408_s1 + $0x64] ss:$16 sps:$4 sm:$0xff]   ;;  %v4078_v18 = vld [vmem:[%s6408_s1 + $0x60] ss:$16 sps:$4 sm:$0xff]  }
   0xa   :  { %v4076_v17 = vld [vmem:[%s6408_s1 + $0x264] ss:$16 sps:$4 sm:$0xff]   ;;  %v4079_v19 = vld [vmem:[%s6408_s1 + $0x260] ss:$16 sps:$4 sm:$0xff]  }
   0xb   :  { %2609 = vmatpush1.bf16.msra.mxu0 %v4066_v10  ;;  %v4080_v20 = vld [vmem:[%s6408_s1 + $0x44] ss:$16 sps:$4 sm:$0xff]   ;;  %v4084_v22 = vld [vmem:[%s6408_s1 + $0x40] ss:$16 sps:$4 sm:$0xff]  }
   0xc   :  { %2680 = vmatpush1.bf16.msra.mxu1 %v4067_v11  ;;  %2610 = vmatprep.subr.bf16.mxu0 %v4068_v12  ;;  %v4082_v21 = vld [vmem:[%s6408_s1 + $0x244] ss:$16 sps:$4 sm:$0xff]   ;;  %v4085_v23 = vld [vmem:[%s6408_s1 + $0x240] ss:$16 sps:$4 sm:$0xff]  }
   0xd   :  { %2681 = vmatprep.subr.bf16.mxu1 %v4070_v13  ;;  %v4086_v24 = vld [vmem:[%s6408_s1 + $0x24] ss:$16 sps:$4 sm:$0xff]   ;;  %v4090_v26 = vld [vmem:[%s6408_s1 + $0x20] ss:$16 sps:$4 sm:$0xff]  }
   0xe   :  { %v4088_v25 = vld [vmem:[%s6408_s1 + $0x224] ss:$16 sps:$4 sm:$0xff]   ;;  %v4091_v27 = vld [vmem:[%s6408_s1 + $0x220] ss:$16 sps:$4 sm:$0xff]  }
   0xf   :  { %2611 = vmatpush1.bf16.msra.mxu0 %v4072_v14  ;;  %v4092_v28 = vld [vmem:[%s6408_s1 + $0x4] ss:$16 sps:$4 sm:$0xff]   ;;  %v4096_v30 = vld [vmem:[%s6408_s1] ss:$16 sps:$4 sm:$0xff]  }
  0x10   :  { %2682 = vmatpush1.bf16.msra.mxu1 %v4073_v15  ;;  %2612 = vmatprep.subr.bf16.mxu0 %v4074_v16  ;;  %v4094_v29 = vld [vmem:[%s6408_s1 + $0x204] ss:$16 sps:$4 sm:$0xff]   ;;  %v4097_v31 = vld [vmem:[%s6408_s1 + $0x200] ss:$16 sps:$4 sm:$0xff]  }
  0x11   :  { %2683 = vmatprep.subr.bf16.mxu1 %v4076_v17  ;;  %v4098_v32 = vld [vmem:[%s6408_s1 + $0x1e4] ss:$16 sps:$4 sm:$0xff]   ;;  %v4102_v34 = vld [vmem:[%s6408_s1 + $0x1e0] ss:$16 sps:$4 sm:$0xff]   ;;  %v4209_v17 = vld [vmem:[%s6409_s0 + $0x6c] ss:$48 sps:$4 sm:$0xff]  }
  0x12   :  { %v4100_v33 = vld [vmem:[%s6408_s1 + $0x3e4] ss:$16 sps:$4 sm:$0xff]   ;;  %v4103_v35 = vld [vmem:[%s6408_s1 + $0x3e0] ss:$16 sps:$4 sm:$0xff]  }
  0x13   :  { %2613 = vmatpush1.bf16.msra.mxu0 %v4078_v18  ;;  %v4104_v36 = vld [vmem:[%s6408_s1 + $0x1c4] ss:$16 sps:$4 sm:$0xff]   ;;  %v4108_v38 = vld [vmem:[%s6408_s1 + $0x1c0] ss:$16 sps:$4 sm:$0xff]  }
  0x14   :  { %2684 = vmatpush1.bf16.msra.mxu1 %v4079_v19  ;;  %2614 = vmatprep.subr.bf16.mxu0 %v4080_v20  ;;  %v4106_v37 = vld [vmem:[%s6408_s1 + $0x3c4] ss:$16 sps:$4 sm:$0xff]   ;;  %v4109_v39 = vld [vmem:[%s6408_s1 + $0x3c0] ss:$16 sps:$4 sm:$0xff]  }
  0x15   :  { %2685 = vmatprep.subr.bf16.mxu1 %v4082_v21  ;;  %v4110_v40 = vld [vmem:[%s6408_s1 + $0x1a4] ss:$16 sps:$4 sm:$0xff]   ;;  %v4114_v42 = vld [vmem:[%s6408_s1 + $0x1a0] ss:$16 sps:$4 sm:$0xff]   ;;  %v4217_v21 = vld [vmem:[%s6409_s0 + $0x68] ss:$48 sps:$4 sm:$0xff]  }
  0x16   :  { %v4112_v41 = vld [vmem:[%s6408_s1 + $0x3a4] ss:$16 sps:$4 sm:$0xff]   ;;  %v4115_v43 = vld [vmem:[%s6408_s1 + $0x3a0] ss:$16 sps:$4 sm:$0xff]  }
  0x17   :  { %2615 = vmatpush1.bf16.msra.mxu0 %v4084_v22  ;;  %v4116_v44 = vld [vmem:[%s6408_s1 + $0x184] ss:$16 sps:$4 sm:$0xff]   ;;  %v4120_v46 = vld [vmem:[%s6408_s1 + $0x180] ss:$16 sps:$4 sm:$0xff]  }
  0x18   :  { %2686 = vmatpush1.bf16.msra.mxu1 %v4085_v23  ;;  %2616 = vmatprep.subr.bf16.mxu0 %v4086_v24  ;;  %v4118_v45 = vld [vmem:[%s6408_s1 + $0x384] ss:$16 sps:$4 sm:$0xff]   ;;  %v4121_v47 = vld [vmem:[%s6408_s1 + $0x380] ss:$16 sps:$4 sm:$0xff]  }
  0x19   :  { %2687 = vmatprep.subr.bf16.mxu1 %v4088_v25  ;;  %v4122_v48 = vld [vmem:[%s6408_s1 + $0x164] ss:$16 sps:$4 sm:$0xff]   ;;  %v4126_v52 = vld [vmem:[%s6408_s1 + $0x160] ss:$16 sps:$4 sm:$0xff]  }
  0x1a   :  { %v4148_v49 = vld [vmem:[%s6409_s0 + $0x4] ss:$48 sps:$4 sm:$0xff]   ;;  %v4127_v53 = vld [vmem:[%s6408_s1 + $0x360] ss:$16 sps:$4 sm:$0xff]  }
  0x1b   :  { %2617 = vmatpush1.bf16.msra.mxu0 %v4090_v26  ;;  %v4124_v50 = vld [vmem:[%s6408_s1 + $0x364] ss:$16 sps:$4 sm:$0xff]   ;;  %2636 = vmatprep.mubr.bf16.mxu0 %v4148_v49  ;;  %v4132_v56 = vld [vmem:[%s6408_s1 + $0x140] ss:$16 sps:$4 sm:$0xff]  }
  0x1c   :  { %2688 = vmatpush1.bf16.msra.mxu1 %v4091_v27  ;;  %2618 = vmatprep.subr.bf16.mxu0 %v4092_v28  ;;  %v4128_v54 = vld [vmem:[%s6408_s1 + $0x144] ss:$16 sps:$4 sm:$0xff]   ;;  %v4133_v57 = vld [vmem:[%s6408_s1 + $0x340] ss:$16 sps:$4 sm:$0xff]  }
  0x1d   :  { %2689 = vmatprep.subr.bf16.mxu1 %v4094_v29  ;;  %v4130_v55 = vld [vmem:[%s6408_s1 + $0x344] ss:$16 sps:$4 sm:$0xff]   ;;  %v4138_v60 = vld [vmem:[%s6408_s1 + $0x120] ss:$16 sps:$4 sm:$0xff]   ;;  %v4227_v29 = vld [vmem:[%s6409_s0 + $0xcc] ss:$48 sps:$4 sm:$0xff]  }
  0x1e   :  { %v4134_v58 = vld [vmem:[%s6408_s1 + $0x124] ss:$16 sps:$4 sm:$0xff]   ;;  %v4139_v61 = vld [vmem:[%s6408_s1 + $0x320] ss:$16 sps:$4 sm:$0xff]  }
  0x1f   :  { %2619 = vmatpush1.bf16.msra.mxu0 %v4096_v30  ;;  %v4136_v59 = vld [vmem:[%s6408_s1 + $0x324] ss:$16 sps:$4 sm:$0xff]   ;;  %v4144_v0 = vld [vmem:[%s6408_s1 + $0x100] ss:$16 sps:$4 sm:$0xff]  }
  0x20   :  { %2690 = vmatpush1.bf16.msra.mxu1 %v4097_v31  ;;  %2620 = vmatprep.subr.bf16.mxu0 %v4098_v32  ;;  %v4140_v62 = vld [vmem:[%s6408_s1 + $0x104] ss:$16 sps:$4 sm:$0xff]   ;;  %v4145_v1 = vld [vmem:[%s6408_s1 + $0x300] ss:$16 sps:$4 sm:$0xff]  }
  0x21   :  { %2691 = vmatprep.subr.bf16.mxu1 %v4100_v33  ;;  %v4142_v63 = vld [vmem:[%s6408_s1 + $0x304] ss:$16 sps:$4 sm:$0xff]   ;;  %v4146_v4 = vld [vmem:[%s6409_s0] ss:$48 sps:$4 sm:$0xff]   ;;  %v4235_v33 = vld [vmem:[%s6409_s0 + $0xc8] ss:$48 sps:$4 sm:$0xff]  }
  0x22   :  { %v4154_v2 = vld [vmem:[%s6408_s1 + $0x4e4] ss:$16 sps:$4 sm:$0xff]   ;;  %v4152_v6 = vld [vmem:[%s6408_s1 + $0x4e0] ss:$16 sps:$4 sm:$0xff]  }
  0x23   :  { %2621 = vmatpush2.bf16.msra.mxu0 %v4102_v34  ;;  %v4157_v3 = vld [vmem:[%s6408_s1 + $0x6e4] ss:$16 sps:$4 sm:$0xff]   ;;  %v4155_v7 = vld [vmem:[%s6408_s1 + $0x6e0] ss:$16 sps:$4 sm:$0xff]  }
  0x24   :  { %2692 = vmatpush2.bf16.msra.mxu1 %v4103_v35  ;;  %2622 = vmatprep.subr.bf16.mxu0 %v4104_v36  ;;  %v4160_v8 = vld [vmem:[%s6408_s1 + $0x4c4] ss:$16 sps:$4 sm:$0xff]   ;;  %v4158_v10 = vld [vmem:[%s6408_s1 + $0x4c0] ss:$16 sps:$4 sm:$0xff]  }
  0x25   :  { %2693 = vmatprep.subr.bf16.mxu1 %v4106_v37  ;;  %v4163_v9 = vld [vmem:[%s6408_s1 + $0x6c4] ss:$16 sps:$4 sm:$0xff]   ;;  %v4161_v11 = vld [vmem:[%s6408_s1 + $0x6c0] ss:$16 sps:$4 sm:$0xff]  }
  0x26   :  { %v4166_v12 = vld [vmem:[%s6408_s1 + $0x4a4] ss:$16 sps:$4 sm:$0xff]   ;;  %v4164_v14 = vld [vmem:[%s6408_s1 + $0x4a0] ss:$16 sps:$4 sm:$0xff]  }
  0x27   :  { %2623 = vmatpush2.bf16.msra.mxu0 %v4108_v38  ;;  %v4169_v13 = vld [vmem:[%s6408_s1 + $0x6a4] ss:$16 sps:$4 sm:$0xff]   ;;  %v4208_v16 = vld [vmem:[%s6409_s0 + $0x60] ss:$48 sps:$4 sm:$0xff]  }
  0x28   :  { %2694 = vmatpush2.bf16.msra.mxu1 %v4109_v39  ;;  %2624 = vmatprep.subr.bf16.mxu0 %v4110_v40  ;;  %v4206_v15 = vld [vmem:[%s6409_s0 + $0x64] ss:$48 sps:$4 sm:$0xff]   ;;  %v4167_v18 = vld [vmem:[%s6408_s1 + $0x6a0] ss:$16 sps:$4 sm:$0xff]   ;;  %v51_v39 = vld [vmem:[%s6409_s0 + $0x128] sm:$0xff] }
  0x29   :  { %2695 = vmatprep.subr.bf16.mxu1 %v4112_v41  ;;  %v4172_v19 = vld [vmem:[%s6408_s1 + $0x484] ss:$16 sps:$4 sm:$0xff]   ;;  %v4170_v22 = vld [vmem:[%s6408_s1 + $0x480] ss:$16 sps:$4 sm:$0xff]   ;;  %v5063_v41 = vcombine.high %v51_v39, %v51_v39 }
  0x2a   :  { %v4175_v20 = vld [vmem:[%s6408_s1 + $0x684] ss:$16 sps:$4 sm:$0xff]   ;;  %v4173_v23 = vld [vmem:[%s6408_s1 + $0x680] ss:$16 sps:$4 sm:$0xff]  }
  0x2b   :  { %2625 = vmatpush2.bf16.msra.mxu0 %v4114_v42  ;;  %v4178_v24 = vld [vmem:[%s6408_s1 + $0x464] ss:$16 sps:$4 sm:$0xff]   ;;  %v4176_v26 = vld [vmem:[%s6408_s1 + $0x460] ss:$16 sps:$4 sm:$0xff]  }
  0x2c   :  { %2696 = vmatpush2.bf16.msra.mxu1 %v4115_v43  ;;  %2626 = vmatprep.subr.bf16.mxu0 %v4116_v44  ;;  %v4181_v25 = vld [vmem:[%s6408_s1 + $0x664] ss:$16 sps:$4 sm:$0xff]   ;;  %v4226_v28 = vld [vmem:[%s6409_s0 + $0xc0] ss:$48 sps:$4 sm:$0xff]  }
  0x2d   :  { %2697 = vmatprep.subr.bf16.mxu1 %v4118_v45  ;;  %v4224_v27 = vld [vmem:[%s6409_s0 + $0xc4] ss:$48 sps:$4 sm:$0xff]   ;;  %v4179_v30 = vld [vmem:[%s6408_s1 + $0x660] ss:$16 sps:$4 sm:$0xff]  }
  0x2e   :  { %v4184_v31 = vld [vmem:[%s6408_s1 + $0x444] ss:$16 sps:$4 sm:$0xff]   ;;  %v4182_v34 = vld [vmem:[%s6408_s1 + $0x440] ss:$16 sps:$4 sm:$0xff]  }
  0x2f   :  { %2627 = vmatpush2.bf16.msra.mxu0 %v4120_v46  ;;  %v4187_v32 = vld [vmem:[%s6408_s1 + $0x644] ss:$16 sps:$4 sm:$0xff]   ;;  %v4185_v35 = vld [vmem:[%s6408_s1 + $0x640] ss:$16 sps:$4 sm:$0xff]  }
  0x30   :  { %2698 = vmatpush2.bf16.msra.mxu1 %v4121_v47  ;;  %2628 = vmatprep.subr.bf16.mxu0 %v4122_v48  ;;  %v4190_v36 = vld [vmem:[%s6408_s1 + $0x424] ss:$16 sps:$4 sm:$0xff]   ;;  %v4188_v43 = vld [vmem:[%s6408_s1 + $0x420] ss:$16 sps:$4 sm:$0xff]   ;;  %v5081_v47 = vcombine.low %v51_v39, %v51_v39 }
  0x31   :  { %2699 = vmatprep.subr.bf16.mxu1 %v4124_v50  ;;  %v4193_v37 = vld [vmem:[%s6408_s1 + $0x624] ss:$16 sps:$4 sm:$0xff]   ;;  %v4191_v44 = vld [vmem:[%s6408_s1 + $0x620] ss:$16 sps:$4 sm:$0xff]  }
  0x32   :  { %v50_v38 = vld [vmem:[%s6409_s0 + $0x120] sm:$0xff] }
  0x33   :  { %2629 = vmatpush2.bf16.msra.mxu0 %v4126_v52  ;;  %v5061_v40 = vcombine.high %v50_v38, %v50_v38  ;;  %v5065_v42 = vcombine.low %v50_v38, %v50_v38  ;;  %v4196_v45 = vld [vmem:[%s6408_s1 + $0x404] ss:$16 sps:$4 sm:$0xff]   ;;  %v4194_v48 = vld [vmem:[%s6408_s1 + $0x400] ss:$16 sps:$4 sm:$0xff]  }
  0x34   :  { %2700 = vmatpush2.bf16.msra.mxu1 %v4127_v53  ;;  %2630 = vmatprep.subr.bf16.mxu0 %v4128_v54  ;;  %v4199_v46 = vld [vmem:[%s6408_s1 + $0x604] ss:$16 sps:$4 sm:$0xff]   ;;  %v4197_v49 = vld [vmem:[%s6408_s1 + $0x600] ss:$16 sps:$4 sm:$0xff]  }
  0x35   :  { %2701 = vmatprep.subr.bf16.mxu1 %v4130_v55  ;;  %v4202_v50 = vld [vmem:[%s6408_s1 + $0x5e4] ss:$16 sps:$4 sm:$0xff]   ;;  %v4200_v52 = vld [vmem:[%s6408_s1 + $0x5e0] ss:$16 sps:$4 sm:$0xff]   ;;  %v4269_v55 = vld [vmem:[%s6409_s0 + $0x1c] ss:$48 sps:$4 sm:$0xff]  }
  0x36   :  { %v4205_v51 = vld [vmem:[%s6408_s1 + $0x7e4] ss:$16 sps:$4 sm:$0xff]   ;;  %v4203_v54 = vld [vmem:[%s6408_s1 + $0x7e0] ss:$16 sps:$4 sm:$0xff]  }
  0x37   :  { %2631 = vmatpush2.bf16.msra.mxu0 %v4132_v56  ;;  %v4266_v53 = vld [vmem:[%s6409_s0 + $0x14] ss:$48 sps:$4 sm:$0xff]  }
  0x38   :  { %2702 = vmatpush2.bf16.msra.mxu1 %v4133_v57  ;;  %2632 = vmatprep.subr.bf16.mxu0 %v4134_v58  ;;  %v4213_v56 = vld [vmem:[%s6408_s1 + $0x5c4] ss:$16 sps:$4 sm:$0xff]   ;;  %v4211_v58 = vld [vmem:[%s6408_s1 + $0x5c0] ss:$16 sps:$4 sm:$0xff]  }
  0x39   :  { %2703 = vmatprep.subr.bf16.mxu1 %v4136_v59  ;;  %v4216_v57 = vld [vmem:[%s6408_s1 + $0x7c4] ss:$16 sps:$4 sm:$0xff]   ;;  %v4214_v59 = vld [vmem:[%s6408_s1 + $0x7c0] ss:$16 sps:$4 sm:$0xff]  }
  0x3a   :  { %v4296_v38 = vld [vmem:[%s6408_s1 + $0x884] ss:$16 sps:$4 sm:$0xff]  }
  0x3b   :  { %2633 = vmatpush2.bf16.msra.mxu0 %v4138_v60  ;;  %v4220_v60 = vld [vmem:[%s6408_s1 + $0x5a4] ss:$16 sps:$4 sm:$0xff]  }
  0x3c   :  { %2704 = vmatpush2.bf16.msra.mxu1 %v4139_v61  ;;  %2634 = vmatprep.subr.bf16.mxu0 %v4140_v62  ;;  %v4223_v61 = vld [vmem:[%s6408_s1 + $0x7a4] ss:$16 sps:$4 sm:$0xff]   ;;  %v4218_v62 = vld [vmem:[%s6408_s1 + $0x5a0] ss:$16 sps:$4 sm:$0xff]  }
  0x3d   :  { %2705 = vmatprep.subr.bf16.mxu1 %v4142_v63  ;;  %v4221_v63 = vld [vmem:[%s6408_s1 + $0x7a0] ss:$16 sps:$4 sm:$0xff]   ;;  %v4299_v39 = vld [vmem:[%s6408_s1 + $0xa84] ss:$16 sps:$4 sm:$0xff]  }
  0x3f   :  { %2635 = vmatpush2.bf16.msra.mxu0 %v4144_v0  ;;  %v4231_v0 = vld [vmem:[%s6408_s1 + $0x584] ss:$16 sps:$4 sm:$0xff]  }
  0x40   :  { %2706 = vmatpush2.bf16.msra.mxu1 %v4145_v1  ;;  %2746 = vmatprep.subr.bf16.mxu0 %v4154_v2  ;;  %v4234_v1 = vld [vmem:[%s6408_s1 + $0x784] ss:$16 sps:$4 sm:$0xff]   ;;  %v4229_v2 = vld [vmem:[%s6408_s1 + $0x580] ss:$16 sps:$4 sm:$0xff]  }
  0x41   :  { %2817 = vmatprep.subr.bf16.mxu1 %v4157_v3  ;;  %v4232_v3 = vld [vmem:[%s6408_s1 + $0x780] ss:$16 sps:$4 sm:$0xff]  }
  0x42   :  { %2637 = vmatmul.mubr.bf16.vlgmr.msra.gmra.mxu0 %v4146_v4  ;;  %v4238_v4 = vld [vmem:[%s6408_s1 + $0x564] ss:$16 sps:$4 sm:$0xff]  }
  0x43   :  { %2708 = vmatmul.mubr.bf16.vlgmr.msra.gmra.mxu1 %v4149_v5  ;;  %2747 = vmatpush1.bf16.msra.mxu0 %v4152_v6  ;;  %v4241_v5 = vld [vmem:[%s6408_s1 + $0x764] ss:$16 sps:$4 sm:$0xff]   ;;  %v4236_v6 = vld [vmem:[%s6408_s1 + $0x560] ss:$16 sps:$4 sm:$0xff]  }
  0x44   :  { %2818 = vmatpush1.bf16.msra.mxu1 %v4155_v7  ;;  %2748 = vmatprep.subr.bf16.mxu0 %v4160_v8  ;;  %v4239_v7 = vld [vmem:[%s6408_s1 + $0x760] ss:$16 sps:$4 sm:$0xff]   ;;  %v4247_v8 = vld [vmem:[%s6408_s1 + $0x544] ss:$16 sps:$4 sm:$0xff]  }
  0x45   :  { %2819 = vmatprep.subr.bf16.mxu1 %v4163_v9  ;;  %2646 = vmatprep.mubr.bf16.mxu0 %v4206_v15  ;;  %v4250_v9 = vld [vmem:[%s6408_s1 + $0x744] ss:$16 sps:$4 sm:$0xff]   ;;  %v4255_v15 = vld [vmem:[%s6408_s1 + $0x720] ss:$16 sps:$4 sm:$0xff]  }
  0x46   :  { %2717 = vmatprep.mubr.bf16.mxu1 %v4209_v17  ;;  %v4263_v17 = vld [vmem:[%s6408_s1 + $0x704] ss:$16 sps:$4 sm:$0xff]  }
  0x47   :  { %2749 = vmatpush1.bf16.msra.mxu0 %v4158_v10  ;;  %v4245_v10 = vld [vmem:[%s6408_s1 + $0x540] ss:$16 sps:$4 sm:$0xff]  }
  0x48   :  { %2820 = vmatpush1.bf16.msra.mxu1 %v4161_v11  ;;  %2750 = vmatprep.subr.bf16.mxu0 %v4166_v12  ;;  %v4248_v11 = vld [vmem:[%s6408_s1 + $0x740] ss:$16 sps:$4 sm:$0xff]   ;;  %v4254_v12 = vld [vmem:[%s6408_s1 + $0x524] ss:$16 sps:$4 sm:$0xff]  }
  0x49   :  { %2821 = vmatprep.subr.bf16.mxu1 %v4169_v13  ;;  %v4257_v13 = vld [vmem:[%s6408_s1 + $0x724] ss:$16 sps:$4 sm:$0xff]  }
  0x4a   :  { %2647 = vmatmul.mubr.bf16.gmra.mxu0 %v4208_v16  ;;  %v4260_v16 = vld [vmem:[%s6408_s1 + $0x504] ss:$16 sps:$4 sm:$0xff]  }
  0x4b   :  { %2751 = vmatpush1.bf16.msra.mxu0 %v4164_v14  ;;  %2718 = vmatmul.mubr.bf16.gmra.mxu1 %v4217_v21  ;;  %v4252_v14 = vld [vmem:[%s6408_s1 + $0x520] ss:$16 sps:$4 sm:$0xff]   ;;  %v4275_v21 = vld [vmem:[%s6408_s1 + $0xae4] ss:$16 sps:$4 sm:$0xff]  }
  0x4c   :  { %2822 = vmatpush1.bf16.msra.mxu1 %v4167_v18  ;;  %2752 = vmatprep.subr.bf16.mxu0 %v4172_v19  ;;  %v4258_v18 = vld [vmem:[%s6408_s1 + $0x500] ss:$16 sps:$4 sm:$0xff]  }
  0x4d   :  { %2823 = vmatprep.subr.bf16.mxu1 %v4175_v20  ;;  %2656 = vmatprep.mubr.bf16.mxu0 %v4224_v27  ;;  %v4261_v19 = vld [vmem:[%s6408_s1 + $0x700] ss:$16 sps:$4 sm:$0xff]   ;;  %v4272_v20 = vld [vmem:[%s6408_s1 + $0x8e4] ss:$16 sps:$4 sm:$0xff]  }
  0x4e   :  { %2727 = vmatprep.mubr.bf16.mxu1 %v4227_v29  ;;  %v4281_v27 = vld [vmem:[%s6408_s1 + $0xac4] ss:$16 sps:$4 sm:$0xff]   ;;  %v4291_v29 = vld [vmem:[%s6409_s0 + $0x7c] ss:$48 sps:$4 sm:$0xff]  }
  0x4f   :  { %2753 = vmatpush1.bf16.msra.mxu0 %v4170_v22  ;;  %v4264_v22 = vld [vmem:[%s6409_s0 + $0x10] ss:$48 sps:$4 sm:$0xff]  }
  0x50   :  { %2824 = vmatpush1.bf16.msra.mxu1 %v4173_v23  ;;  %2754 = vmatprep.subr.bf16.mxu0 %v4178_v24  ;;  %v4267_v23 = vld [vmem:[%s6409_s0 + $0x18] ss:$48 sps:$4 sm:$0xff]   ;;  %v4270_v24 = vld [vmem:[%s6408_s1 + $0x8e0] ss:$16 sps:$4 sm:$0xff]  }
  0x51   :  { %2825 = vmatprep.subr.bf16.mxu1 %v4181_v25  ;;  %v4273_v25 = vld [vmem:[%s6408_s1 + $0xae0] ss:$16 sps:$4 sm:$0xff]  }
  0x52   :  { %2657 = vmatmul.mubr.bf16.gmra.mxu0 %v4226_v28  ;;  %v4282_v28 = vld [vmem:[%s6409_s0 + $0x74] ss:$48 sps:$4 sm:$0xff]  }
  0x53   :  { %2755 = vmatpush1.bf16.msra.mxu0 %v4176_v26  ;;  %2728 = vmatmul.mubr.bf16.gmra.mxu1 %v4235_v33  ;;  %v4278_v26 = vld [vmem:[%s6408_s1 + $0x8c4] ss:$16 sps:$4 sm:$0xff]  }
  0x54   :  { %2826 = vmatpush1.bf16.msra.mxu1 %v4179_v30  ;;  %2756 = vmatprep.subr.bf16.mxu0 %v4184_v31  ;;  %v4276_v30 = vld [vmem:[%s6408_s1 + $0x8c0] ss:$16 sps:$4 sm:$0xff]   ;;  %v4290_v33 = vld [vmem:[%s6408_s1 + $0xaa4] ss:$16 sps:$4 sm:$0xff]  }
  0x55   :  { %2827 = vmatprep.subr.bf16.mxu1 %v4187_v32  ;;  %2666 = vmatprep.mubr.bf16.mxu0 %v5061_v40  ;;  %v4279_v31 = vld [vmem:[%s6408_s1 + $0xac0] ss:$16 sps:$4 sm:$0xff]   ;;  %v4287_v32 = vld [vmem:[%s6408_s1 + $0x8a4] ss:$16 sps:$4 sm:$0xff]  }
  0x56   :  { %2737 = vmatprep.mubr.bf16.mxu1 %v5063_v41 }
  0x57   :  { %2757 = vmatpush1.bf16.msra.mxu0 %v4182_v34  ;;  %v4284_v34 = vld [vmem:[%s6409_s0 + $0x70] ss:$48 sps:$4 sm:$0xff]  }
  0x58   :  { %2828 = vmatpush1.bf16.msra.mxu1 %v4185_v35  ;;  %2758 = vmatprep.subr.bf16.mxu0 %v4190_v36  ;;  %v4285_v35 = vld [vmem:[%s6408_s1 + $0x8a0] ss:$16 sps:$4 sm:$0xff]  }
  0x59   :  { %2829 = vmatprep.subr.bf16.mxu1 %v4193_v37  ;;  %v4288_v36 = vld [vmem:[%s6408_s1 + $0xaa0] ss:$16 sps:$4 sm:$0xff]   ;;  %v4293_v37 = vld [vmem:[%s6409_s0 + $0x78] ss:$48 sps:$4 sm:$0xff]  }
  0x5a   :  { %2667 = vmatmul.mubr.bf16.gmra.mxu0 %v5065_v42 }
  0x5b   :  { %2759 = vmatpush1.bf16.msra.mxu0 %v4188_v43  ;;  %2738 = vmatmul.mubr.bf16.gmra.mxu1 %v5081_v47  ;;  %v4300_v43 = vld [vmem:[%s6409_s0 + $0xd4] ss:$48 sps:$4 sm:$0xff]  }
  0x5c   :  { %2830 = vmatpush1.bf16.msra.mxu1 %v4191_v44  ;;  %2760 = vmatprep.subr.bf16.mxu0 %v4196_v45  ;;  %v4309_v44 = vld [vmem:[%s6409_s0 + $0xdc] ss:$48 sps:$4 sm:$0xff]   ;;  %v4294_v45 = vld [vmem:[%s6408_s1 + $0x880] ss:$16 sps:$4 sm:$0xff]  }
  0x5d   :  { %2831 = vmatprep.subr.bf16.mxu1 %v4199_v46  ;;  %2778 = vmatprep.mubr.bf16.mxu0 %v4266_v53  ;;  %v4297_v46 = vld [vmem:[%s6408_s1 + $0xa80] ss:$16 sps:$4 sm:$0xff]   ;;  %v4311_v53 = vld [vmem:[%s6409_s0 + $0xd8] ss:$48 sps:$4 sm:$0xff]  }
  0x5e   :  { %2849 = vmatprep.mubr.bf16.mxu1 %v4269_v55  ;;  %v53_v55 = vld [vmem:[%s6409_s0 + $0x138] sm:$0xff] }
  0x5f   :  { %2761 = vmatpush1.bf16.msra.mxu0 %v4194_v48  ;;  %v4305_v48 = vld [vmem:[%s6408_s1 + $0x864] ss:$16 sps:$4 sm:$0xff]  }
  0x60   :  { %2832 = vmatpush1.bf16.msra.mxu1 %v4197_v49  ;;  %2762 = vmatprep.subr.bf16.mxu0 %v4202_v50  ;;  %v4302_v49 = vld [vmem:[%s6409_s0 + $0xd0] ss:$48 sps:$4 sm:$0xff]   ;;  %v4308_v50 = vld [vmem:[%s6408_s1 + $0xa64] ss:$16 sps:$4 sm:$0xff]  }
  0x61   :  { %2833 = vmatprep.subr.bf16.mxu1 %v4205_v51  ;;  %v4303_v51 = vld [vmem:[%s6408_s1 + $0x860] ss:$16 sps:$4 sm:$0xff]  }
  0x63   :  { %2763 = vmatpush2.bf16.msra.mxu0 %v4200_v52  ;;  %v4306_v52 = vld [vmem:[%s6408_s1 + $0xa60] ss:$16 sps:$4 sm:$0xff]  }
  0x64   :  { %2834 = vmatpush2.bf16.msra.mxu1 %v4203_v54  ;;  %2764 = vmatprep.subr.bf16.mxu0 %v4213_v56  ;;  %v52_v54 = vld [vmem:[%s6409_s0 + $0x130] sm:$0xff] }
  0x65   :  { %2835 = vmatprep.subr.bf16.mxu1 %v4216_v57  ;;  %v4314_v56 = vld [vmem:[%s6408_s1 + $0x844] ss:$16 sps:$4 sm:$0xff]  }
  0x66   :  { %v4317_v57 = vld [vmem:[%s6408_s1 + $0xa44] ss:$16 sps:$4 sm:$0xff]  }
  0x67   :  { %2765 = vmatpush2.bf16.msra.mxu0 %v4211_v58  ;;  %v5295_v58 = vcombine.high %v52_v54, %v52_v54 }
  0x68   :  { %2836 = vmatpush2.bf16.msra.mxu1 %v4214_v59  ;;  %2766 = vmatprep.subr.bf16.mxu0 %v4220_v60  ;;  %v5297_v59 = vcombine.high %v53_v55, %v53_v55  ;;  %v4312_v60 = vld [vmem:[%s6408_s1 + $0x840] ss:$16 sps:$4 sm:$0xff]  }
  0x69   :  { %2837 = vmatprep.subr.bf16.mxu1 %v4223_v61  ;;  %v4315_v61 = vld [vmem:[%s6408_s1 + $0xa40] ss:$16 sps:$4 sm:$0xff]  }
  0x6b   :  { %2767 = vmatpush2.bf16.msra.mxu0 %v4218_v62  ;;  %v4322_v62 = vld [vmem:[%s6408_s1 + $0x824] ss:$16 sps:$4 sm:$0xff]  }
  0x6c   :  { %2838 = vmatpush2.bf16.msra.mxu1 %v4221_v63  ;;  %2768 = vmatprep.subr.bf16.mxu0 %v4231_v0  ;;  %v4325_v63 = vld [vmem:[%s6408_s1 + $0xa24] ss:$16 sps:$4 sm:$0xff]   ;;  %v5313_v0 = vcombine.low %v52_v54, %v52_v54 }
  0x6d   :  { %2839 = vmatprep.subr.bf16.mxu1 %v4234_v1  ;;  %v4320_v1 = vld [vmem:[%s6408_s1 + $0x820] ss:$16 sps:$4 sm:$0xff]   ;;  %v4400_v54 = vld [vmem:[%s6409_s0 + $0x84] ss:$48 sps:$4 sm:$0xff]  }
  0x6f   :  { %2769 = vmatpush2.bf16.msra.mxu0 %v4229_v2  ;;  %v4323_v2 = vld [vmem:[%s6408_s1 + $0xa20] ss:$16 sps:$4 sm:$0xff]  }
  0x70   :  { %2840 = vmatpush2.bf16.msra.mxu1 %v4232_v3  ;;  %2770 = vmatprep.subr.bf16.mxu0 %v4238_v4  ;;  %v5321_v3 = vcombine.low %v53_v55, %v53_v55  ;;  %v4330_v4 = vld [vmem:[%s6408_s1 + $0x804] ss:$16 sps:$4 sm:$0xff]   ;;  %v4409_v55 = vld [vmem:[%s6409_s0 + $0x8c] ss:$48 sps:$4 sm:$0xff]  }
  0x71   :  { %2841 = vmatprep.subr.bf16.mxu1 %v4241_v5  ;;  %v4333_v5 = vld [vmem:[%s6408_s1 + $0xa04] ss:$16 sps:$4 sm:$0xff]  }
  0x73   :  { %2771 = vmatpush2.bf16.msra.mxu0 %v4236_v6  ;;  %v4384_v6 = vld [vmem:[%s6409_s0 + $0x24] ss:$48 sps:$4 sm:$0xff]  }
  0x74   :  { %2842 = vmatpush2.bf16.msra.mxu1 %v4239_v7  ;;  %2772 = vmatprep.subr.bf16.mxu0 %v4247_v8  ;;  %v4387_v7 = vld [vmem:[%s6409_s0 + $0x2c] ss:$48 sps:$4 sm:$0xff]   ;;  %v4328_v8 = vld [vmem:[%s6408_s1 + $0x800] ss:$16 sps:$4 sm:$0xff]  }
  0x75   :  { %2843 = vmatprep.subr.bf16.mxu1 %v4250_v9  ;;  %v4331_v9 = vld [vmem:[%s6408_s1 + $0xa00] ss:$16 sps:$4 sm:$0xff]  }
  0x77   :  { %2773 = vmatpush2.bf16.msra.mxu0 %v4245_v10  ;;  %v4336_v10 = vld [vmem:[%s6408_s1 + $0x9e4] ss:$16 sps:$4 sm:$0xff]  }
  0x78   :  { %2844 = vmatpush2.bf16.msra.mxu1 %v4248_v11  ;;  %2774 = vmatprep.subr.bf16.mxu0 %v4254_v12  ;;  %v4339_v11 = vld [vmem:[%s6408_s1 + $0xbe4] ss:$16 sps:$4 sm:$0xff]   ;;  %v4334_v12 = vld [vmem:[%s6408_s1 + $0x9e0] ss:$16 sps:$4 sm:$0xff]  }
  0x79   :  { %2845 = vmatprep.subr.bf16.mxu1 %v4257_v13  ;;  %v4337_v13 = vld [vmem:[%s6408_s1 + $0xbe0] ss:$16 sps:$4 sm:$0xff]  }
  0x7b   :  { %2775 = vmatpush2.bf16.msra.mxu0 %v4252_v14  ;;  %v4342_v14 = vld [vmem:[%s6408_s1 + $0x9c4] ss:$16 sps:$4 sm:$0xff]  }
  0x7c   :  { %2846 = vmatpush2.bf16.msra.mxu1 %v4255_v15  ;;  %2776 = vmatprep.subr.bf16.mxu0 %v4260_v16  ;;  %v4345_v15 = vld [vmem:[%s6408_s1 + $0xbc4] ss:$16 sps:$4 sm:$0xff]   ;;  %v4340_v16 = vld [vmem:[%s6408_s1 + $0x9c0] ss:$16 sps:$4 sm:$0xff]  }
  0x7d   :  { %2847 = vmatprep.subr.bf16.mxu1 %v4263_v17  ;;  %v4343_v17 = vld [vmem:[%s6408_s1 + $0xbc0] ss:$16 sps:$4 sm:$0xff]  }
  0x7f   :  { %2777 = vmatpush2.bf16.msra.mxu0 %v4258_v18  ;;  %v4348_v18 = vld [vmem:[%s6408_s1 + $0x9a4] ss:$16 sps:$4 sm:$0xff]  }
  0x80   :  { %2848 = vmatpush2.bf16.msra.mxu1 %v4261_v19  ;;  %2888 = vmatprep.subr.bf16.mxu0 %v4272_v20  ;;  %v4351_v19 = vld [vmem:[%s6408_s1 + $0xba4] ss:$16 sps:$4 sm:$0xff]   ;;  %v4346_v20 = vld [vmem:[%s6408_s1 + $0x9a0] ss:$16 sps:$4 sm:$0xff]  }
  0x81   :  { %2959 = vmatprep.subr.bf16.mxu1 %v4275_v21  ;;  %v4349_v21 = vld [vmem:[%s6408_s1 + $0xba0] ss:$16 sps:$4 sm:$0xff]  }
  0x82   :  { %2779 = vmatmul.mubr.bf16.vlgmr.msra.gmra.mxu0 %v4264_v22  ;;  %v4354_v22 = vld [vmem:[%s6408_s1 + $0x984] ss:$16 sps:$4 sm:$0xff]  }
  0x83   :  { %2850 = vmatmul.mubr.bf16.vlgmr.msra.gmra.mxu1 %v4267_v23  ;;  %2889 = vmatpush1.bf16.msra.mxu0 %v4270_v24  ;;  %v4357_v23 = vld [vmem:[%s6408_s1 + $0xb84] ss:$16 sps:$4 sm:$0xff]   ;;  %v4352_v24 = vld [vmem:[%s6408_s1 + $0x980] ss:$16 sps:$4 sm:$0xff]  }
  0x84   :  { %2960 = vmatpush1.bf16.msra.mxu1 %v4273_v25  ;;  %2890 = vmatprep.subr.bf16.mxu0 %v4278_v26  ;;  %v4355_v25 = vld [vmem:[%s6408_s1 + $0xb80] ss:$16 sps:$4 sm:$0xff]   ;;  %v4360_v26 = vld [vmem:[%s6408_s1 + $0x964] ss:$16 sps:$4 sm:$0xff]  }
  0x85   :  { %2961 = vmatprep.subr.bf16.mxu1 %v4281_v27  ;;  %2788 = vmatprep.mubr.bf16.mxu0 %v4282_v28  ;;  %v4363_v27 = vld [vmem:[%s6408_s1 + $0xb64] ss:$16 sps:$4 sm:$0xff]   ;;  %v4358_v28 = vld [vmem:[%s6408_s1 + $0x960] ss:$16 sps:$4 sm:$0xff]  }
  0x86   :  { %2859 = vmatprep.mubr.bf16.mxu1 %v4291_v29  ;;  %v4361_v29 = vld [vmem:[%s6408_s1 + $0xb60] ss:$16 sps:$4 sm:$0xff]  }
  0x87   :  { %2891 = vmatpush1.bf16.msra.mxu0 %v4276_v30  ;;  %v4366_v30 = vld [vmem:[%s6408_s1 + $0x944] ss:$16 sps:$4 sm:$0xff]  }
  0x88   :  { %2962 = vmatpush1.bf16.msra.mxu1 %v4279_v31  ;;  %2892 = vmatprep.subr.bf16.mxu0 %v4287_v32  ;;  %v4369_v31 = vld [vmem:[%s6408_s1 + $0xb44] ss:$16 sps:$4 sm:$0xff]   ;;  %v4364_v32 = vld [vmem:[%s6408_s1 + $0x940] ss:$16 sps:$4 sm:$0xff]  }
  0x89   :  { %2963 = vmatprep.subr.bf16.mxu1 %v4290_v33  ;;  %v4367_v33 = vld [vmem:[%s6408_s1 + $0xb40] ss:$16 sps:$4 sm:$0xff]  }
  0x8a   :  { %2789 = vmatmul.mubr.bf16.gmra.mxu0 %v4284_v34  ;;  %v4372_v34 = vld [vmem:[%s6408_s1 + $0x924] ss:$16 sps:$4 sm:$0xff]  }
  0x8b   :  { %2860 = vmatmul.mubr.bf16.gmra.mxu1 %v4293_v37  ;;  %2893 = vmatpush1.bf16.msra.mxu0 %v4285_v35  ;;  %v4375_v35 = vld [vmem:[%s6408_s1 + $0xb24] ss:$16 sps:$4 sm:$0xff]   ;;  %v4373_v37 = vld [vmem:[%s6408_s1 + $0xb20] ss:$16 sps:$4 sm:$0xff]  }
  0x8c   :  { %2964 = vmatpush1.bf16.msra.mxu1 %v4288_v36  ;;  %2894 = vmatprep.subr.bf16.mxu0 %v4296_v38  ;;  %v4370_v36 = vld [vmem:[%s6408_s1 + $0x920] ss:$16 sps:$4 sm:$0xff]   ;;  %v4378_v38 = vld [vmem:[%s6408_s1 + $0x904] ss:$16 sps:$4 sm:$0xff]  }
  0x8d   :  { %2965 = vmatprep.subr.bf16.mxu1 %v4299_v39  ;;  %2798 = vmatprep.mubr.bf16.mxu0 %v4300_v43  ;;  %v4381_v39 = vld [vmem:[%s6408_s1 + $0xb04] ss:$16 sps:$4 sm:$0xff]   ;;  %v4376_v43 = vld [vmem:[%s6408_s1 + $0x900] ss:$16 sps:$4 sm:$0xff]  }
  0x8e   :  { %2869 = vmatprep.mubr.bf16.mxu1 %v4309_v44  ;;  %v4379_v44 = vld [vmem:[%s6408_s1 + $0xb00] ss:$16 sps:$4 sm:$0xff]  }
  0x8f   :  { %2895 = vmatpush1.bf16.msra.mxu0 %v4294_v45  ;;  %v4382_v45 = vld [vmem:[%s6409_s0 + $0x20] ss:$48 sps:$4 sm:$0xff]  }
  0x90   :  { %2966 = vmatpush1.bf16.msra.mxu1 %v4297_v46  ;;  %2896 = vmatprep.subr.bf16.mxu0 %v4305_v48  ;;  %v4390_v46 = vld [vmem:[%s6408_s1 + $0xec] ss:$16 sps:$4 sm:$0xff]  }
  0x91   :  { %2967 = vmatprep.subr.bf16.mxu1 %v4308_v50  ;;  %v4393_v48 = vld [vmem:[%s6408_s1 + $0x2ec] ss:$16 sps:$4 sm:$0xff]   ;;  %v4388_v50 = vld [vmem:[%s6408_s1 + $0xe8] ss:$16 sps:$4 sm:$0xff]  }
  0x92   :  { %2799 = vmatmul.mubr.bf16.gmra.mxu0 %v4302_v49  ;;  %v4385_v49 = vld [vmem:[%s6409_s0 + $0x28] ss:$48 sps:$4 sm:$0xff]  }
  0x93   :  { %2870 = vmatmul.mubr.bf16.gmra.mxu1 %v4311_v53  ;;  %2897 = vmatpush1.bf16.msra.mxu0 %v4303_v51  ;;  %v4391_v51 = vld [vmem:[%s6408_s1 + $0x2e8] ss:$16 sps:$4 sm:$0xff]   ;;  %v4399_v53 = vld [vmem:[%s6408_s1 + $0x2cc] ss:$16 sps:$4 sm:$0xff]  }
  0x94   :  { %2968 = vmatpush1.bf16.msra.mxu1 %v4306_v52  ;;  %2898 = vmatprep.subr.bf16.mxu0 %v4314_v56  ;;  %v4396_v52 = vld [vmem:[%s6408_s1 + $0xcc] ss:$16 sps:$4 sm:$0xff]   ;;  %v4394_v56 = vld [vmem:[%s6408_s1 + $0xc8] ss:$16 sps:$4 sm:$0xff]  }
  0x95   :  { %2969 = vmatprep.subr.bf16.mxu1 %v4317_v57  ;;  %2808 = vmatprep.mubr.bf16.mxu0 %v5295_v58  ;;  %v4397_v57 = vld [vmem:[%s6408_s1 + $0x2c8] ss:$16 sps:$4 sm:$0xff]  }
  0x96   :  { %2879 = vmatprep.mubr.bf16.mxu1 %v5297_v59 }
  0x97   :  { %2899 = vmatpush1.bf16.msra.mxu0 %v4312_v60  ;;  %v4405_v60 = vld [vmem:[%s6408_s1 + $0xac] ss:$16 sps:$4 sm:$0xff]  }
  0x98   :  { %2970 = vmatpush1.bf16.msra.mxu1 %v4315_v61  ;;  %2900 = vmatprep.subr.bf16.mxu0 %v4322_v62  ;;  %v4402_v61 = vld [vmem:[%s6409_s0 + $0x80] ss:$48 sps:$4 sm:$0xff]   ;;  %v4408_v62 = vld [vmem:[%s6408_s1 + $0x2ac] ss:$16 sps:$4 sm:$0xff]  }
  0x99   :  { %2971 = vmatprep.subr.bf16.mxu1 %v4325_v63  ;;  %v4403_v63 = vld [vmem:[%s6408_s1 + $0xa8] ss:$16 sps:$4 sm:$0xff]  }
  0x9a   :  { %2809 = vmatmul.mubr.bf16.gmra.mxu0 %v5313_v0 }
  0x9b   :  { %2880 = vmatmul.mubr.bf16.gmra.mxu1 %v5321_v3  ;;  %2901 = vmatpush1.bf16.msra.mxu0 %v4320_v1  ;;  %v4406_v1 = vld [vmem:[%s6408_s1 + $0x2a8] ss:$16 sps:$4 sm:$0xff]  }
  0x9c   :  { %2972 = vmatpush1.bf16.msra.mxu1 %v4323_v2  ;;  %2902 = vmatprep.subr.bf16.mxu0 %v4330_v4  ;;  %v4411_v2 = vld [vmem:[%s6409_s0 + $0x88] ss:$48 sps:$4 sm:$0xff]   ;;  %v4414_v4 = vld [vmem:[%s6408_s1 + $0x8c] ss:$16 sps:$4 sm:$0xff]  }
  0x9d   :  { %2973 = vmatprep.subr.bf16.mxu1 %v4333_v5  ;;  %2920 = vmatprep.mubr.bf16.mxu0 %v4384_v6  ;;  %v4417_v5 = vld [vmem:[%s6408_s1 + $0x28c] ss:$16 sps:$4 sm:$0xff]   ;;  %v4418_v6 = vld [vmem:[%s6409_s0 + $0xe4] ss:$48 sps:$4 sm:$0xff]  }
  0x9e   :  { %2991 = vmatprep.mubr.bf16.mxu1 %v4387_v7  ;;  %v4427_v7 = vld [vmem:[%s6409_s0 + $0xec] ss:$48 sps:$4 sm:$0xff]  }
  0x9f   :  { %2903 = vmatpush1.bf16.msra.mxu0 %v4328_v8  ;;  %v4412_v8 = vld [vmem:[%s6408_s1 + $0x88] ss:$16 sps:$4 sm:$0xff]  }
  0xa0   :  { %2974 = vmatpush1.bf16.msra.mxu1 %v4331_v9  ;;  %2904 = vmatprep.subr.bf16.mxu0 %v4336_v10  ;;  %v4415_v9 = vld [vmem:[%s6408_s1 + $0x288] ss:$16 sps:$4 sm:$0xff]   ;;  %v4423_v10 = vld [vmem:[%s6408_s1 + $0x6c] ss:$16 sps:$4 sm:$0xff]  }
  0xa1   :  { %2975 = vmatprep.subr.bf16.mxu1 %v4339_v11  ;;  %v4420_v11 = vld [vmem:[%s6409_s0 + $0xe0] ss:$48 sps:$4 sm:$0xff]  }
  0xa3   :  { %2905 = vmatpush2.bf16.msra.mxu0 %v4334_v12  ;;  %v4426_v12 = vld [vmem:[%s6408_s1 + $0x26c] ss:$16 sps:$4 sm:$0xff]  }
  0xa4   :  { %2976 = vmatpush2.bf16.msra.mxu1 %v4337_v13  ;;  %2906 = vmatprep.subr.bf16.mxu0 %v4342_v14  ;;  %v4421_v13 = vld [vmem:[%s6408_s1 + $0x68] ss:$16 sps:$4 sm:$0xff]  }
  0xa5   :  { %2977 = vmatprep.subr.bf16.mxu1 %v4345_v15  ;;  %v4429_v14 = vld [vmem:[%s6409_s0 + $0xe8] ss:$48 sps:$4 sm:$0xff]   ;;  %v54_v15 = vld [vmem:[%s6409_s0 + $0x140] sm:$0xff] }
  0xa7   :  { %2907 = vmatpush2.bf16.msra.mxu0 %v4340_v16  ;;  %v55_v16 = vld [vmem:[%s6409_s0 + $0x148] sm:$0xff] }
  0xa8   :  { %2978 = vmatpush2.bf16.msra.mxu1 %v4343_v17  ;;  %2908 = vmatprep.subr.bf16.mxu0 %v4348_v18  ;;  %v4424_v17 = vld [vmem:[%s6408_s1 + $0x268] ss:$16 sps:$4 sm:$0xff]   ;;  %v4432_v18 = vld [vmem:[%s6408_s1 + $0x4c] ss:$16 sps:$4 sm:$0xff]  }
  0xa9   :  { %2979 = vmatprep.subr.bf16.mxu1 %v4351_v19  ;;  %v4435_v19 = vld [vmem:[%s6408_s1 + $0x24c] ss:$16 sps:$4 sm:$0xff]  }
  0xab   :  { %2909 = vmatpush2.bf16.msra.mxu0 %v4346_v20  ;;  %v5541_v20 = vcombine.high %v54_v15, %v54_v15 }
  0xac   :  { %2980 = vmatpush2.bf16.msra.mxu1 %v4349_v21  ;;  %2910 = vmatprep.subr.bf16.mxu0 %v4354_v22  ;;  %v5543_v21 = vcombine.high %v55_v16, %v55_v16  ;;  %v4430_v22 = vld [vmem:[%s6408_s1 + $0x48] ss:$16 sps:$4 sm:$0xff]  }
  0xad   :  { %2981 = vmatprep.subr.bf16.mxu1 %v4357_v23  ;;  %v4433_v23 = vld [vmem:[%s6408_s1 + $0x248] ss:$16 sps:$4 sm:$0xff]  }
  0xaf   :  { %2911 = vmatpush2.bf16.msra.mxu0 %v4352_v24  ;;  %v4440_v24 = vld [vmem:[%s6408_s1 + $0x2c] ss:$16 sps:$4 sm:$0xff]  }
  0xb0   :  { %2982 = vmatpush2.bf16.msra.mxu1 %v4355_v25  ;;  %2912 = vmatprep.subr.bf16.mxu0 %v4360_v26  ;;  %v4443_v25 = vld [vmem:[%s6408_s1 + $0x22c] ss:$16 sps:$4 sm:$0xff]   ;;  %v5559_v26 = vcombine.low %v54_v15, %v54_v15 }
  0xb1   :  { %2983 = vmatprep.subr.bf16.mxu1 %v4363_v27  ;;  %v4438_v27 = vld [vmem:[%s6408_s1 + $0x28] ss:$16 sps:$4 sm:$0xff]  }
  0xb3   :  { %2913 = vmatpush2.bf16.msra.mxu0 %v4358_v28  ;;  %v5564_v28 = vcombine.low %v55_v16, %v55_v16  ;;  %v4502_v16 = vld [vmem:[%s6408_s1 + $0x4ec] ss:$16 sps:$4 sm:$0xff]  }
  0xb4   :  { %2984 = vmatpush2.bf16.msra.mxu1 %v4361_v29  ;;  %2914 = vmatprep.subr.bf16.mxu0 %v4366_v30  ;;  %v4441_v29 = vld [vmem:[%s6408_s1 + $0x228] ss:$16 sps:$4 sm:$0xff]   ;;  %v4448_v30 = vld [vmem:[%s6408_s1 + $0xc] ss:$16 sps:$4 sm:$0xff]  }
  0xb5   :  { %2985 = vmatprep.subr.bf16.mxu1 %v4369_v31  ;;  %v4451_v31 = vld [vmem:[%s6408_s1 + $0x20c] ss:$16 sps:$4 sm:$0xff]  }
  0xb7   :  { %2915 = vmatpush2.bf16.msra.mxu0 %v4364_v32  ;;  %v4446_v32 = vld [vmem:[%s6408_s1 + $0x8] ss:$16 sps:$4 sm:$0xff]  }
  0xb8   :  { %2986 = vmatpush2.bf16.msra.mxu1 %v4367_v33  ;;  %2916 = vmatprep.subr.bf16.mxu0 %v4372_v34  ;;  %v4449_v33 = vld [vmem:[%s6408_s1 + $0x208] ss:$16 sps:$4 sm:$0xff]   ;;  %v4454_v34 = vld [vmem:[%s6408_s1 + $0x1ec] ss:$16 sps:$4 sm:$0xff]  }
  0xb9   :  { %2987 = vmatprep.subr.bf16.mxu1 %v4375_v35  ;;  %v4457_v35 = vld [vmem:[%s6408_s1 + $0x3ec] ss:$16 sps:$4 sm:$0xff]  }
  0xbb   :  { %2917 = vmatpush2.bf16.msra.mxu0 %v4370_v36  ;;  %v4692_v36 = vld [vmem:[%s6409_s0 + $0x4] ss:$48 sps:$4 sm:$0xff]  }
  0xbc   :  { %2988 = vmatpush2.bf16.msra.mxu1 %v4373_v37  ;;  %2918 = vmatprep.subr.bf16.mxu0 %v4378_v38  ;;  %v4693_v37 = vld [vmem:[%s6409_s0 + $0xc] ss:$48 sps:$4 sm:$0xff]   ;;  %v4452_v38 = vld [vmem:[%s6408_s1 + $0x1e8] ss:$16 sps:$4 sm:$0xff]  }
  0xbd   :  { %2989 = vmatprep.subr.bf16.mxu1 %v4381_v39  ;;  %v4455_v39 = vld [vmem:[%s6408_s1 + $0x3e8] ss:$16 sps:$4 sm:$0xff]  }
  0xbf   :  { %2919 = vmatpush2.bf16.msra.mxu0 %v4376_v43  ;;  %v4460_v43 = vld [vmem:[%s6408_s1 + $0x1cc] ss:$16 sps:$4 sm:$0xff]  }
  0xc0   :  { %2990 = vmatpush2.bf16.msra.mxu1 %v4379_v44  ;;  %3030 = vmatprep.subr.bf16.mxu0 %v4390_v46  ;;  %v4463_v44 = vld [vmem:[%s6408_s1 + $0x3cc] ss:$16 sps:$4 sm:$0xff]   ;;  %v4461_v46 = vld [vmem:[%s6408_s1 + $0x3c8] ss:$16 sps:$4 sm:$0xff]  }
  0xc1   :  { %3101 = vmatprep.subr.bf16.mxu1 %v4393_v48  ;;  %v4466_v48 = vld [vmem:[%s6408_s1 + $0x1ac] ss:$16 sps:$4 sm:$0xff]  }
  0xc2   :  { %2921 = vmatmul.mubr.bf16.vlgmr.msra.gmra.mxu0 %v4382_v45  ;;  %v4458_v45 = vld [vmem:[%s6408_s1 + $0x1c8] ss:$16 sps:$4 sm:$0xff]  }
  0xc3   :  { %2992 = vmatmul.mubr.bf16.vlgmr.msra.gmra.mxu1 %v4385_v49  ;;  %3031 = vmatpush1.bf16.msra.mxu0 %v4388_v50  ;;  %v4469_v49 = vld [vmem:[%s6408_s1 + $0x3ac] ss:$16 sps:$4 sm:$0xff]   ;;  %v4464_v50 = vld [vmem:[%s6408_s1 + $0x1a8] ss:$16 sps:$4 sm:$0xff]  }
  0xc4   :  { %3102 = vmatpush1.bf16.msra.mxu1 %v4391_v51  ;;  %3032 = vmatprep.subr.bf16.mxu0 %v4396_v52  ;;  %v4467_v51 = vld [vmem:[%s6408_s1 + $0x3a8] ss:$16 sps:$4 sm:$0xff]   ;;  %v4472_v52 = vld [vmem:[%s6408_s1 + $0x18c] ss:$16 sps:$4 sm:$0xff]  }
  0xc5   :  { %3103 = vmatprep.subr.bf16.mxu1 %v4399_v53  ;;  %2930 = vmatprep.mubr.bf16.mxu0 %v4400_v54  ;;  %v4475_v53 = vld [vmem:[%s6408_s1 + $0x38c] ss:$16 sps:$4 sm:$0xff]   ;;  %v4470_v54 = vld [vmem:[%s6408_s1 + $0x188] ss:$16 sps:$4 sm:$0xff]  }
  0xc6   :  { %3001 = vmatprep.mubr.bf16.mxu1 %v4409_v55  ;;  %v4473_v55 = vld [vmem:[%s6408_s1 + $0x388] ss:$16 sps:$4 sm:$0xff]  }
  0xc7   :  { %3033 = vmatpush1.bf16.msra.mxu0 %v4394_v56  ;;  %v4478_v56 = vld [vmem:[%s6408_s1 + $0x16c] ss:$16 sps:$4 sm:$0xff]  }
  0xc8   :  { %3104 = vmatpush1.bf16.msra.mxu1 %v4397_v57  ;;  %3034 = vmatprep.subr.bf16.mxu0 %v4405_v60  ;;  %v4481_v57 = vld [vmem:[%s6408_s1 + $0x36c] ss:$16 sps:$4 sm:$0xff]   ;;  %v4476_v60 = vld [vmem:[%s6408_s1 + $0x168] ss:$16 sps:$4 sm:$0xff]  }
  0xc9   :  { %3105 = vmatprep.subr.bf16.mxu1 %v4408_v62  ;;  %v4484_v62 = vld [vmem:[%s6408_s1 + $0x14c] ss:$16 sps:$4 sm:$0xff]  }
  0xca   :  { %2931 = vmatmul.mubr.bf16.gmra.mxu0 %v4402_v61  ;;  %v4479_v61 = vld [vmem:[%s6408_s1 + $0x368] ss:$16 sps:$4 sm:$0xff]  }
  0xcb   :  { %3002 = vmatmul.mubr.bf16.gmra.mxu1 %v4411_v2  ;;  %3035 = vmatpush1.bf16.msra.mxu0 %v4403_v63  ;;  %v4487_v63 = vld [vmem:[%s6408_s1 + $0x34c] ss:$16 sps:$4 sm:$0xff]   ;;  %v4485_v2 = vld [vmem:[%s6408_s1 + $0x348] ss:$16 sps:$4 sm:$0xff]  }
  0xcc   :  { %3106 = vmatpush1.bf16.msra.mxu1 %v4406_v1  ;;  %3036 = vmatprep.subr.bf16.mxu0 %v4414_v4  ;;  %v4482_v1 = vld [vmem:[%s6408_s1 + $0x148] ss:$16 sps:$4 sm:$0xff]   ;;  %v4490_v4 = vld [vmem:[%s6408_s1 + $0x12c] ss:$16 sps:$4 sm:$0xff]  }
  0xcd   :  { %3107 = vmatprep.subr.bf16.mxu1 %v4417_v5  ;;  %2940 = vmatprep.mubr.bf16.mxu0 %v4418_v6  ;;  %v442_v5 = vlaneseq  ;;  %v4493_v6 = vld [vmem:[%s6408_s1 + $0x32c] ss:$16 sps:$4 sm:$0xff]  }
  0xce   :  { %3011 = vmatprep.mubr.bf16.mxu1 %v4427_v7  ;;  %v4488_v7 = vld [vmem:[%s6408_s1 + $0x128] ss:$16 sps:$4 sm:$0xff]  }
  0xcf   :  { %3037 = vmatpush1.bf16.msra.mxu0 %v4412_v8  ;;  %v4491_v8 = vld [vmem:[%s6408_s1 + $0x328] ss:$16 sps:$4 sm:$0xff]  }
  0xd0   :  { %3108 = vmatpush1.bf16.msra.mxu1 %v4415_v9  ;;  %3038 = vmatprep.subr.bf16.mxu0 %v4423_v10  ;;  %v4496_v9 = vld [vmem:[%s6408_s1 + $0x10c] ss:$16 sps:$4 sm:$0xff]   ;;  %v5676_v10 = vshrl.u32 %v442_v5, 7  ;;  %v4521_v5 = vld [vmem:[%s6408_s1 + $0x688] ss:$16 sps:$4 sm:$0xff]  }
  0xd1   :  { %3109 = vmatprep.subr.bf16.mxu1 %v4426_v12  ;;  %v4494_v12 = vld [vmem:[%s6408_s1 + $0x108] ss:$16 sps:$4 sm:$0xff]  }
  0xd2   :  { %2941 = vmatmul.mubr.bf16.gmra.mxu0 %v4420_v11  ;;  %v4499_v11 = vld [vmem:[%s6408_s1 + $0x30c] ss:$16 sps:$4 sm:$0xff]   ;;  %v444_v15 = vsub.s32 0, %v5676_v10 }
  0xd3   :  { %3012 = vmatmul.mubr.bf16.gmra.mxu1 %v4429_v14  ;;  %3039 = vmatpush1.bf16.msra.mxu0 %v4421_v13  ;;  %v4497_v13 = vld [vmem:[%s6408_s1 + $0x308] ss:$16 sps:$4 sm:$0xff]   ;;  %v440_v14 = vld [vmem:[%s6410_s2] sm:$0xf] }
  0xd4   :  { %3110 = vmatpush1.bf16.msra.mxu1 %v4424_v17  ;;  %3040 = vmatprep.subr.bf16.mxu0 %v4432_v18  ;;  %v4505_v17 = vld [vmem:[%s6408_s1 + $0x6ec] ss:$16 sps:$4 sm:$0xff]   ;;  %v448_v18 = vsub.s32 1, %v5676_v10 }
  0xd5   :  { %3111 = vmatprep.subr.bf16.mxu1 %v4435_v19  ;;  %2950 = vmatprep.mubr.bf16.mxu0 %v5541_v20  ;;  %v4500_v19 = vld [vmem:[%s6408_s1 + $0x4e8] ss:$16 sps:$4 sm:$0xff]  }
  0xd6   :  { %3021 = vmatprep.mubr.bf16.mxu1 %v5543_v21 }
  0xd7   :  { %3041 = vmatpush1.bf16.msra.mxu0 %v4430_v22  ;;  %v5701_v22 = vrot.slane %v440_v14, %v444_v15  ;;  %v4524_v15 = vld [vmem:[%s6408_s1 + $0x468] ss:$16 sps:$4 sm:$0xff]  }
  0xd8   :  { %3112 = vmatpush1.bf16.msra.mxu1 %v4433_v23  ;;  %3042 = vmatprep.subr.bf16.mxu0 %v4440_v24  ;;  %v4503_v23 = vld [vmem:[%s6408_s1 + $0x6e8] ss:$16 sps:$4 sm:$0xff]   ;;  %v4508_v24 = vld [vmem:[%s6408_s1 + $0x4cc] ss:$16 sps:$4 sm:$0xff]  }
  0xd9   :  { %3113 = vmatprep.subr.bf16.mxu1 %v4443_v25  ;;  %v4511_v25 = vld [vmem:[%s6408_s1 + $0x6cc] ss:$16 sps:$4 sm:$0xff]  }
  0xda   :  { %2951 = vmatmul.mubr.bf16.gmra.mxu0 %v5559_v26 }
  0xdb   :  { %3022 = vmatmul.mubr.bf16.gmra.mxu1 %v5564_v28  ;;  %3043 = vmatpush1.bf16.msra.mxu0 %v4438_v27  ;;  %v5712_v27 = vrot.slane %v440_v14, %v448_v18  ;;  %v4701_v14 = vld [vmem:[%s6409_s0 + $0xcc] ss:$48 sps:$4 sm:$0xff]   ;;  %v4527_v18 = vld [vmem:[%s6408_s1 + $0x668] ss:$16 sps:$4 sm:$0xff]  }
  0xdc   :  { %3114 = vmatpush1.bf16.msra.mxu1 %v4441_v29  ;;  %3044 = vmatprep.subr.bf16.mxu0 %v4448_v30 }
  0xdd   :  { %3115 = vmatprep.subr.bf16.mxu1 %v4451_v31  ;;  %3062 = vmatprep.mubr.bf16.mxu0 %v4692_v36  ;;  %v4694_v31 = vld [vmem:[%s6409_s0] ss:$48 sps:$4 sm:$0xff]   ;;  %v4514_v36 = vld [vmem:[%s6408_s1 + $0x4ac] ss:$16 sps:$4 sm:$0xff]  }
  0xde   :  { %3133 = vmatprep.mubr.bf16.mxu1 %v4693_v37 }
  0xdf   :  { %3045 = vmatpush1.bf16.msra.mxu0 %v4446_v32  ;;  %v4695_v32 = vld [vmem:[%s6409_s0 + $0x8] ss:$48 sps:$4 sm:$0xff]  }
  0xe0   :  { %3116 = vmatpush1.bf16.msra.mxu1 %v4449_v33  ;;  %3046 = vmatprep.subr.bf16.mxu0 %v4454_v34  ;;  %v4506_v33 = vld [vmem:[%s6408_s1 + $0x4c8] ss:$16 sps:$4 sm:$0xff]  }
  0xe1   :  { %3117 = vmatprep.subr.bf16.mxu1 %v4457_v35  ;;  %v4509_v35 = vld [vmem:[%s6408_s1 + $0x6c8] ss:$16 sps:$4 sm:$0xff]  }
  0xe3   :  { %3047 = vmatpush2.bf16.msra.mxu0 %v4452_v38 }
  0xe4   :  { %3118 = vmatpush2.bf16.msra.mxu1 %v4455_v39  ;;  %3048 = vmatprep.subr.bf16.mxu0 %v4460_v43  ;;  %v4517_v39 = vld [vmem:[%s6408_s1 + $0x6ac] ss:$16 sps:$4 sm:$0xff]  }
  0xe5   :  { %3119 = vmatprep.subr.bf16.mxu1 %v4463_v44 }
  0xe7   :  { %3049 = vmatpush2.bf16.msra.mxu0 %v4458_v45  ;;  %v4696_v45 = vld [vmem:[%s6409_s0 + $0x64] ss:$48 sps:$4 sm:$0xff]  }
  0xe8   :  { %3120 = vmatpush2.bf16.msra.mxu1 %v4461_v46  ;;  %3050 = vmatprep.subr.bf16.mxu0 %v4466_v48  ;;  %v4697_v46 = vld [vmem:[%s6409_s0 + $0x6c] ss:$48 sps:$4 sm:$0xff]  }
  0xe9   :  { %3121 = vmatprep.subr.bf16.mxu1 %v4469_v49 }
  0xeb   :  { %3051 = vmatpush2.bf16.msra.mxu0 %v4464_v50  ;;  %v4512_v50 = vld [vmem:[%s6408_s1 + $0x4a8] ss:$16 sps:$4 sm:$0xff]  }
  0xec   :  { %3122 = vmatpush2.bf16.msra.mxu1 %v4467_v51  ;;  %3052 = vmatprep.subr.bf16.mxu0 %v4472_v52 }
  0xed   :  { %3123 = vmatprep.subr.bf16.mxu1 %v4475_v53  ;;  %v4515_v53 = vld [vmem:[%s6408_s1 + $0x6a8] ss:$16 sps:$4 sm:$0xff]  }
  0xef   :  { %3053 = vmatpush2.bf16.msra.mxu0 %v4470_v54  ;;  %v4520_v54 = vld [vmem:[%s6408_s1 + $0x48c] ss:$16 sps:$4 sm:$0xff]  }
  0xf0   :  { %3124 = vmatpush2.bf16.msra.mxu1 %v4473_v55  ;;  %3054 = vmatprep.subr.bf16.mxu0 %v4478_v56  ;;  %v4523_v56 = vld [vmem:[%s6408_s1 + $0x68c] ss:$16 sps:$4 sm:$0xff]  }
  0xf1   :  { %3125 = vmatprep.subr.bf16.mxu1 %v4481_v57 }
  0xf3   :  { %3055 = vmatpush2.bf16.msra.mxu0 %v4476_v60 }
  0xf4   :  { %3126 = vmatpush2.bf16.msra.mxu1 %v4479_v61  ;;  %3056 = vmatprep.subr.bf16.mxu0 %v4484_v62  ;;  %v4518_v62 = vld [vmem:[%s6408_s1 + $0x488] ss:$16 sps:$4 sm:$0xff]  }
  0xf5   :  { %3127 = vmatprep.subr.bf16.mxu1 %v4487_v63 }
  0xf7   :  { %3057 = vmatpush2.bf16.msra.mxu0 %v4482_v1  ;;  %v4698_v1 = vld [vmem:[%s6409_s0 + $0x60] ss:$48 sps:$4 sm:$0xff]  }
  0xf8   :  { %3128 = vmatpush2.bf16.msra.mxu1 %v4485_v2  ;;  %3058 = vmatprep.subr.bf16.mxu0 %v4490_v4  ;;  %v4699_v2 = vld [vmem:[%s6409_s0 + $0x68] ss:$48 sps:$4 sm:$0xff]  }
  0xf9   :  { %3129 = vmatprep.subr.bf16.mxu1 %v4493_v6  ;;  %v4526_v6 = vld [vmem:[%s6408_s1 + $0x46c] ss:$16 sps:$4 sm:$0xff]  }
  0xfb   :  { %3059 = vmatpush2.bf16.msra.mxu0 %v4488_v7 }
  0xfc   :  { %3130 = vmatpush2.bf16.msra.mxu1 %v4491_v8  ;;  %3060 = vmatprep.subr.bf16.mxu0 %v4496_v9  ;;  %v4529_v8 = vld [vmem:[%s6408_s1 + $0x66c] ss:$16 sps:$4 sm:$0xff]  }
  0xfd   :  { %3131 = vmatprep.subr.bf16.mxu1 %v4499_v11 }
  0xff   :  { %3061 = vmatpush2.bf16.msra.mxu0 %v4494_v12 }
 0x100   :  { %3132 = vmatpush2.bf16.msra.mxu1 %v4497_v13  ;;  %3172 = vmatprep.subr.bf16.mxu0 %v4502_v16  ;;  %v4700_v13 = vld [vmem:[%s6409_s0 + $0xc4] ss:$48 sps:$4 sm:$0xff]  }
 0x101   :  { %3243 = vmatprep.subr.bf16.mxu1 %v4505_v17 }
 0x102   :  { %v2638_v29 = vpop.f32.mrf.mxu0  ;;  %3063 = vmatmul.mubr.bf16.vlgmr.msra.gmra.mxu0 %v4694_v31 }
 0x103   :  { %v2709_v30 = vpop.f32.mrf.mxu1  ;;  %3134 = vmatmul.mubr.bf16.vlgmr.msra.gmra.mxu1 %v4695_v32  ;;  %v2639_v34 = vadd.f32 %v2638_v29, %v5701_v22  ;;  %3173 = vmatpush1.bf16.msra.mxu0 %v4500_v19  ;;  %v4532_v19 = vld [vmem:[%s6408_s1 + $0x44c] ss:$16 sps:$4 sm:$0xff]  }
 0x104   :  { %3244 = vmatpush1.bf16.msra.mxu1 %v4503_v23  ;;  %v2640_v37 = vpop.f32.mrf.mxu0  ;;  %3174 = vmatprep.subr.bf16.mxu0 %v4508_v24 }
 0x105   :  { %v2711_v38 = vpop.f32.mrf.mxu1  ;;  %3245 = vmatprep.subr.bf16.mxu1 %v4511_v25  ;;  %v5733_v43 = vadd.f32 %v2709_v30, %v2639_v34  ;;  %v2641_v44 = vadd.f32 %v2640_v37, %v5712_v27  ;;  %3072 = vmatprep.mubr.bf16.mxu0 %v4696_v45  ;;  %v4535_v25 = vld [vmem:[%s6408_s1 + $0x64c] ss:$16 sps:$4 sm:$0xff]   ;;  %v4703_v37 = vld [vmem:[%s6409_s0 + $0xc8] ss:$48 sps:$4 sm:$0xff]  }
 0x106   :  { %3143 = vmatprep.mubr.bf16.mxu1 %v4697_v46  ;;  %v2642_v48 = vpop.f32.mrf.mxu0  ;;  %v4541_v46 = vld [vmem:[%s6408_s1 + $0x62c] ss:$16 sps:$4 sm:$0xff]  }
 0x107   :  { %v2713_v49 = vpop.f32.mrf.mxu1  ;;  %v5745_v51 = vadd.f32 %v2711_v38, %v2641_v44  ;;  %v2643_v52 = vadd.f32 %v2642_v48, %v5701_v22  ;;  %3175 = vmatpush1.bf16.msra.mxu0 %v4506_v33  ;;  %v4530_v33 = vld [vmem:[%s6408_s1 + $0x448] ss:$16 sps:$4 sm:$0xff]  }
 0x108   :  { %3246 = vmatpush1.bf16.msra.mxu1 %v4509_v35  ;;  %v2644_v55 = vpop.f32.mrf.mxu0  ;;  %3176 = vmatprep.subr.bf16.mxu0 %v4514_v36  ;;  %v4702_v36 = vld [vmem:[%s6409_s0 + $0xc0] ss:$48 sps:$4 sm:$0xff]   ;;  %v4533_v38 = vld [vmem:[%s6408_s1 + $0x648] ss:$16 sps:$4 sm:$0xff]  }
 0x109   :  { %3247 = vmatprep.subr.bf16.mxu1 %v4517_v39  ;;  %v5757_v57 = vadd.f32 %v2713_v49, %v2643_v52  ;;  %v2645_v60 = vadd.f32 %v2644_v55, %v5712_v27  ;;  %v2715_v61 = vpop.f32.mrf.mxu1  ;;  %v4538_v39 = vld [vmem:[%s6408_s1 + $0x42c] ss:$16 sps:$4 sm:$0xff]  }
 0x10a   :  { %v2648_v63 = vpop.f32.mrf.mxu0  ;;  %3073 = vmatmul.mubr.bf16.gmra.mxu0 %v4698_v1 }
 0x10b   :  { %3144 = vmatmul.mubr.bf16.gmra.mxu1 %v4699_v2  ;;  %v5769_v4 = vadd.f32 %v2715_v61, %v2645_v60  ;;  %3177 = vmatpush1.bf16.msra.mxu0 %v4512_v50  ;;  %v2649_v7 = vadd.f32 %v2648_v63, %v5701_v22  ;;  %v2719_v12 = vpop.f32.mrf.mxu1  ;;  %v4544_v60 = vld [vmem:[%s6408_s1 + $0x40c] ss:$16 sps:$4 sm:$0xff]  }
 0x10c   :  { %3248 = vmatpush1.bf16.msra.mxu1 %v4515_v53  ;;  %3178 = vmatprep.subr.bf16.mxu0 %v4520_v54  ;;  %v2650_v9 = vpop.f32.mrf.mxu0  ;;  %v4536_v53 = vld [vmem:[%s6408_s1 + $0x428] ss:$16 sps:$4 sm:$0xff]   ;;  %v4547_v61 = vld [vmem:[%s6408_s1 + $0x60c] ss:$16 sps:$4 sm:$0xff]  }
 0x10d   :  { %3249 = vmatprep.subr.bf16.mxu1 %v4523_v56  ;;  %v2651_v11 = vadd.f32 %v2650_v9, %v5712_v27  ;;  %3082 = vmatprep.mubr.bf16.mxu0 %v4700_v13  ;;  %v5791_v16 = vadd.f32 %v2719_v12, %v2649_v7  ;;  %v2721_v24 = vpop.f32.mrf.mxu1  ;;  %v4539_v56 = vld [vmem:[%s6408_s1 + $0x628] ss:$16 sps:$4 sm:$0xff]  }
 0x10e   :  { %3153 = vmatprep.mubr.bf16.mxu1 %v4701_v14  ;;  %v2652_v17 = vpop.f32.mrf.mxu0  ;;  %v4542_v7 = vld [vmem:[%s6408_s1 + $0x408] ss:$16 sps:$4 sm:$0xff]  }
 0x10f   :  { %3179 = vmatpush1.bf16.msra.mxu0 %v4518_v62  ;;  %v2653_v23 = vadd.f32 %v2652_v17, %v5701_v22  ;;  %v5803_v29 = vadd.f32 %v2721_v24, %v2651_v11  ;;  %v2723_v32 = vpop.f32.mrf.mxu1  ;;  %v4705_v17 = vld [vmem:[%s6409_s0 + $0x1c] ss:$48 sps:$4 sm:$0xff]  }
 0x110   :  { %3250 = vmatpush1.bf16.msra.mxu1 %v4521_v5  ;;  %3180 = vmatprep.subr.bf16.mxu0 %v4526_v6  ;;  %v2654_v30 = vpop.f32.mrf.mxu0 }
 0x111   :  { %3251 = vmatprep.subr.bf16.mxu1 %v4529_v8  ;;  %v2655_v31 = vadd.f32 %v2654_v30, %v5712_v27  ;;  %v5809_v34 = vadd.f32 %v2723_v32, %v2653_v23  ;;  %v2725_v45 = vpop.f32.mrf.mxu1  ;;  %v4545_v8 = vld [vmem:[%s6408_s1 + $0x608] ss:$16 sps:$4 sm:$0xff]   ;;  %v4559_v30 = vld [vmem:[%s6408_s1 + $0x7cc] ss:$16 sps:$4 sm:$0xff]  }
 0x112   :  { %v2658_v35 = vpop.f32.mrf.mxu0  ;;  %3083 = vmatmul.mubr.bf16.gmra.mxu0 %v4702_v36  ;;  %v4551_v23 = vld [vmem:[%s6408_s1 + $0x7e8] ss:$16 sps:$4 sm:$0xff]  }
 0x113   :  { %3154 = vmatmul.mubr.bf16.gmra.mxu1 %v4703_v37  ;;  %3181 = vmatpush1.bf16.msra.mxu0 %v4524_v15  ;;  %v2659_v44 = vadd.f32 %v2658_v35, %v5701_v22  ;;  %v5827_v48 = vadd.f32 %v2725_v45, %v2655_v31  ;;  %v2729_v52 = vpop.f32.mrf.mxu1  ;;  %v4554_v35 = vld [vmem:[%s6408_s1 + $0x5c8] ss:$16 sps:$4 sm:$0xff]  }
 0x114   :  { %3252 = vmatpush1.bf16.msra.mxu1 %v4527_v18  ;;  %3182 = vmatprep.subr.bf16.mxu0 %v4532_v19  ;;  %v2660_v49 = vpop.f32.mrf.mxu0  ;;  %v4557_v36 = vld [vmem:[%s6408_s1 + $0x7c8] ss:$16 sps:$4 sm:$0xff]  }
 0x115   :  { %3253 = vmatprep.subr.bf16.mxu1 %v4535_v25  ;;  %v2661_v50 = vadd.f32 %v2660_v49, %v5712_v27  ;;  %3092 = vmatprep.mubr.bf16.mxu0 %v5061_v40  ;;  %v5835_v54 = vadd.f32 %v2729_v52, %v2659_v44  ;;  %v4556_v25 = vld [vmem:[%s6408_s1 + $0x5cc] ss:$16 sps:$4 sm:$0xff]   ;;  %v4560_v44 = vld [vmem:[%s6408_s1 + $0x5a8] ss:$16 sps:$4 sm:$0xff]  }
 0x116   :  { %3163 = vmatprep.mubr.bf16.mxu1 %v5063_v41  ;;  %v2662_v55 = vpop.f32.mrf.mxu0  ;;  %v2731_v41 = vpop.f32.mrf.mxu1  ;;  %v4563_v45 = vld [vmem:[%s6408_s1 + $0x7a8] ss:$16 sps:$4 sm:$0xff]   ;;  %v4571_v49 = vld [vmem:[%s6408_s1 + $0x78c] ss:$16 sps:$4 sm:$0xff]  }
 0x117   :  { %3183 = vmatpush1.bf16.msra.mxu0 %v4530_v33  ;;  %v2663_v40 = vadd.f32 %v2662_v55, %v5701_v22  ;;  %v5847_v62 = vadd.f32 %v2731_v41, %v2661_v50  ;;  %v4566_v50 = vld [vmem:[%s6408_s1 + $0x588] ss:$16 sps:$4 sm:$0xff]   ;;  %v4577_v55 = vld [vmem:[%s6408_s1 + $0x76c] ss:$16 sps:$4 sm:$0xff]  }
 0x118   :  { %3254 = vmatpush1.bf16.msra.mxu1 %v4533_v38  ;;  %3184 = vmatprep.subr.bf16.mxu0 %v4538_v39  ;;  %v2664_v63 = vpop.f32.mrf.mxu0  ;;  %v2733_v2 = vpop.f32.mrf.mxu1  ;;  %v4562_v38 = vld [vmem:[%s6408_s1 + $0x5ac] ss:$16 sps:$4 sm:$0xff]   ;;  %v4569_v52 = vld [vmem:[%s6408_s1 + $0x788] ss:$16 sps:$4 sm:$0xff]  }
 0x119   :  { %3255 = vmatprep.subr.bf16.mxu1 %v4541_v46  ;;  %v2665_v1 = vadd.f32 %v2664_v63, %v5712_v27  ;;  %v5850_v5 = vadd.f32 %v2733_v2, %v2663_v40  ;;  %v4565_v39 = vld [vmem:[%s6408_s1 + $0x7ac] ss:$16 sps:$4 sm:$0xff]   ;;  %v4581_v63 = vld [vmem:[%s6408_s1 + $0x748] ss:$16 sps:$4 sm:$0xff]  }
 0x11a   :  { %v2668_v6 = vpop.f32.mrf.mxu0  ;;  %3093 = vmatmul.mubr.bf16.gmra.mxu0 %v5065_v42  ;;  %v2735_v11 = vpop.f32.mrf.mxu1  ;;  %v4550_v42 = vld [vmem:[%s6408_s1 + $0x5ec] ss:$16 sps:$4 sm:$0xff]  }
 0x11b   :  { %3164 = vmatmul.mubr.bf16.gmra.mxu1 %v5081_v47  ;;  %3185 = vmatpush1.bf16.msra.mxu0 %v4536_v53  ;;  %v2669_v9 = vadd.f32 %v2668_v6, %v5701_v22  ;;  %v4553_v47 = vld [vmem:[%s6408_s1 + $0x7ec] ss:$16 sps:$4 sm:$0xff]   ;;  %v5867_v12 = vadd.f32 %v2735_v11, %v2665_v1  ;;  %v4704_v22 = vld [vmem:[%s6409_s0 + $0x14] ss:$48 sps:$4 sm:$0xff]   ;;  %v4584_v6 = vld [vmem:[%s6408_s1 + $0x528] ss:$16 sps:$4 sm:$0xff]  }
 0x11c   :  { %3256 = vmatpush1.bf16.msra.mxu1 %v4539_v56  ;;  %3186 = vmatprep.subr.bf16.mxu0 %v4544_v60  ;;  %v2670_v13 = vpop.f32.mrf.mxu0  ;;  %v2739_v15 = vpop.f32.mrf.mxu1  ;;  %v4568_v46 = vld [vmem:[%s6408_s1 + $0x58c] ss:$16 sps:$4 sm:$0xff]   ;;  %v4572_v56 = vld [vmem:[%s6408_s1 + $0x568] ss:$16 sps:$4 sm:$0xff]  }
 0x11d   :  { %3257 = vmatprep.subr.bf16.mxu1 %v4547_v61  ;;  %v2671_v14 = vadd.f32 %v2670_v13, %v5712_v27  ;;  %3204 = vmatprep.mubr.bf16.mxu0 %v4704_v22  ;;  %v5876_v18 = vadd.f32 %v2739_v15, %v2669_v9  ;;  %v4548_v27 = vld [vmem:[%s6408_s1 + $0x5e8] ss:$16 sps:$4 sm:$0xff]   ;;  %v4574_v53 = vld [vmem:[%s6408_s1 + $0x56c] ss:$16 sps:$4 sm:$0xff]  }
 0x11e   :  { %3275 = vmatprep.mubr.bf16.mxu1 %v4705_v17  ;;  %v2672_v19 = vpop.f32.mrf.mxu0  ;;  %v2741_v24 = vpop.f32.mrf.mxu1  ;;  %v4575_v60 = vld [vmem:[%s6408_s1 + $0x768] ss:$16 sps:$4 sm:$0xff]   ;;  %v4580_v40 = vld [vmem:[%s6408_s1 + $0x54c] ss:$16 sps:$4 sm:$0xff]  }
 0x11f   :  { %3187 = vmatpush1.bf16.msra.mxu0 %v4542_v7  ;;  %v5890_v31 = vadd.f32 %v2741_v24, %v2671_v14  ;;  %v4583_v41 = vld [vmem:[%s6408_s1 + $0x74c] ss:$16 sps:$4 sm:$0xff]   ;;  %v4578_v61 = vld [vmem:[%s6408_s1 + $0x548] ss:$16 sps:$4 sm:$0xff]  }
 0x120   :  { %3258 = vmatpush1.bf16.msra.mxu1 %v4545_v8  ;;  %3188 = vmatprep.subr.bf16.mxu0 %v4550_v42  ;;  %v2673_v32 = vpop.f32.mrf.mxu0  ;;  %v2743_v33 = vpop.f32.mrf.mxu1  ;;  %v4586_v1 = vld [vmem:[%s6408_s1 + $0x52c] ss:$16 sps:$4 sm:$0xff]   ;;  %v4587_v7 = vld [vmem:[%s6408_s1 + $0x728] ss:$16 sps:$4 sm:$0xff]  }
 0x121   :  { %3259 = vmatprep.subr.bf16.mxu1 %v4553_v47  ;;  %v4589_v2 = vld [vmem:[%s6408_s1 + $0x72c] ss:$16 sps:$4 sm:$0xff]   ;;  %v4590_v11 = vld [vmem:[%s6408_s1 + $0x508] ss:$16 sps:$4 sm:$0xff]  }
 0x122   :  { %v2744_v37 = vpop.f32.mrf.mxu1  ;;  %v4592_v8 = vld [vmem:[%s6408_s1 + $0x50c] ss:$16 sps:$4 sm:$0xff]   ;;  %v4593_v42 = vld [vmem:[%s6408_s1 + $0x708] ss:$16 sps:$4 sm:$0xff]  }
 0x123   :  { %3189 = vmatpush2.bf16.msra.mxu0 %v4548_v27  ;;  %v4595_v9 = vld [vmem:[%s6408_s1 + $0x70c] ss:$16 sps:$4 sm:$0xff]   ;;  %v4596_v14 = vld [vmem:[%s6408_s1 + $0x8e8] ss:$16 sps:$4 sm:$0xff]  }
 0x124   :  { %3260 = vmatpush2.bf16.msra.mxu1 %v4551_v23  ;;  %3190 = vmatprep.subr.bf16.mxu0 %v4556_v25  ;;  %v4598_v47 = vld [vmem:[%s6408_s1 + $0x8ec] ss:$16 sps:$4 sm:$0xff]   ;;  %v4599_v15 = vld [vmem:[%s6408_s1 + $0xae8] ss:$16 sps:$4 sm:$0xff]   ;;  %v4706_v23 = vld [vmem:[%s6409_s0 + $0x10] ss:$48 sps:$4 sm:$0xff]  }
 0x125   :  { %3261 = vmatprep.subr.bf16.mxu1 %v4559_v30  ;;  %v4601_v13 = vld [vmem:[%s6408_s1 + $0xaec] ss:$16 sps:$4 sm:$0xff]   ;;  %v4707_v24 = vld [vmem:[%s6409_s0 + $0x18] ss:$48 sps:$4 sm:$0xff]  }
 0x126   :  { %v4604_v22 = vld [vmem:[%s6408_s1 + $0x8cc] ss:$16 sps:$4 sm:$0xff]   ;;  %v4602_v30 = vld [vmem:[%s6408_s1 + $0x8c8] ss:$16 sps:$4 sm:$0xff]  }
 0x127   :  { %3191 = vmatpush2.bf16.msra.mxu0 %v4554_v35  ;;  %v4607_v17 = vld [vmem:[%s6408_s1 + $0xacc] ss:$16 sps:$4 sm:$0xff]   ;;  %v4605_v32 = vld [vmem:[%s6408_s1 + $0xac8] ss:$16 sps:$4 sm:$0xff]  }
 0x128   :  { %3262 = vmatpush2.bf16.msra.mxu1 %v4557_v36  ;;  %3192 = vmatprep.subr.bf16.mxu0 %v4562_v38  ;;  %v4613_v36 = vld [vmem:[%s6408_s1 + $0xaac] ss:$16 sps:$4 sm:$0xff]   ;;  %v4708_v38 = vld [vmem:[%s6409_s0 + $0x74] ss:$48 sps:$4 sm:$0xff]  }
 0x129   :  { %3263 = vmatprep.subr.bf16.mxu1 %v4565_v39  ;;  %v4709_v39 = vld [vmem:[%s6409_s0 + $0x7c] ss:$48 sps:$4 sm:$0xff]  }
 0x12b   :  { %3193 = vmatpush2.bf16.msra.mxu0 %v4560_v44 }
 0x12c   :  { %3264 = vmatpush2.bf16.msra.mxu1 %v4563_v45  ;;  %3194 = vmatprep.subr.bf16.mxu0 %v4568_v46 }
 0x12d   :  { %3265 = vmatprep.subr.bf16.mxu1 %v4571_v49  ;;  %v4608_v49 = vld [vmem:[%s6408_s1 + $0x8a8] ss:$16 sps:$4 sm:$0xff]  }
 0x12f   :  { %3195 = vmatpush2.bf16.msra.mxu0 %v4566_v50  ;;  %v4611_v50 = vld [vmem:[%s6408_s1 + $0xaa8] ss:$16 sps:$4 sm:$0xff]  }
 0x130   :  { %3266 = vmatpush2.bf16.msra.mxu1 %v4569_v52  ;;  %3196 = vmatprep.subr.bf16.mxu0 %v4574_v53 }
 0x131   :  { %3267 = vmatprep.subr.bf16.mxu1 %v4577_v55  ;;  %v4619_v55 = vld [vmem:[%s6408_s1 + $0xa8c] ss:$16 sps:$4 sm:$0xff]  }
 0x133   :  { %3197 = vmatpush2.bf16.msra.mxu0 %v4572_v56 }
 0x134   :  { %3268 = vmatpush2.bf16.msra.mxu1 %v4575_v60  ;;  %3198 = vmatprep.subr.bf16.mxu0 %v4580_v40  ;;  %v4710_v40 = vld [vmem:[%s6409_s0 + $0x70] ss:$48 sps:$4 sm:$0xff]  }
 0x135   :  { %3269 = vmatprep.subr.bf16.mxu1 %v4583_v41 }
 0x137   :  { %3199 = vmatpush2.bf16.msra.mxu0 %v4578_v61  ;;  %v4711_v61 = vld [vmem:[%s6409_s0 + $0x78] ss:$48 sps:$4 sm:$0xff]  }
 0x138   :  { %3270 = vmatpush2.bf16.msra.mxu1 %v4581_v63  ;;  %3200 = vmatprep.subr.bf16.mxu0 %v4586_v1  ;;  %v4614_v1 = vld [vmem:[%s6408_s1 + $0x888] ss:$16 sps:$4 sm:$0xff]  }
 0x139   :  { %3271 = vmatprep.subr.bf16.mxu1 %v4589_v2  ;;  %v4617_v2 = vld [vmem:[%s6408_s1 + $0xa88] ss:$16 sps:$4 sm:$0xff]  }
 0x13b   :  { %3201 = vmatpush2.bf16.msra.mxu0 %v4584_v6 }
 0x13c   :  { %3272 = vmatpush2.bf16.msra.mxu1 %v4587_v7  ;;  %3202 = vmatprep.subr.bf16.mxu0 %v4592_v8  ;;  %v4625_v8 = vld [vmem:[%s6408_s1 + $0xa6c] ss:$16 sps:$4 sm:$0xff]  }
 0x13d   :  { %3273 = vmatprep.subr.bf16.mxu1 %v4595_v9 }
 0x13f   :  { %3203 = vmatpush2.bf16.msra.mxu0 %v4590_v11  ;;  %v4712_v11 = vld [vmem:[%s6409_s0 + $0xd4] ss:$48 sps:$4 sm:$0xff]  }
 0x140   :  { %3274 = vmatpush2.bf16.msra.mxu1 %v4593_v42  ;;  %3314 = vmatprep.subr.bf16.mxu0 %v4598_v47  ;;  %v4713_v42 = vld [vmem:[%s6409_s0 + $0xdc] ss:$48 sps:$4 sm:$0xff]  }
 0x141   :  { %3385 = vmatprep.subr.bf16.mxu1 %v4601_v13 }
 0x142   :  { %v2780_v19 = vpop.f32.mrf.mxu0  ;;  %3205 = vmatmul.mubr.bf16.vlgmr.msra.gmra.mxu0 %v4706_v23 }
 0x143   :  { %v2851_v27 = vpop.f32.mrf.mxu1  ;;  %3276 = vmatmul.mubr.bf16.vlgmr.msra.gmra.mxu1 %v4707_v24  ;;  %v2781_v25 = vadd.f32 %v2780_v19, %v5733_v43  ;;  %3315 = vmatpush1.bf16.msra.mxu0 %v4596_v14  ;;  %v4610_v43 = vld [vmem:[%s6408_s1 + $0x8ac] ss:$16 sps:$4 sm:$0xff]  }
 0x144   :  { %3386 = vmatpush1.bf16.msra.mxu1 %v4599_v15  ;;  %v6001_v33 = vpop.f32.mrf.mxu0  ;;  %3316 = vmatprep.subr.bf16.mxu0 %v4604_v22  ;;  %v4620_v15 = vld [vmem:[%s6408_s1 + $0x868] ss:$16 sps:$4 sm:$0xff]  }
 0x145   :  { %v6003_v35 = vpop.f32.mrf.mxu1  ;;  %3387 = vmatprep.subr.bf16.mxu1 %v4607_v17  ;;  %v6011_v37 = vadd.f32 %v2851_v27, %v2781_v25  ;;  %3214 = vmatprep.mubr.bf16.mxu0 %v4708_v38  ;;  %v4623_v22 = vld [vmem:[%s6408_s1 + $0xa68] ss:$16 sps:$4 sm:$0xff]   ;;  %v4631_v27 = vld [vmem:[%s6408_s1 + $0xa4c] ss:$16 sps:$4 sm:$0xff]   ;;  %v4714_v25 = vld [vmem:[%s6409_s0 + $0xd0] ss:$48 sps:$4 sm:$0xff]  }
 0x146   :  { %3285 = vmatprep.mubr.bf16.mxu1 %v4709_v39  ;;  %v2784_v44 = vpop.f32.mrf.mxu0  ;;  %v4629_v38 = vld [vmem:[%s6408_s1 + $0xa48] ss:$16 sps:$4 sm:$0xff]  }
 0x147   :  { %v2855_v45 = vpop.f32.mrf.mxu1  ;;  %v2785_v46 = vadd.f32 %v2784_v44, %v5757_v57  ;;  %3317 = vmatpush1.bf16.msra.mxu0 %v4602_v30  ;;  %v4616_v57 = vld [vmem:[%s6408_s1 + $0x88c] ss:$16 sps:$4 sm:$0xff]  }
 0x148   :  { %3388 = vmatpush1.bf16.msra.mxu1 %v4605_v32  ;;  %v6026_v52 = vpop.f32.mrf.mxu0  ;;  %3318 = vmatprep.subr.bf16.mxu0 %v4610_v43  ;;  %v4715_v32 = vld [vmem:[%s6409_s0 + $0xd8] ss:$48 sps:$4 sm:$0xff]  }
 0x149   :  { %v6028_v53 = vpop.f32.mrf.mxu1  ;;  %3389 = vmatprep.subr.bf16.mxu1 %v4613_v36  ;;  %v6036_v56 = vadd.f32 %v2855_v45, %v2785_v46  ;;  %v4626_v36 = vld [vmem:[%s6408_s1 + $0x848] ss:$16 sps:$4 sm:$0xff]   ;;  %v4637_v45 = vld [vmem:[%s6408_s1 + $0xa2c] ss:$16 sps:$4 sm:$0xff]  }
 0x14a   :  { %v2790_v60 = vpop.f32.mrf.mxu0  ;;  %3215 = vmatmul.mubr.bf16.gmra.mxu0 %v4710_v40 }
 0x14b   :  { %v2861_v41 = vpop.f32.mrf.mxu1  ;;  %3286 = vmatmul.mubr.bf16.gmra.mxu1 %v4711_v61  ;;  %v2791_v63 = vadd.f32 %v2790_v60, %v5791_v16  ;;  %3319 = vmatpush1.bf16.msra.mxu0 %v4608_v49  ;;  %v4622_v16 = vld [vmem:[%s6408_s1 + $0x86c] ss:$16 sps:$4 sm:$0xff]   ;;  %v4635_v60 = vld [vmem:[%s6408_s1 + $0xa28] ss:$16 sps:$4 sm:$0xff]  }
 0x14c   :  { %3390 = vmatpush1.bf16.msra.mxu1 %v4611_v50  ;;  %v6051_v6 = vpop.f32.mrf.mxu0  ;;  %3320 = vmatprep.subr.bf16.mxu0 %v4616_v57 }
 0x14d   :  { %v6053_v7 = vpop.f32.mrf.mxu1  ;;  %3391 = vmatprep.subr.bf16.mxu1 %v4619_v55  ;;  %v6061_v9 = vadd.f32 %v2861_v41, %v2791_v63  ;;  %3224 = vmatprep.mubr.bf16.mxu0 %v4712_v11  ;;  %v4632_v55 = vld [vmem:[%s6408_s1 + $0x828] ss:$16 sps:$4 sm:$0xff]  }
 0x14e   :  { %3295 = vmatprep.mubr.bf16.mxu1 %v4713_v42  ;;  %v2794_v47 = vpop.f32.mrf.mxu0  ;;  %v4716_v42 = vld [vmem:[%s6409_s0 + $0x24] ss:$48 sps:$4 sm:$0xff]  }
 0x14f   :  { %v2865_v13 = vpop.f32.mrf.mxu1  ;;  %v2795_v14 = vadd.f32 %v2794_v47, %v5809_v34  ;;  %3321 = vmatpush1.bf16.msra.mxu0 %v4614_v1  ;;  %v4628_v34 = vld [vmem:[%s6408_s1 + $0x84c] ss:$16 sps:$4 sm:$0xff]  }
 0x150   :  { %3392 = vmatpush1.bf16.msra.mxu1 %v4617_v2  ;;  %v6076_v17 = vpop.f32.mrf.mxu0  ;;  %3322 = vmatprep.subr.bf16.mxu0 %v4622_v16  ;;  %v4638_v2 = vld [vmem:[%s6408_s1 + $0x808] ss:$16 sps:$4 sm:$0xff]   ;;  %v4717_v47 = vld [vmem:[%s6409_s0 + $0x2c] ss:$48 sps:$4 sm:$0xff]  }
 0x151   :  { %v6078_v19 = vpop.f32.mrf.mxu1  ;;  %3393 = vmatprep.subr.bf16.mxu1 %v4625_v8  ;;  %v6086_v23 = vadd.f32 %v2865_v13, %v2795_v14  ;;  %v4641_v16 = vld [vmem:[%s6408_s1 + $0xa08] ss:$16 sps:$4 sm:$0xff]  }
 0x152   :  { %v2800_v24 = vpop.f32.mrf.mxu0  ;;  %3225 = vmatmul.mubr.bf16.gmra.mxu0 %v4714_v25 }
 0x153   :  { %v2871_v30 = vpop.f32.mrf.mxu1  ;;  %3296 = vmatmul.mubr.bf16.gmra.mxu1 %v4715_v32  ;;  %v2801_v43 = vadd.f32 %v2800_v24, %v5835_v54  ;;  %3323 = vmatpush1.bf16.msra.mxu0 %v4620_v15  ;;  %v4634_v54 = vld [vmem:[%s6408_s1 + $0x82c] ss:$16 sps:$4 sm:$0xff]   ;;  %v4644_v15 = vld [vmem:[%s6408_s1 + $0x9e8] ss:$16 sps:$4 sm:$0xff]  }
 0x154   :  { %3394 = vmatpush1.bf16.msra.mxu1 %v4623_v22  ;;  %v6101_v39 = vpop.f32.mrf.mxu0  ;;  %3324 = vmatprep.subr.bf16.mxu0 %v4628_v34  ;;  %v4647_v22 = vld [vmem:[%s6408_s1 + $0xbe8] ss:$16 sps:$4 sm:$0xff]   ;;  %v4652_v34 = vld [vmem:[%s6408_s1 + $0x9cc] ss:$16 sps:$4 sm:$0xff]  }
 0x155   :  { %v6103_v44 = vpop.f32.mrf.mxu1  ;;  %3395 = vmatprep.subr.bf16.mxu1 %v4631_v27  ;;  %v6111_v46 = vadd.f32 %v2871_v30, %v2801_v43  ;;  %3234 = vmatprep.mubr.bf16.mxu0 %v5295_v58  ;;  %v4640_v58 = vld [vmem:[%s6408_s1 + $0x80c] ss:$16 sps:$4 sm:$0xff]   ;;  %v4650_v30 = vld [vmem:[%s6408_s1 + $0x9c8] ss:$16 sps:$4 sm:$0xff]  }
 0x156   :  { %3305 = vmatprep.mubr.bf16.mxu1 %v5297_v59  ;;  %v2804_v49 = vpop.f32.mrf.mxu0  ;;  %v4643_v59 = vld [vmem:[%s6408_s1 + $0xa0c] ss:$16 sps:$4 sm:$0xff]   ;;  %v4653_v32 = vld [vmem:[%s6408_s1 + $0xbc8] ss:$16 sps:$4 sm:$0xff]  }
 0x157   :  { %v2875_v50 = vpop.f32.mrf.mxu1  ;;  %v2805_v57 = vadd.f32 %v2804_v49, %v5850_v5  ;;  %3325 = vmatpush1.bf16.msra.mxu0 %v4626_v36  ;;  %v4655_v27 = vld [vmem:[%s6408_s1 + $0xbcc] ss:$16 sps:$4 sm:$0xff]  }
 0x158   :  { %3396 = vmatpush1.bf16.msra.mxu1 %v4629_v38  ;;  %v6122_v40 = vpop.f32.mrf.mxu0  ;;  %3326 = vmatprep.subr.bf16.mxu0 %v4634_v54  ;;  %v4658_v43 = vld [vmem:[%s6408_s1 + $0x9ac] ss:$16 sps:$4 sm:$0xff]   ;;  %v4656_v38 = vld [vmem:[%s6408_s1 + $0x9a8] ss:$16 sps:$4 sm:$0xff]  }
 0x159   :  { %v6124_v41 = vpop.f32.mrf.mxu1  ;;  %3397 = vmatprep.subr.bf16.mxu1 %v4637_v45  ;;  %v6132_v5 = vadd.f32 %v2875_v50, %v2805_v57  ;;  %v4661_v36 = vld [vmem:[%s6408_s1 + $0xbac] ss:$16 sps:$4 sm:$0xff]   ;;  %v4659_v54 = vld [vmem:[%s6408_s1 + $0xba8] ss:$16 sps:$4 sm:$0xff]  }
 0x15a   :  { %v2810_v61 = vpop.f32.mrf.mxu0  ;;  %3235 = vmatmul.mubr.bf16.gmra.mxu0 %v5313_v0  ;;  %v4646_v0 = vld [vmem:[%s6408_s1 + $0x9ec] ss:$16 sps:$4 sm:$0xff]   ;;  %v4662_v50 = vld [vmem:[%s6408_s1 + $0x988] ss:$16 sps:$4 sm:$0xff]  }
 0x15b   :  { %v2881_v63 = vpop.f32.mrf.mxu1  ;;  %3306 = vmatmul.mubr.bf16.gmra.mxu1 %v5321_v3  ;;  %v2811_v1 = vadd.f32 %v2810_v61, %v5876_v18  ;;  %3327 = vmatpush1.bf16.msra.mxu0 %v4632_v55  ;;  %v4649_v3 = vld [vmem:[%s6408_s1 + $0xbec] ss:$16 sps:$4 sm:$0xff]   ;;  %v4665_v57 = vld [vmem:[%s6408_s1 + $0xb88] ss:$16 sps:$4 sm:$0xff]  }
 0x15c   :  { %3398 = vmatpush1.bf16.msra.mxu1 %v4635_v60  ;;  %v6143_v8 = vpop.f32.mrf.mxu0  ;;  %3328 = vmatprep.subr.bf16.mxu0 %v4640_v58  ;;  %v4664_v45 = vld [vmem:[%s6408_s1 + $0x98c] ss:$16 sps:$4 sm:$0xff]   ;;  %v4668_v58 = vld [vmem:[%s6408_s1 + $0x968] ss:$16 sps:$4 sm:$0xff]  }
 0x15d   :  { %v6145_v11 = vpop.f32.mrf.mxu1  ;;  %3399 = vmatprep.subr.bf16.mxu1 %v4643_v59  ;;  %v6153_v18 = vadd.f32 %v2881_v63, %v2811_v1  ;;  %3346 = vmatprep.mubr.bf16.mxu0 %v4716_v42  ;;  %v4667_v49 = vld [vmem:[%s6408_s1 + $0xb8c] ss:$16 sps:$4 sm:$0xff]   ;;  %v4671_v59 = vld [vmem:[%s6408_s1 + $0xb68] ss:$16 sps:$4 sm:$0xff]  }
 0x15e   :  { %3417 = vmatprep.mubr.bf16.mxu1 %v4717_v47  ;;  %v2814_v13 = vpop.f32.mrf.mxu0  ;;  %v4670_v55 = vld [vmem:[%s6408_s1 + $0x96c] ss:$16 sps:$4 sm:$0xff]   ;;  %v4674_v1 = vld [vmem:[%s6408_s1 + $0x948] ss:$16 sps:$4 sm:$0xff]  }
 0x15f   :  { %v2885_v14 = vpop.f32.mrf.mxu1  ;;  %3329 = vmatpush1.bf16.msra.mxu0 %v4638_v2  ;;  %v4673_v60 = vld [vmem:[%s6408_s1 + $0xb6c] ss:$16 sps:$4 sm:$0xff]   ;;  %v4677_v2 = vld [vmem:[%s6408_s1 + $0xb48] ss:$16 sps:$4 sm:$0xff]  }
 0x160   :  { %3400 = vmatpush1.bf16.msra.mxu1 %v4641_v16  ;;  %3330 = vmatprep.subr.bf16.mxu0 %v4646_v0  ;;  %v2815_v24 = vpop.f32.mrf.mxu0  ;;  %v4676_v61 = vld [vmem:[%s6408_s1 + $0x94c] ss:$16 sps:$4 sm:$0xff]   ;;  %v4683_v42 = vld [vmem:[%s6408_s1 + $0xb28] ss:$16 sps:$4 sm:$0xff]  }
 0x161   :  { %3401 = vmatprep.subr.bf16.mxu1 %v4649_v3  ;;  %v2886_v25 = vpop.f32.mrf.mxu1  ;;  %v4679_v63 = vld [vmem:[%s6408_s1 + $0xb4c] ss:$16 sps:$4 sm:$0xff]   ;;  %v4680_v3 = vld [vmem:[%s6408_s1 + $0x928] ss:$16 sps:$4 sm:$0xff]   ;;  %v4718_v24 = vld [vmem:[%s6409_s0 + $0x20] ss:$48 sps:$4 sm:$0xff]  }
 0x162   :  { %v4682_v16 = vld [vmem:[%s6408_s1 + $0x92c] ss:$16 sps:$4 sm:$0xff]   ;;  %v4686_v14 = vld [vmem:[%s6408_s1 + $0x908] ss:$16 sps:$4 sm:$0xff]  }
 0x163   :  { %3331 = vmatpush2.bf16.msra.mxu0 %v4644_v15  ;;  %v4685_v0 = vld [vmem:[%s6408_s1 + $0xb2c] ss:$16 sps:$4 sm:$0xff]   ;;  %v4689_v15 = vld [vmem:[%s6408_s1 + $0xb08] ss:$16 sps:$4 sm:$0xff]  }
 0x164   :  { %3402 = vmatpush2.bf16.msra.mxu1 %v4647_v22  ;;  %3332 = vmatprep.subr.bf16.mxu0 %v4652_v34  ;;  %v4688_v47 = vld [vmem:[%s6408_s1 + $0x90c] ss:$16 sps:$4 sm:$0xff]   ;;  %v2783_v22 = vadd.f32 %v6001_v33, %v5745_v51  ;;  %v4719_v25 = vld [vmem:[%s6409_s0 + $0x28] ss:$48 sps:$4 sm:$0xff]   ;;  %v4720_v33 = vld [vmem:[%s6409_s0 + $0x84] ss:$48 sps:$4 sm:$0xff]  }
 0x165   :  { %3403 = vmatprep.subr.bf16.mxu1 %v4655_v27  ;;  %v4691_v13 = vld [vmem:[%s6408_s1 + $0xb0c] ss:$16 sps:$4 sm:$0xff]  }
 0x167   :  { %3333 = vmatpush2.bf16.msra.mxu0 %v4650_v30  ;;  %v2854_v30 = vadd.f32 %v6003_v35, %v2783_v22  ;;  %v2793_v35 = vadd.f32 %v6051_v6, %v5803_v29  ;;  %v4722_v29 = vld [vmem:[%s6409_s0 + $0x80] ss:$48 sps:$4 sm:$0xff]  }
 0x168   :  { %3404 = vmatpush2.bf16.msra.mxu1 %v4653_v32  ;;  %3334 = vmatprep.subr.bf16.mxu0 %v4658_v43  ;;  %v2787_v32 = vadd.f32 %v6026_v52, %v5769_v4  ;;  %v4721_v43 = vld [vmem:[%s6409_s0 + $0x8c] ss:$48 sps:$4 sm:$0xff]  }
 0x169   :  { %3405 = vmatprep.subr.bf16.mxu1 %v4661_v36 }
 0x16b   :  { %3335 = vmatpush2.bf16.msra.mxu0 %v4656_v38 }
 0x16c   :  { %3406 = vmatpush2.bf16.msra.mxu1 %v4659_v54  ;;  %3336 = vmatprep.subr.bf16.mxu0 %v4664_v45 }
 0x16d   :  { %3407 = vmatprep.subr.bf16.mxu1 %v4667_v49 }
 0x16f   :  { %3337 = vmatpush2.bf16.msra.mxu0 %v4662_v50 }
 0x170   :  { %3408 = vmatpush2.bf16.msra.mxu1 %v4665_v57  ;;  %3338 = vmatprep.subr.bf16.mxu0 %v4670_v55 }
 0x171   :  { %3409 = vmatprep.subr.bf16.mxu1 %v4673_v60 }
 0x173   :  { %3339 = vmatpush2.bf16.msra.mxu0 %v4668_v58 }
 0x174   :  { %3410 = vmatpush2.bf16.msra.mxu1 %v4671_v59  ;;  %3340 = vmatprep.subr.bf16.mxu0 %v4676_v61 }
 0x175   :  { %3411 = vmatprep.subr.bf16.mxu1 %v4679_v63  ;;  %v2864_v63 = vadd.f32 %v6053_v7, %v2793_v35  ;;  %v4725_v7 = vld [vmem:[%s6409_s0 + $0xec] ss:$48 sps:$4 sm:$0xff]  }
 0x177   :  { %3341 = vmatpush2.bf16.msra.mxu0 %v4674_v1  ;;  %v2797_v1 = vadd.f32 %v6076_v17, %v5827_v48  ;;  %v4724_v48 = vld [vmem:[%s6409_s0 + $0xe4] ss:$48 sps:$4 sm:$0xff]  }
 0x178   :  { %3412 = vmatpush2.bf16.msra.mxu1 %v4677_v2  ;;  %3342 = vmatprep.subr.bf16.mxu0 %v4682_v16 }
 0x179   :  { %3413 = vmatprep.subr.bf16.mxu1 %v4685_v0 }
 0x17b   :  { %3343 = vmatpush2.bf16.msra.mxu0 %v4680_v3 }
 0x17c   :  { %3414 = vmatpush2.bf16.msra.mxu1 %v4683_v42  ;;  %3344 = vmatprep.subr.bf16.mxu0 %v4688_v47 }
 0x17d   :  { %3415 = vmatprep.subr.bf16.mxu1 %v4691_v13 }
 0x17f   :  { %3345 = vmatpush2.bf16.msra.mxu0 %v4686_v14  ;;  %v2803_v14 = vadd.f32 %v6101_v39, %v5847_v62  ;;  %v2807_v39 = vadd.f32 %v6122_v40, %v5867_v12 }
 0x180   :  { %3416 = vmatpush2.bf16.msra.mxu1 %v4689_v15 }
 0x181   :  { %v2874_v62 = vadd.f32 %v6103_v44, %v2803_v14  ;;  %v456_v14 = vsub.s32 3, %v5676_v10 }
 0x182   :  { %v2922_v34 = vpop.f32.mrf.mxu0  ;;  %3347 = vmatmul.mubr.bf16.vlgmr.msra.gmra.mxu0 %v4718_v24 }
 0x183   :  { %v2993_v27 = vpop.f32.mrf.mxu1  ;;  %3418 = vmatmul.mubr.bf16.vlgmr.msra.gmra.mxu1 %v4719_v25  ;;  %v2923_v51 = vadd.f32 %v2922_v34, %v6011_v37  ;;  %3356 = vmatprep.mubr.bf16.mxu0 %v4720_v33  ;;  %v2858_v37 = vadd.f32 %v6028_v53, %v2787_v32  ;;  %v4723_v53 = vld [vmem:[%s6409_s0 + $0x88] ss:$48 sps:$4 sm:$0xff]   ;;  %v2868_v34 = vadd.f32 %v6078_v19, %v2797_v1 }
 0x184   :  { %3427 = vmatprep.mubr.bf16.mxu1 %v4721_v43  ;;  %v2924_v36 = vpop.f32.mrf.mxu0 }
 0x185   :  { %v2995_v38 = vpop.f32.mrf.mxu1  ;;  %v2994_v54 = vadd.f32 %v2993_v27, %v2923_v51  ;;  %v2925_v45 = vadd.f32 %v2924_v36, %v2854_v30 }
 0x186   :  { %v2926_v4 = vpop.f32.mrf.mxu0 }
 0x187   :  { %v2997_v52 = vpop.f32.mrf.mxu1  ;;  %v2996_v49 = vadd.f32 %v2995_v38, %v2925_v45  ;;  %v2927_v50 = vadd.f32 %v2926_v4, %v6036_v56  ;;  %v3456_v60 = vmax.f32 %v2994_v54, 0.0  ;;  %v4727_v38 = vld [vmem:[%s6409_s0 + $0xe8] ss:$48 sps:$4 sm:$0xff]  }
 0x188   :  { %v2928_v57 = vpop.f32.mrf.mxu0 }
 0x189   :  { %v2999_v55 = vpop.f32.mrf.mxu1  ;;  %v3457_v58 = vmax.f32 %v2996_v49, 0.0  ;;  %v2998_v59 = vadd.f32 %v2997_v52, %v2927_v50  ;;  %v2929_v61 = vadd.f32 %v2928_v57, %v2858_v37  ;;  %v2878_v50 = vadd.f32 %v6124_v41, %v2807_v39 }
 0x18a   :  { %v2932_v2 = vpop.f32.mrf.mxu0  ;;  %3357 = vmatmul.mubr.bf16.gmra.mxu0 %v4722_v29 }
 0x18b   :  { %3428 = vmatmul.mubr.bf16.gmra.mxu1 %v4723_v53  ;;  %v3003_v56 = vpop.f32.mrf.mxu1  ;;  %v4036_v6 = vpack.c.bf16 %v3457_v58, %v3456_v60  ;;  %v3000_v16 = vadd.f32 %v2999_v55, %v2929_v61  ;;  %v2933_v0 = vadd.f32 %v2932_v2, %v6061_v9  ;;  %3366 = vmatprep.mubr.bf16.mxu0 %v4724_v48  ;;  %v3460_v42 = vmax.f32 %v2998_v59, 0.0 }
 0x18c   :  { %3437 = vmatprep.mubr.bf16.mxu1 %v4725_v7  ;;  %v2934_v17 = vpop.f32.mrf.mxu0 }
 0x18d   :  { %v3005_v3 = vpop.f32.mrf.mxu1  ;;  %3572 = vst [vmem:[%s6411_s3] sm:$0xff] %v4036_v6  ;;  %v3461_v47 = vmax.f32 %v3000_v16, 0.0  ;;  %v2935_v13 = vadd.f32 %v2934_v17, %v2864_v63  ;;  %v3004_v9 = vadd.f32 %v3003_v56, %v2933_v0 }
 0x18e   :  { %v2936_v15 = vpop.f32.mrf.mxu0 }
 0x18f   :  { %v3007_v22 = vpop.f32.mrf.mxu1  ;;  %v4038_v27 = vpack.c.bf16 %v3461_v47, %v3460_v42  ;;  %v2937_v24 = vadd.f32 %v2936_v15, %v6086_v23  ;;  %v3006_v25 = vadd.f32 %v3005_v3, %v2935_v13  ;;  %v3464_v51 = vmax.f32 %v3004_v9, 0.0  ;;  %v4726_v23 = vld [vmem:[%s6409_s0 + $0xe0] ss:$48 sps:$4 sm:$0xff]  }
 0x190   :  { %v2938_v30 = vpop.f32.mrf.mxu0  ;;  %v452_v9 = vsub.s32 2, %v5676_v10  ;;  %v4728_v15 = vld [vmem:[%s6410_s2] sm:$0xf] }
 0x191   :  { %v3009_v32 = vpop.f32.mrf.mxu1  ;;  %3574 = vst [vmem:[%s6411_s3 + $0x10] sm:$0xff] %v4038_v27  ;;  %v3465_v33 = vmax.f32 %v3006_v25, 0.0  ;;  %v2939_v43 = vadd.f32 %v2938_v30, %v2868_v34  ;;  %v3008_v36 = vadd.f32 %v3007_v22, %v2937_v24  ;;  %v457_v34 = vrot.slane %v4728_v15, %v456_v14 }
 0x192   :  { %v2942_v19 = vpop.f32.mrf.mxu0  ;;  %3367 = vmatmul.mubr.bf16.gmra.mxu0 %v4726_v23  ;;  %v453_v22 = vrot.slane %v4728_v15, %v452_v9 }
 0x193   :  { %3438 = vmatmul.mubr.bf16.gmra.mxu1 %v4727_v38  ;;  %v3013_v54 = vpop.f32.mrf.mxu1  ;;  %v4040_v45 = vpack.c.bf16 %v3465_v33, %v3464_v51  ;;  %v2943_v35 = vadd.f32 %v2942_v19, %v6111_v46  ;;  %v3010_v4 = vadd.f32 %v3009_v32, %v2939_v43  ;;  %3376 = vmatprep.mubr.bf16.mxu0 %v5541_v20  ;;  %v3468_v40 = vmax.f32 %v3008_v36, 0.0 }
 0x194   :  { %3447 = vmatprep.mubr.bf16.mxu1 %v5543_v21  ;;  %v2944_v12 = vpop.f32.mrf.mxu0  ;;  %v2813_v46 = vadd.f32 %v6143_v8, %v5890_v31 }
 0x195   :  { %v3015_v44 = vpop.f32.mrf.mxu1  ;;  %3576 = vst [vmem:[%s6411_s3 + $0x20] sm:$0xff] %v4040_v45  ;;  %v3469_v52 = vmax.f32 %v3010_v4, 0.0  ;;  %v2945_v37 = vadd.f32 %v2944_v12, %v2874_v62  ;;  %v3014_v49 = vadd.f32 %v3013_v54, %v2943_v35 }
 0x196   :  { %v2946_v57 = vpop.f32.mrf.mxu0  ;;  %v2884_v8 = vadd.f32 %v6145_v11, %v2813_v46 }
 0x197   :  { %v3017_v55 = vpop.f32.mrf.mxu1  ;;  %v4042_v20 = vpack.c.bf16 %v3469_v52, %v3468_v40  ;;  %v2947_v21 = vadd.f32 %v2946_v57, %v6132_v5  ;;  %v3016_v60 = vadd.f32 %v3015_v44, %v2945_v37  ;;  %v3472_v61 = vmax.f32 %v3014_v49, 0.0 }
 0x198   :  { %v2948_v58 = vpop.f32.mrf.mxu0 }
 0x199   :  { %v3019_v59 = vpop.f32.mrf.mxu1  ;;  %3578 = vst [vmem:[%s6411_s3 + $0x30] sm:$0xff] %v4042_v20  ;;  %v3473_v63 = vmax.f32 %v3016_v60, 0.0  ;;  %v2949_v1 = vadd.f32 %v2948_v58, %v2878_v50  ;;  %v3018_v2 = vadd.f32 %v3017_v55, %v2947_v21 }
 0x19a   :  { %v2952_v41 = vpop.f32.mrf.mxu0  ;;  %3377 = vmatmul.mubr.bf16.gmra.mxu0 %v5559_v26 }
 0x19b   :  { %3448 = vmatmul.mubr.bf16.gmra.mxu1 %v5564_v28  ;;  %v3023_v31 = vpop.f32.mrf.mxu1  ;;  %v4044_v5 = vpack.c.bf16 %v3473_v63, %v3472_v61  ;;  %v2953_v29 = vadd.f32 %v2952_v41, %v6153_v18  ;;  %v3020_v53 = vadd.f32 %v3019_v59, %v2949_v1  ;;  %v3476_v16 = vmax.f32 %v3018_v2, 0.0 }
 0x19c   :  { %v2954_v56 = vpop.f32.mrf.mxu0 }
 0x19d   :  { %v3025_v6 = vpop.f32.mrf.mxu1  ;;  %3580 = vst [vmem:[%s6411_s3 + $0x40] sm:$0xff] %v4044_v5  ;;  %v3477_v0 = vmax.f32 %v3020_v53, 0.0  ;;  %v2955_v48 = vadd.f32 %v2954_v56, %v2884_v8  ;;  %v3024_v7 = vadd.f32 %v3023_v31, %v2953_v29 }
 0x19e   :  { %v2956_v26 = vpop.f32.mrf.mxu0 }
 0x19f   :  { %v3027_v17 = vpop.f32.mrf.mxu1  ;;  %v4046_v28 = vpack.c.bf16 %v3477_v0, %v3476_v16  ;;  %v3026_v3 = vadd.f32 %v3025_v6, %v2955_v48  ;;  %v3480_v18 = vmax.f32 %v3024_v7, 0.0 }
 0x1a0   :  { %v2957_v42 = vpop.f32.mrf.mxu0 }
 0x1a1   :  { %v3028_v11 = vpop.f32.mrf.mxu1  ;;  %3582 = vst [vmem:[%s6411_s3 + $0x50] sm:$0xff] %v4046_v28  ;;  %v3481_v47 = vmax.f32 %v3026_v3, 0.0 }
 0x1a3   :  { %v4048_v13 = vpack.c.bf16 %v3481_v47, %v3480_v18 }
 0x1a5   :  { %3584 = vst [vmem:[%s6411_s3 + $0x60] sm:$0xff] %v4048_v13 }
 0x1c2   :  { %v3064_v27 = vpop.f32.mrf.mxu0 }
 0x1c3   :  { %v3135_v24 = vpop.f32.mrf.mxu1  ;;  %v3065_v25 = vadd.f32 %v3064_v27, %v453_v22 }
 0x1c4   :  { %v3066_v30 = vpop.f32.mrf.mxu0 }
 0x1c5   :  { %v3137_v32 = vpop.f32.mrf.mxu1  ;;  %v3136_v51 = vadd.f32 %v3135_v24, %v3065_v25  ;;  %v3067_v33 = vadd.f32 %v3066_v30, %v457_v34 }
 0x1c6   :  { %v3068_v43 = vpop.f32.mrf.mxu0 }
 0x1c7   :  { %v3139_v36 = vpop.f32.mrf.mxu1  ;;  %v6339_v62 = vadd.f32 %v3137_v32, %v3067_v33  ;;  %v3069_v39 = vadd.f32 %v3068_v43, %v453_v22 }
 0x1c8   :  { %v3070_v19 = vpop.f32.mrf.mxu0 }
 0x1c9   :  { %v3141_v10 = vpop.f32.mrf.mxu1  ;;  %v3140_v23 = vadd.f32 %v3139_v36, %v3069_v39  ;;  %v3071_v38 = vadd.f32 %v3070_v19, %v457_v34 }
 0x1ca   :  { %v3074_v54 = vpop.f32.mrf.mxu0 }
 0x1cb   :  { %v3145_v45 = vpop.f32.mrf.mxu1  ;;  %v6341_v35 = vadd.f32 %v3141_v10, %v3071_v38  ;;  %v3075_v4 = vadd.f32 %v3074_v54, %v453_v22 }
 0x1cc   :  { %v3076_v12 = vpop.f32.mrf.mxu0 }
 0x1cd   :  { %v3147_v44 = vpop.f32.mrf.mxu1  ;;  %v3077_v40 = vadd.f32 %v3076_v12, %v457_v34  ;;  %v3146_v52 = vadd.f32 %v3145_v45, %v3075_v4 }
 0x1ce   :  { %v3078_v37 = vpop.f32.mrf.mxu0 }
 0x1cf   :  { %v3149_v49 = vpop.f32.mrf.mxu1  ;;  %v3079_v50 = vadd.f32 %v3078_v37, %v453_v22  ;;  %v6343_v57 = vadd.f32 %v3147_v44, %v3077_v40 }
 0x1d0   :  { %v3080_v55 = vpop.f32.mrf.mxu0 }
 0x1d1   :  { %v3151_v46 = vpop.f32.mrf.mxu1  ;;  %v3081_v20 = vadd.f32 %v3080_v55, %v457_v34  ;;  %v3150_v21 = vadd.f32 %v3149_v49, %v3079_v50 }
 0x1d2   :  { %v3084_v60 = vpop.f32.mrf.mxu0 }
 0x1d3   :  { %v3155_v58 = vpop.f32.mrf.mxu1  ;;  %v3085_v59 = vadd.f32 %v3084_v60, %v453_v22  ;;  %v6345_v61 = vadd.f32 %v3151_v46, %v3081_v20 }
 0x1d4   :  { %v3086_v63 = vpop.f32.mrf.mxu0 }
 0x1d5   :  { %v3157_v1 = vpop.f32.mrf.mxu1  ;;  %v3087_v2 = vadd.f32 %v3086_v63, %v457_v34  ;;  %v3156_v41 = vadd.f32 %v3155_v58, %v3085_v59 }
 0x1d6   :  { %v3088_v31 = vpop.f32.mrf.mxu0 }
 0x1d7   :  { %v3159_v8 = vpop.f32.mrf.mxu1  ;;  %v3089_v5 = vadd.f32 %v3088_v31, %v453_v22  ;;  %v6347_v29 = vadd.f32 %v3157_v1, %v3087_v2 }
 0x1d8   :  { %v3090_v53 = vpop.f32.mrf.mxu0 }
 0x1d9   :  { %v3161_v56 = vpop.f32.mrf.mxu1  ;;  %v3091_v6 = vadd.f32 %v3090_v53, %v457_v34  ;;  %v3160_v16 = vadd.f32 %v3159_v8, %v3089_v5 }
 0x1da   :  { %v3094_v0 = vpop.f32.mrf.mxu0 }
 0x1db   :  { %v3165_v48 = vpop.f32.mrf.mxu1  ;;  %v3095_v7 = vadd.f32 %v3094_v0, %v453_v22  ;;  %v6349_v26 = vadd.f32 %v3161_v56, %v3091_v6 }
 0x1dc   :  { %v3096_v17 = vpop.f32.mrf.mxu0 }
 0x1dd   :  { %v3167_v28 = vpop.f32.mrf.mxu1  ;;  %v3097_v3 = vadd.f32 %v3096_v17, %v457_v34  ;;  %v3166_v42 = vadd.f32 %v3165_v48, %v3095_v7 }
 0x1de   :  { %v3098_v11 = vpop.f32.mrf.mxu0 }
 0x1df   :  { %v3169_v18 = vpop.f32.mrf.mxu1  ;;  %v6351_v47 = vadd.f32 %v3167_v28, %v3097_v3 }
 0x1e0   :  { %v3099_v13 = vpop.f32.mrf.mxu0 }
 0x1e1   :  { %v3170_v9 = vpop.f32.mrf.mxu1 }
 0x202   :  { %v3206_v14 = vpop.f32.mrf.mxu0 }
 0x203   :  { %v3277_v15 = vpop.f32.mrf.mxu1  ;;  %v3207_v27 = vadd.f32 %v3206_v14, %v3136_v51 }
 0x204   :  { %v3208_v24 = vpop.f32.mrf.mxu0 }
 0x205   :  { %v3279_v25 = vpop.f32.mrf.mxu1  ;;  %v3278_v30 = vadd.f32 %v3277_v15, %v3207_v27 }
 0x206   :  { %v3210_v32 = vpop.f32.mrf.mxu0 }
 0x207   :  { %v3281_v22 = vpop.f32.mrf.mxu1  ;;  %v3211_v33 = vadd.f32 %v3210_v32, %v3140_v23 }
 0x208   :  { %v3212_v43 = vpop.f32.mrf.mxu0 }
 0x209   :  { %v3283_v36 = vpop.f32.mrf.mxu1  ;;  %v3282_v39 = vadd.f32 %v3281_v22, %v3211_v33  ;;  %v3213_v28 = vadd.f32 %v3212_v43, %v6341_v35 }
 0x20a   :  { %v3216_v34 = vpop.f32.mrf.mxu0 }
 0x20b   :  { %v3287_v19 = vpop.f32.mrf.mxu1  ;;  %v3217_v10 = vadd.f32 %v3216_v34, %v3146_v52  ;;  %v3284_v15 = vadd.f32 %v3283_v36, %v3213_v28 }
 0x20c   :  { %v3218_v38 = vpop.f32.mrf.mxu0 }
 0x20d   :  { %v3289_v54 = vpop.f32.mrf.mxu1  ;;  %v3288_v45 = vadd.f32 %v3287_v19, %v3217_v10  ;;  %v3219_v27 = vadd.f32 %v3218_v38, %v6343_v57 }
 0x20e   :  { %v3220_v4 = vpop.f32.mrf.mxu0 }
 0x20f   :  { %v3291_v12 = vpop.f32.mrf.mxu1  ;;  %v3221_v44 = vadd.f32 %v3220_v4, %v3150_v21  ;;  %v3290_v10 = vadd.f32 %v3289_v54, %v3219_v27 }
 0x210   :  { %v3222_v40 = vpop.f32.mrf.mxu0 }
 0x211   :  { %v3293_v51 = vpop.f32.mrf.mxu1  ;;  %v6353_v37 = vadd.f32 %v3291_v12, %v3221_v44  ;;  %v3223_v35 = vadd.f32 %v3222_v40, %v6345_v61 }
 0x212   :  { %v3226_v49 = vpop.f32.mrf.mxu0 }
 0x213   :  { %v3297_v50 = vpop.f32.mrf.mxu1  ;;  %v3227_v55 = vadd.f32 %v3226_v49, %v3156_v41 }
 0x214   :  { %v3228_v23 = vpop.f32.mrf.mxu0 }
 0x215   :  { %v6355_v46 = vpop.f32.mrf.mxu1  ;;  %v6357_v20 = vadd.f32 %v3297_v50, %v3227_v55  ;;  %v3294_v55 = vadd.f32 %v3293_v51, %v3223_v35  ;;  %v3229_v61 = vadd.f32 %v3228_v23, %v6347_v29 }
 0x216   :  { %v3230_v60 = vpop.f32.mrf.mxu0 }
 0x217   :  { %v3301_v52 = vpop.f32.mrf.mxu1  ;;  %v3231_v58 = vadd.f32 %v3230_v60, %v3160_v16  ;;  %v3209_v16 = vadd.f32 %v3208_v24, %v6339_v62  ;;  %v3300_v29 = vadd.f32 %v6355_v46, %v3229_v61 }
 0x218   :  { %v6359_v59 = vpop.f32.mrf.mxu0 }
 0x219   :  { %v6361_v63 = vpop.f32.mrf.mxu1  ;;  %v6363_v21 = vadd.f32 %v3301_v52, %v3231_v58  ;;  %v3280_v17 = vadd.f32 %v3279_v25, %v3209_v16  ;;  %v3233_v51 = vadd.f32 %v6359_v59, %v6349_v26 }
 0x21a   :  { %v3236_v1 = vpop.f32.mrf.mxu0 }
 0x21b   :  { %v3307_v2 = vpop.f32.mrf.mxu1  ;;  %v3237_v31 = vadd.f32 %v3236_v1, %v3166_v42  ;;  %v3304_v26 = vadd.f32 %v6361_v63, %v3233_v51 }
 0x21c   :  { %v6365_v8 = vpop.f32.mrf.mxu0 }
 0x21d   :  { %v6367_v41 = vpop.f32.mrf.mxu1  ;;  %v6369_v5 = vadd.f32 %v3307_v2, %v3237_v31  ;;  %v3239_v46 = vadd.f32 %v6365_v8, %v6351_v47 }
 0x21e   :  { %v3240_v53 = vpop.f32.mrf.mxu0 }
 0x21f   :  { %v3311_v56 = vpop.f32.mrf.mxu1 }
 0x220   :  { %v3241_v6 = vpop.f32.mrf.mxu0 }
 0x221   :  { %v3312_v0 = vpop.f32.mrf.mxu1 }
 0x242   :  { %v3348_v48 = vpop.f32.mrf.mxu0 }
 0x243   :  { %v3419_v7 = vpop.f32.mrf.mxu1  ;;  %v3349_v3 = vadd.f32 %v3348_v48, %v3278_v30 }
 0x244   :  { %v3350_v11 = vpop.f32.mrf.mxu0 }
 0x245   :  { %v3421_v42 = vpop.f32.mrf.mxu1  ;;  %v3420_v18 = vadd.f32 %v3419_v7, %v3349_v3  ;;  %v3351_v13 = vadd.f32 %v3350_v11, %v3280_v17 }
 0x246   :  { %v3352_v9 = vpop.f32.mrf.mxu0 }
 0x247   :  { %v3423_v14 = vpop.f32.mrf.mxu1  ;;  %v3422_v32 = vadd.f32 %v3421_v42, %v3351_v13  ;;  %v3353_v22 = vadd.f32 %v3352_v9, %v3282_v39  ;;  %v3458_v62 = vmax.f32 %v3420_v18, 0.0 }
 0x248   :  { %v3354_v33 = vpop.f32.mrf.mxu0 }
 0x249   :  { %v3425_v34 = vpop.f32.mrf.mxu1  ;;  %v3459_v24 = vmax.f32 %v3422_v32, 0.0  ;;  %v3424_v19 = vadd.f32 %v3423_v14, %v3353_v22  ;;  %v3355_v25 = vadd.f32 %v3354_v33, %v3284_v15 }
 0x24a   :  { %v3358_v30 = vpop.f32.mrf.mxu0 }
 0x24b   :  { %v3429_v43 = vpop.f32.mrf.mxu1  ;;  %v4037_v4 = vpack.c.bf16 %v3459_v24, %v3458_v62  ;;  %v3426_v12 = vadd.f32 %v3425_v34, %v3355_v25  ;;  %v3359_v44 = vadd.f32 %v3358_v30, %v3288_v45  ;;  %v3462_v57 = vmax.f32 %v3424_v19, 0.0 }
 0x24c   :  { %v3360_v49 = vpop.f32.mrf.mxu0  ;;  %v3310_v34 = vadd.f32 %v6367_v41, %v3239_v46 }
 0x24d   :  { %v3431_v36 = vpop.f32.mrf.mxu1  ;;  %3573 = vst [vmem:[%s6411_s3 + $0x8] sm:$0xff] %v4037_v4  ;;  %v3463_v39 = vmax.f32 %v3426_v12, 0.0  ;;  %v3430_v38 = vadd.f32 %v3429_v43, %v3359_v44  ;;  %v3361_v50 = vadd.f32 %v3360_v49, %v3290_v10 }
 0x24e   :  { %v3362_v60 = vpop.f32.mrf.mxu0 }
 0x24f   :  { %v3433_v52 = vpop.f32.mrf.mxu1  ;;  %v4039_v40 = vpack.c.bf16 %v3463_v39, %v3462_v57  ;;  %v3432_v54 = vadd.f32 %v3431_v36, %v3361_v50  ;;  %v3363_v58 = vadd.f32 %v3362_v60, %v6353_v37  ;;  %v3466_v2 = vmax.f32 %v3430_v38, 0.0 }
 0x250   :  { %v3364_v45 = vpop.f32.mrf.mxu0 }
 0x251   :  { %v3435_v1 = vpop.f32.mrf.mxu1  ;;  %3575 = vst [vmem:[%s6411_s3 + $0x18] sm:$0xff] %v4039_v40  ;;  %v3467_v31 = vmax.f32 %v3432_v54, 0.0  ;;  %v3434_v53 = vadd.f32 %v3433_v52, %v3363_v58  ;;  %v3365_v56 = vadd.f32 %v3364_v45, %v3294_v55 }
 0x252   :  { %v3368_v6 = vpop.f32.mrf.mxu0 }
 0x253   :  { %v3439_v0 = vpop.f32.mrf.mxu1  ;;  %v4041_v23 = vpack.c.bf16 %v3467_v31, %v3466_v2  ;;  %v3436_v16 = vadd.f32 %v3435_v1, %v3365_v56  ;;  %v3369_v37 = vadd.f32 %v3368_v6, %v6357_v20  ;;  %v3470_v17 = vmax.f32 %v3434_v53, 0.0 }
 0x254   :  { %v3370_v48 = vpop.f32.mrf.mxu0 }
 0x255   :  { %v3441_v7 = vpop.f32.mrf.mxu1  ;;  %3577 = vst [vmem:[%s6411_s3 + $0x28] sm:$0xff] %v4041_v23  ;;  %v3471_v28 = vmax.f32 %v3436_v16, 0.0  ;;  %v3440_v3 = vadd.f32 %v3439_v0, %v3369_v37  ;;  %v3371_v11 = vadd.f32 %v3370_v48, %v3300_v29 }
 0x256   :  { %v3372_v59 = vpop.f32.mrf.mxu0 }
 0x257   :  { %v3443_v42 = vpop.f32.mrf.mxu1  ;;  %v4043_v18 = vpack.c.bf16 %v3471_v28, %v3470_v17  ;;  %v3442_v13 = vadd.f32 %v3441_v7, %v3371_v11  ;;  %v3373_v20 = vadd.f32 %v3372_v59, %v6363_v21  ;;  %v3474_v15 = vmax.f32 %v3440_v3, 0.0 }
 0x258   :  { %v3374_v9 = vpop.f32.mrf.mxu0 }
 0x259   :  { %v3445_v14 = vpop.f32.mrf.mxu1  ;;  %3579 = vst [vmem:[%s6411_s3 + $0x38] sm:$0xff] %v4043_v18  ;;  %v3475_v27 = vmax.f32 %v3442_v13, 0.0  ;;  %v3444_v32 = vadd.f32 %v3443_v42, %v3373_v20  ;;  %v3375_v22 = vadd.f32 %v3374_v9, %v3304_v26 }
 0x25a   :  { %v3378_v63 = vpop.f32.mrf.mxu0 }
 0x25b   :  { %v3449_v33 = vpop.f32.mrf.mxu1  ;;  %v4045_v62 = vpack.c.bf16 %v3475_v27, %v3474_v15  ;;  %v3446_v47 = vadd.f32 %v3445_v14, %v3375_v22  ;;  %v3379_v8 = vadd.f32 %v3378_v63, %v6369_v5  ;;  %v3478_v19 = vmax.f32 %v3444_v32, 0.0 }
 0x25c   :  { %v3380_v24 = vpop.f32.mrf.mxu0 }
 0x25d   :  { %v3451_v21 = vpop.f32.mrf.mxu1  ;;  %3581 = vst [vmem:[%s6411_s3 + $0x48] sm:$0xff] %v4045_v62  ;;  %v3479_v25 = vmax.f32 %v3446_v47, 0.0  ;;  %v3450_v35 = vadd.f32 %v3449_v33, %v3379_v8  ;;  %v3381_v30 = vadd.f32 %v3380_v24, %v3310_v34 }
 0x25e   :  { %v3382_v43 = vpop.f32.mrf.mxu0 }
 0x25f   :  { %v3453_v10 = vpop.f32.mrf.mxu1  ;;  %v4047_v4 = vpack.c.bf16 %v3479_v25, %v3478_v19  ;;  %v3452_v12 = vadd.f32 %v3451_v21, %v3381_v30  ;;  %v3482_v5 = vmax.f32 %v3450_v35, 0.0 }
 0x260   :  { %v3383_v44 = vpop.f32.mrf.mxu0 }
 0x261   :  { %v3454_v41 = vpop.f32.mrf.mxu1  ;;  %3583 = vst [vmem:[%s6411_s3 + $0x58] sm:$0xff] %v4047_v4  ;;  %v3483_v49 = vmax.f32 %v3452_v12, 0.0 }
 0x263   :  { %v4049_v36 = vpack.c.bf16 %v3483_v49, %v3482_v5 }
 0x265   :  { %3585 = vst [vmem:[%s6411_s3 + $0x68] sm:$0xff] %v4049_v36 }

// kernel: convcgenerator_forward.4
= control target key start
LH: loop header
LB: loop body
LE: loop exit
PB: predicated region body
PF: predicated region fallthrough
CT: control target
= control target key end

     0   :  { %8 = vsyncpa [#allocation3], 0  ;;  %s4605_s0 = inlined_call_operand.vmem [shape: bf16[8,128], index: 0, kind: input, shape index: {}]   ;;  %s4606_s1 = inlined_call_operand.hbm [shape: bf16[128,6144], index: 1, kind: input, shape index: {}]   ;;  %s4607_s2 = inlined_call_operand.hbm [shape: f32[1,6144], index: 2, kind: input, shape index: {}]   ;;  %s4608_s3 = inlined_call_operand.vmem [shape: bf16[8,6144], index: 3, kind: output, shape index: {}]  }
   0x1   :  { %9 = vsyncpa [#allocation5], 0  ;;  %s4335_s12 = smov [#allocation2]  }
   0x2   :  { %s17_s13 = sshll.u32 %s4335_s12, 4  ;;  %s18_s13 = int_to_ptr.vmem [resolvable:$true] %s17_s13 }
   0x3   :  { %s4299_s14 = scalar_lea.vmem %s18_s13, 49152  ;;  %p4304_p1 = scmp.lt.s32.totalorder %s18_s13, %s18_s13 }
   0x4   :  { %p4300_p0 = scmp.ne.s32.totalorder %s18_s13, %s4299_s14  ;;  %p4305_p2 = scmp.lt.s32.totalorder %s4299_s14, %s4299_s14 }
   0x6   :  { %p4306_p3 = por %p4305_p2, %p4304_p1 }
   0x8   :  { %p4307_p4 = pnand %p4306_p3, %p4300_p0 }
   0xa   :  { %4310 = shalt.err (!%p4307_p4)
}
   0xb   :  { %s4336_s15 = smov 3072   ;;  %s4337_s16 = smov 192  }
   0xc   :  { %23 = dma.hbm_to_vmem [thread:$0]  %s4606_s1, 49152, %s18_s13, [#allocation3], %s4336_s15, %s4336_s15, %s4337_s16  }
   0xd   :  { %s4338_s19 = smov [#allocation4]  }
   0xe   :  { %s30_s20 = sshll.u32 %s4338_s19, 4  ;;  %s31_s20 = int_to_ptr.vmem [resolvable:$true] %s30_s20 }
   0xf   :  { %s4319_s21 = scalar_lea.vmem %s31_s20, 768  ;;  %p4324_p6 = scmp.lt.s32.totalorder %s31_s20, %s31_s20 }
  0x10   :  { %p4320_p5 = scmp.ne.s32.totalorder %s31_s20, %s4319_s21  ;;  %p4325_p7 = scmp.lt.s32.totalorder %s4319_s21, %s4319_s21 }
  0x12   :  { %p4326_p8 = por %p4325_p7, %p4324_p6 }
  0x14   :  { %p4327_p9 = pnand %p4326_p8, %p4320_p5 }
  0x16   :  { %4330 = shalt.err (!%p4327_p9)
}
  0x17   :  { %33 = dma.hbm_to_vmem [thread:$0]  %s4607_s2, 768, %s31_s20, [#allocation5]  }
  0x18   :  { %4331 = dma.done.wait [#allocation3], 49152  }
  0x19   :  { %4332 = vsyncadd [#allocation3], 4294918144 }
  0x1a   :  { %4333 = dma.done.wait [#allocation5], 768  }
  0x1b   :  { %4334 = vsyncadd [#allocation5], 4294966528  ;;  %v4339_v0 = vmov 0   ;;  %v378_v1 = vld [vmem:[#allocation2 + $0xa80] sm:$0xff]  ;;  %v379_v3 = vld [vmem:[#allocation2 + $0xa88] sm:$0xff] }
  0x1c   :  { %2630 = vmatprep.mubr.bf16.mxu0 %v4339_v0  ;;  %2671 = vmatprep.mubr.bf16.mxu1 %v4339_v0  ;;  %v402_v2 = vld [vmem:[#allocation2 + $0xb40] sm:$0xff]  ;;  %v403_v5 = vld [vmem:[#allocation2 + $0xb48] sm:$0xff]  ;;  %v380_v63 = vld [vmem:[#allocation2 + $0xa90] sm:$0xff] }
  0x1d   :  { %v4189_v4 = vcombine.high %v378_v1, %v402_v2  ;;  %v4188_v6 = vcombine.low %v378_v1, %v402_v2  ;;  %v330_v7 = vld [vmem:[#allocation2 + $0x900] sm:$0xff]  ;;  %v4191_v9 = vcombine.high %v379_v3, %v403_v5  ;;  %v4190_v10 = vcombine.low %v379_v3, %v403_v5  ;;  %v331_v12 = vld [vmem:[#allocation2 + $0x908] sm:$0xff]  ;;  %v404_v1 = vld [vmem:[#allocation2 + $0xb50] sm:$0xff] }
  0x1e   :  { %v354_v8 = vld [vmem:[#allocation2 + $0x9c0] sm:$0xff]  ;;  %v355_v13 = vld [vmem:[#allocation2 + $0x9c8] sm:$0xff]  ;;  %v381_v2 = vld [vmem:[#allocation2 + $0xa98] sm:$0xff] }
  0x1f   :  { %v4141_v11 = vcombine.high %v330_v7, %v354_v8  ;;  %v282_v14 = vld [vmem:[#allocation2 + $0x780] sm:$0xff]  ;;  %2598 = vmatprep.subr.bf16.mxu0 %v4189_v4  ;;  %v4143_v15 = vcombine.high %v331_v12, %v355_v13  ;;  %v283_v17 = vld [vmem:[#allocation2 + $0x788] sm:$0xff]  ;;  %2639 = vmatprep.subr.bf16.mxu1 %v4191_v9  ;;  %v4140_v19 = vcombine.low %v330_v7, %v354_v8  ;;  %v405_v3 = vld [vmem:[#allocation2 + $0xb58] sm:$0xff] }
  0x20   :  { %v306_v16 = vld [vmem:[#allocation2 + $0x840] sm:$0xff]  ;;  %v307_v18 = vld [vmem:[#allocation2 + $0x848] sm:$0xff]  ;;  %2599 = vmatpush1.bf16.msra.mxu0 %v4188_v6  ;;  %2640 = vmatpush1.bf16.msra.mxu1 %v4190_v10  ;;  %v4142_v20 = vcombine.low %v331_v12, %v355_v13  ;;  %v4193_v6 = vcombine.high %v380_v63, %v404_v1  ;;  %v4195_v7 = vcombine.high %v381_v2, %v405_v3  ;;  %v332_v8 = vld [vmem:[#allocation2 + $0x910] sm:$0xff] }
  0x21   :  { %2600 = vmatprep.subr.bf16.mxu0 %v4141_v11  ;;  %v4093_v21 = vcombine.high %v282_v14, %v306_v16  ;;  %2641 = vmatprep.subr.bf16.mxu1 %v4143_v15  ;;  %v4095_v22 = vcombine.high %v283_v17, %v307_v18  ;;  %v234_v23 = vld [vmem:[#allocation2 + $0x600] sm:$0xff]  ;;  %v235_v25 = vld [vmem:[#allocation2 + $0x608] sm:$0xff]  ;;  %v4092_v27 = vcombine.low %v282_v14, %v306_v16  ;;  %v356_v9 = vld [vmem:[#allocation2 + $0x9d0] sm:$0xff] }
  0x22   :  { %v258_v24 = vld [vmem:[#allocation2 + $0x6c0] sm:$0xff]  ;;  %v259_v26 = vld [vmem:[#allocation2 + $0x6c8] sm:$0xff]  ;;  %v4094_v28 = vcombine.low %v283_v17, %v307_v18  ;;  %v333_v10 = vld [vmem:[#allocation2 + $0x918] sm:$0xff]  ;;  %v4192_v13 = vcombine.low %v380_v63, %v404_v1  ;;  %v4194_v14 = vcombine.low %v381_v2, %v405_v3  ;;  %v4145_v15 = vcombine.high %v332_v8, %v356_v9 }
  0x23   :  { %v4045_v29 = vcombine.high %v234_v23, %v258_v24  ;;  %v4047_v30 = vcombine.high %v235_v25, %v259_v26  ;;  %v186_v31 = vld [vmem:[#allocation2 + $0x480] sm:$0xff]  ;;  %v187_v33 = vld [vmem:[#allocation2 + $0x488] sm:$0xff]  ;;  %v4044_v35 = vcombine.low %v234_v23, %v258_v24  ;;  %v4046_v36 = vcombine.low %v235_v25, %v259_v26  ;;  %v357_v11 = vld [vmem:[#allocation2 + $0x9d8] sm:$0xff] }
  0x24   :  { %2601 = vmatpush1.bf16.msra.mxu0 %v4140_v19  ;;  %2642 = vmatpush1.bf16.msra.mxu1 %v4142_v20  ;;  %v210_v32 = vld [vmem:[#allocation2 + $0x540] sm:$0xff]  ;;  %v211_v34 = vld [vmem:[#allocation2 + $0x548] sm:$0xff]  ;;  %v4147_v16 = vcombine.high %v333_v10, %v357_v11  ;;  %v284_v17 = vld [vmem:[#allocation2 + $0x790] sm:$0xff] }
  0x25   :  { %2602 = vmatprep.subr.bf16.mxu0 %v4093_v21  ;;  %2643 = vmatprep.subr.bf16.mxu1 %v4095_v22  ;;  %v3997_v37 = vcombine.high %v186_v31, %v210_v32  ;;  %v3999_v38 = vcombine.high %v187_v33, %v211_v34  ;;  %v138_v39 = vld [vmem:[#allocation2 + $0x300] sm:$0xff]  ;;  %v139_v41 = vld [vmem:[#allocation2 + $0x308] sm:$0xff]  ;;  %v3996_v43 = vcombine.low %v186_v31, %v210_v32  ;;  %v308_v18 = vld [vmem:[#allocation2 + $0x850] sm:$0xff] }
  0x26   :  { %v162_v40 = vld [vmem:[#allocation2 + $0x3c0] sm:$0xff]  ;;  %v163_v42 = vld [vmem:[#allocation2 + $0x3c8] sm:$0xff]  ;;  %v3998_v44 = vcombine.low %v187_v33, %v211_v34  ;;  %v285_v19 = vld [vmem:[#allocation2 + $0x798] sm:$0xff]  ;;  %v4144_v21 = vcombine.low %v332_v8, %v356_v9  ;;  %v4146_v22 = vcombine.low %v333_v10, %v357_v11  ;;  %v4097_v23 = vcombine.high %v284_v17, %v308_v18 }
  0x27   :  { %v3949_v45 = vcombine.high %v138_v39, %v162_v40  ;;  %v3951_v46 = vcombine.high %v139_v41, %v163_v42  ;;  %v90_v47 = vld [vmem:[#allocation2 + $0x180] sm:$0xff]  ;;  %v91_v49 = vld [vmem:[#allocation2 + $0x188] sm:$0xff]  ;;  %v3948_v51 = vcombine.low %v138_v39, %v162_v40  ;;  %v3950_v52 = vcombine.low %v139_v41, %v163_v42  ;;  %v309_v20 = vld [vmem:[#allocation2 + $0x858] sm:$0xff] }
  0x28   :  { %2603 = vmatpush1.bf16.msra.mxu0 %v4092_v27  ;;  %2644 = vmatpush1.bf16.msra.mxu1 %v4094_v28  ;;  %v114_v48 = vld [vmem:[#allocation2 + $0x240] sm:$0xff]  ;;  %v115_v50 = vld [vmem:[#allocation2 + $0x248] sm:$0xff]  ;;  %v4099_v24 = vcombine.high %v285_v19, %v309_v20  ;;  %v236_v25 = vld [vmem:[#allocation2 + $0x610] sm:$0xff] }
  0x29   :  { %2604 = vmatprep.subr.bf16.mxu0 %v4045_v29  ;;  %2645 = vmatprep.subr.bf16.mxu1 %v4047_v30  ;;  %v3901_v53 = vcombine.high %v90_v47, %v114_v48  ;;  %v3903_v54 = vcombine.high %v91_v49, %v115_v50  ;;  %v42_v55 = vld [vmem:[#allocation2] sm:$0xff]  ;;  %v43_v57 = vld [vmem:[#allocation2 + $0x8] sm:$0xff]  ;;  %v3900_v59 = vcombine.low %v90_v47, %v114_v48  ;;  %v260_v26 = vld [vmem:[#allocation2 + $0x6d0] sm:$0xff] }
  0x2a   :  { %v66_v56 = vld [vmem:[#allocation2 + $0xc0] sm:$0xff]  ;;  %v67_v58 = vld [vmem:[#allocation2 + $0xc8] sm:$0xff]  ;;  %v3902_v60 = vcombine.low %v91_v49, %v115_v50  ;;  %v237_v27 = vld [vmem:[#allocation2 + $0x618] sm:$0xff]  ;;  %v4096_v29 = vcombine.low %v284_v17, %v308_v18  ;;  %v4098_v30 = vcombine.low %v285_v19, %v309_v20  ;;  %v4049_v31 = vcombine.high %v236_v25, %v260_v26 }
  0x2b   :  { %v3853_v61 = vcombine.high %v42_v55, %v66_v56  ;;  %v3855_v62 = vcombine.high %v43_v57, %v67_v58  ;;  %v3852_v4 = vcombine.low %v42_v55, %v66_v56  ;;  %v3854_v5 = vcombine.low %v43_v57, %v67_v58  ;;  %v4371_v12 = vld [vmem:[%s4605_s0] sm:$0xf]  ;;  %v261_v28 = vld [vmem:[#allocation2 + $0x6d8] sm:$0xff]  ;;  %v188_v33 = vld [vmem:[#allocation2 + $0x490] sm:$0xff] }
  0x2c   :  { %2605 = vmatpush1.bf16.msra.mxu0 %v4044_v35  ;;  %2646 = vmatpush1.bf16.msra.mxu1 %v4046_v36  ;;  %v4051_v32 = vcombine.high %v237_v27, %v261_v28  ;;  %v212_v34 = vld [vmem:[#allocation2 + $0x550] sm:$0xff]  ;;  %v189_v35 = vld [vmem:[#allocation2 + $0x498] sm:$0xff]  ;;  %v382_v2 = vld [vmem:[#allocation2 + $0xaa0] sm:$0xff] }
  0x2d   :  { %2606 = vmatprep.subr.bf16.mxu0 %v3997_v37  ;;  %2647 = vmatprep.subr.bf16.mxu1 %v3999_v38  ;;  %v213_v36 = vld [vmem:[#allocation2 + $0x558] sm:$0xff]  ;;  %v4048_v37 = vcombine.low %v236_v25, %v260_v26  ;;  %v4050_v38 = vcombine.low %v237_v27, %v261_v28  ;;  %v4001_v39 = vcombine.high %v188_v33, %v212_v34  ;;  %v140_v41 = vld [vmem:[#allocation2 + $0x310] sm:$0xff]  ;;  %v406_v3 = vld [vmem:[#allocation2 + $0xb60] sm:$0xff] }
  0x2e   :  { %v4003_v40 = vcombine.high %v189_v35, %v213_v36  ;;  %v164_v42 = vld [vmem:[#allocation2 + $0x3d0] sm:$0xff]  ;;  %v4197_v8 = vcombine.high %v382_v2, %v406_v3  ;;  %v334_v10 = vld [vmem:[#allocation2 + $0x920] sm:$0xff] }
  0x2f   :  { %v3953_v47 = vcombine.high %v140_v41, %v164_v42  ;;  %v92_v49 = vld [vmem:[#allocation2 + $0x190] sm:$0xff]  ;;  %v358_v11 = vld [vmem:[#allocation2 + $0x9e0] sm:$0xff] }
  0x30   :  { %2607 = vmatpush1.bf16.msra.mxu0 %v3996_v43  ;;  %2648 = vmatpush1.bf16.msra.mxu1 %v3998_v44  ;;  %v141_v43 = vld [vmem:[#allocation2 + $0x318] sm:$0xff]  ;;  %v116_v50 = vld [vmem:[#allocation2 + $0x250] sm:$0xff]  ;;  %v4149_v17 = vcombine.high %v334_v10, %v358_v11  ;;  %v286_v19 = vld [vmem:[#allocation2 + $0x7a0] sm:$0xff] }
  0x31   :  { %2608 = vmatprep.subr.bf16.mxu0 %v3949_v45  ;;  %2649 = vmatprep.subr.bf16.mxu1 %v3951_v46  ;;  %v165_v44 = vld [vmem:[#allocation2 + $0x3d8] sm:$0xff]  ;;  %v4000_v45 = vcombine.low %v188_v33, %v212_v34  ;;  %v4002_v46 = vcombine.low %v189_v35, %v213_v36  ;;  %v3905_v55 = vcombine.high %v92_v49, %v116_v50  ;;  %v44_v57 = vld [vmem:[#allocation2 + $0x10] sm:$0xff]  ;;  %v310_v20 = vld [vmem:[#allocation2 + $0x860] sm:$0xff] }
  0x32   :  { %v3955_v48 = vcombine.high %v141_v43, %v165_v44  ;;  %v68_v58 = vld [vmem:[#allocation2 + $0xd0] sm:$0xff]  ;;  %v4101_v25 = vcombine.high %v286_v19, %v310_v20  ;;  %v238_v27 = vld [vmem:[#allocation2 + $0x620] sm:$0xff] }
  0x33   :  { %v3857_v63 = vcombine.high %v44_v57, %v68_v58  ;;  %v262_v28 = vld [vmem:[#allocation2 + $0x6e0] sm:$0xff] }
  0x34   :  { %2609 = vmatpush1.bf16.msra.mxu0 %v3948_v51  ;;  %2650 = vmatpush1.bf16.msra.mxu1 %v3950_v52  ;;  %v93_v51 = vld [vmem:[#allocation2 + $0x198] sm:$0xff]  ;;  %v4053_v33 = vcombine.high %v238_v27, %v262_v28  ;;  %v190_v35 = vld [vmem:[#allocation2 + $0x4a0] sm:$0xff] }
  0x35   :  { %2610 = vmatprep.subr.bf16.mxu0 %v3901_v53  ;;  %2651 = vmatprep.subr.bf16.mxu1 %v3903_v54  ;;  %v117_v52 = vld [vmem:[#allocation2 + $0x258] sm:$0xff]  ;;  %v3952_v53 = vcombine.low %v140_v41, %v164_v42  ;;  %v3954_v54 = vcombine.low %v141_v43, %v165_v44  ;;  %v214_v36 = vld [vmem:[#allocation2 + $0x560] sm:$0xff] }
  0x36   :  { %v3907_v56 = vcombine.high %v93_v51, %v117_v52  ;;  %v4005_v41 = vcombine.high %v190_v35, %v214_v36  ;;  %v142_v43 = vld [vmem:[#allocation2 + $0x320] sm:$0xff] }
  0x37   :  { %v166_v44 = vld [vmem:[#allocation2 + $0x3e0] sm:$0xff] }
  0x38   :  { %2611 = vmatpush1.bf16.msra.mxu0 %v3900_v59  ;;  %2652 = vmatpush1.bf16.msra.mxu1 %v3902_v60  ;;  %v45_v59 = vld [vmem:[#allocation2 + $0x18] sm:$0xff] }
  0x39   :  { %2612 = vmatprep.subr.bf16.mxu0 %v3853_v61  ;;  %2653 = vmatprep.subr.bf16.mxu1 %v3855_v62  ;;  %v69_v60 = vld [vmem:[#allocation2 + $0xd8] sm:$0xff]  ;;  %v3904_v61 = vcombine.low %v92_v49, %v116_v50  ;;  %v3906_v62 = vcombine.low %v93_v51, %v117_v52  ;;  %v3957_v49 = vcombine.high %v142_v43, %v166_v44  ;;  %v94_v51 = vld [vmem:[#allocation2 + $0x1a0] sm:$0xff] }
  0x3a   :  { %v3859_v1 = vcombine.high %v45_v59, %v69_v60  ;;  %v118_v52 = vld [vmem:[#allocation2 + $0x260] sm:$0xff] }
  0x3c   :  { %2613 = vmatpush1.bf16.msra.mxu0 %v3852_v4  ;;  %2654 = vmatpush1.bf16.msra.mxu1 %v3854_v5  ;;  %v383_v4 = vld [vmem:[#allocation2 + $0xaa8] sm:$0xff] }
  0x3d   :  { %2680 = vmatprep.subr.bf16.mxu0 %v4193_v6  ;;  %2721 = vmatprep.subr.bf16.mxu1 %v4195_v7  ;;  %v407_v5 = vld [vmem:[#allocation2 + $0xb68] sm:$0xff]  ;;  %v3856_v6 = vcombine.low %v44_v57, %v68_v58  ;;  %v3858_v7 = vcombine.low %v45_v59, %v69_v60  ;;  %v3909_v57 = vcombine.high %v94_v51, %v118_v52  ;;  %v46_v59 = vld [vmem:[#allocation2 + $0x20] sm:$0xff] }
  0x3e   :  { %v4199_v9 = vcombine.high %v383_v4, %v407_v5  ;;  %v70_v60 = vld [vmem:[#allocation2 + $0xe0] sm:$0xff] }
  0x3f   :  { %2631 = vmatmul.mubr.bf16.vlgmr.msra.gmra.mxu0 %v4371_v12  ;;  %2672 = vmatmul.mubr.bf16.vlgmr.msra.gmra.mxu1 %v4371_v12 }
  0x40   :  { %2681 = vmatpush1.bf16.msra.mxu0 %v4192_v13  ;;  %2722 = vmatpush1.bf16.msra.mxu1 %v4194_v14  ;;  %v335_v13 = vld [vmem:[#allocation2 + $0x928] sm:$0xff] }
  0x41   :  { %2682 = vmatprep.subr.bf16.mxu0 %v4145_v15  ;;  %2723 = vmatprep.subr.bf16.mxu1 %v4147_v16  ;;  %v359_v14 = vld [vmem:[#allocation2 + $0x9e8] sm:$0xff]  ;;  %v4196_v15 = vcombine.low %v382_v2, %v406_v3  ;;  %v4198_v16 = vcombine.low %v383_v4, %v407_v5  ;;  %v3861_v2 = vcombine.high %v46_v59, %v70_v60  ;;  %v384_v4 = vld [vmem:[#allocation2 + $0xab0] sm:$0xff] }
  0x42   :  { %2712 = vmatprep.mubr.bf16.mxu0 %v4339_v0  ;;  %2753 = vmatprep.mubr.bf16.mxu1 %v4339_v0  ;;  %v4151_v18 = vcombine.high %v335_v13, %v359_v14  ;;  %v408_v5 = vld [vmem:[#allocation2 + $0xb70] sm:$0xff] }
  0x44   :  { %2683 = vmatpush1.bf16.msra.mxu0 %v4144_v21  ;;  %2724 = vmatpush1.bf16.msra.mxu1 %v4146_v22  ;;  %v287_v21 = vld [vmem:[#allocation2 + $0x7a8] sm:$0xff] }
  0x45   :  { %2684 = vmatprep.subr.bf16.mxu0 %v4097_v23  ;;  %2725 = vmatprep.subr.bf16.mxu1 %v4099_v24  ;;  %v311_v22 = vld [vmem:[#allocation2 + $0x868] sm:$0xff]  ;;  %v4148_v23 = vcombine.low %v334_v10, %v358_v11  ;;  %v4150_v24 = vcombine.low %v335_v13, %v359_v14  ;;  %v4201_v10 = vcombine.high %v384_v4, %v408_v5  ;;  %v336_v13 = vld [vmem:[#allocation2 + $0x930] sm:$0xff] }
  0x46   :  { %v4103_v26 = vcombine.high %v287_v21, %v311_v22  ;;  %v360_v14 = vld [vmem:[#allocation2 + $0x9f0] sm:$0xff] }
  0x48   :  { %2685 = vmatpush1.bf16.msra.mxu0 %v4096_v29  ;;  %2726 = vmatpush1.bf16.msra.mxu1 %v4098_v30  ;;  %v239_v29 = vld [vmem:[#allocation2 + $0x628] sm:$0xff] }
  0x49   :  { %2686 = vmatprep.subr.bf16.mxu0 %v4049_v31  ;;  %2727 = vmatprep.subr.bf16.mxu1 %v4051_v32  ;;  %v263_v30 = vld [vmem:[#allocation2 + $0x6e8] sm:$0xff]  ;;  %v4100_v31 = vcombine.low %v286_v19, %v310_v20  ;;  %v4102_v32 = vcombine.low %v287_v21, %v311_v22  ;;  %v4153_v19 = vcombine.high %v336_v13, %v360_v14  ;;  %v288_v21 = vld [vmem:[#allocation2 + $0x7b0] sm:$0xff] }
  0x4a   :  { %v4055_v34 = vcombine.high %v239_v29, %v263_v30  ;;  %v312_v22 = vld [vmem:[#allocation2 + $0x870] sm:$0xff] }
  0x4c   :  { %2687 = vmatpush1.bf16.msra.mxu0 %v4048_v37  ;;  %2728 = vmatpush1.bf16.msra.mxu1 %v4050_v38  ;;  %v191_v37 = vld [vmem:[#allocation2 + $0x4a8] sm:$0xff] }
  0x4d   :  { %2688 = vmatprep.subr.bf16.mxu0 %v4001_v39  ;;  %2729 = vmatprep.subr.bf16.mxu1 %v4003_v40  ;;  %v215_v38 = vld [vmem:[#allocation2 + $0x568] sm:$0xff]  ;;  %v4052_v39 = vcombine.low %v238_v27, %v262_v28  ;;  %v4054_v40 = vcombine.low %v239_v29, %v263_v30  ;;  %v4105_v27 = vcombine.high %v288_v21, %v312_v22  ;;  %v240_v29 = vld [vmem:[#allocation2 + $0x630] sm:$0xff] }
  0x4e   :  { %v4007_v42 = vcombine.high %v191_v37, %v215_v38  ;;  %v264_v30 = vld [vmem:[#allocation2 + $0x6f0] sm:$0xff] }
  0x50   :  { %2689 = vmatpush1.bf16.msra.mxu0 %v4000_v45  ;;  %2730 = vmatpush1.bf16.msra.mxu1 %v4002_v46  ;;  %v143_v45 = vld [vmem:[#allocation2 + $0x328] sm:$0xff] }
  0x51   :  { %2690 = vmatprep.subr.bf16.mxu0 %v3953_v47  ;;  %2731 = vmatprep.subr.bf16.mxu1 %v3955_v48  ;;  %v167_v46 = vld [vmem:[#allocation2 + $0x3e8] sm:$0xff]  ;;  %v4004_v47 = vcombine.low %v190_v35, %v214_v36  ;;  %v4006_v48 = vcombine.low %v191_v37, %v215_v38  ;;  %v4057_v35 = vcombine.high %v240_v29, %v264_v30  ;;  %v192_v37 = vld [vmem:[#allocation2 + $0x4b0] sm:$0xff] }
  0x52   :  { %v3959_v50 = vcombine.high %v143_v45, %v167_v46  ;;  %v216_v38 = vld [vmem:[#allocation2 + $0x570] sm:$0xff] }
  0x54   :  { %2691 = vmatpush1.bf16.msra.mxu0 %v3952_v53  ;;  %2732 = vmatpush1.bf16.msra.mxu1 %v3954_v54  ;;  %v95_v53 = vld [vmem:[#allocation2 + $0x1a8] sm:$0xff] }
  0x55   :  { %2692 = vmatprep.subr.bf16.mxu0 %v3905_v55  ;;  %2733 = vmatprep.subr.bf16.mxu1 %v3907_v56  ;;  %v119_v54 = vld [vmem:[#allocation2 + $0x268] sm:$0xff]  ;;  %v3956_v55 = vcombine.low %v142_v43, %v166_v44  ;;  %v3958_v56 = vcombine.low %v143_v45, %v167_v46  ;;  %v4009_v43 = vcombine.high %v192_v37, %v216_v38  ;;  %v144_v45 = vld [vmem:[#allocation2 + $0x330] sm:$0xff] }
  0x56   :  { %v3911_v58 = vcombine.high %v95_v53, %v119_v54  ;;  %v168_v46 = vld [vmem:[#allocation2 + $0x3f0] sm:$0xff] }
  0x58   :  { %2693 = vmatpush1.bf16.msra.mxu0 %v3904_v61  ;;  %2734 = vmatpush1.bf16.msra.mxu1 %v3906_v62  ;;  %v47_v61 = vld [vmem:[#allocation2 + $0x28] sm:$0xff] }
  0x59   :  { %2694 = vmatprep.subr.bf16.mxu0 %v3857_v63  ;;  %2735 = vmatprep.subr.bf16.mxu1 %v3859_v1  ;;  %v71_v62 = vld [vmem:[#allocation2 + $0xe8] sm:$0xff]  ;;  %v3908_v63 = vcombine.low %v94_v51, %v118_v52  ;;  %v3910_v1 = vcombine.low %v95_v53, %v119_v54  ;;  %v3961_v51 = vcombine.high %v144_v45, %v168_v46  ;;  %v96_v53 = vld [vmem:[#allocation2 + $0x1b0] sm:$0xff] }
  0x5a   :  { %v3863_v3 = vcombine.high %v47_v61, %v71_v62  ;;  %v120_v54 = vld [vmem:[#allocation2 + $0x270] sm:$0xff] }
  0x5c   :  { %2695 = vmatpush1.bf16.msra.mxu0 %v3856_v6  ;;  %2736 = vmatpush1.bf16.msra.mxu1 %v3858_v7  ;;  %v385_v6 = vld [vmem:[#allocation2 + $0xab8] sm:$0xff] }
  0x5d   :  { %2762 = vmatprep.subr.bf16.mxu0 %v4197_v8  ;;  %2803 = vmatprep.subr.bf16.mxu1 %v4199_v9  ;;  %v409_v7 = vld [vmem:[#allocation2 + $0xb78] sm:$0xff]  ;;  %v3860_v8 = vcombine.low %v46_v59, %v70_v60  ;;  %v3862_v9 = vcombine.low %v47_v61, %v71_v62  ;;  %v3913_v59 = vcombine.high %v96_v53, %v120_v54  ;;  %v48_v61 = vld [vmem:[#allocation2 + $0x30] sm:$0xff] }
  0x5e   :  { %v4203_v11 = vcombine.high %v385_v6, %v409_v7  ;;  %v72_v62 = vld [vmem:[#allocation2 + $0xf0] sm:$0xff] }
  0x5f   :  { %2713 = vmatmul.mubr.bf16.vlgmr.msra.gmra.mxu0 %v4371_v12  ;;  %2754 = vmatmul.mubr.bf16.vlgmr.msra.gmra.mxu1 %v4371_v12 }
  0x60   :  { %2763 = vmatpush1.bf16.msra.mxu0 %v4196_v15  ;;  %2804 = vmatpush1.bf16.msra.mxu1 %v4198_v16  ;;  %v337_v15 = vld [vmem:[#allocation2 + $0x938] sm:$0xff] }
  0x61   :  { %2764 = vmatprep.subr.bf16.mxu0 %v4149_v17  ;;  %2805 = vmatprep.subr.bf16.mxu1 %v4151_v18  ;;  %v361_v16 = vld [vmem:[#allocation2 + $0x9f8] sm:$0xff]  ;;  %v4200_v17 = vcombine.low %v384_v4, %v408_v5  ;;  %v4202_v18 = vcombine.low %v385_v6, %v409_v7  ;;  %v3865_v4 = vcombine.high %v48_v61, %v72_v62  ;;  %v386_v6 = vld [vmem:[#allocation2 + $0xac0] sm:$0xff] }
  0x62   :  { %2794 = vmatprep.mubr.bf16.mxu0 %v4339_v0  ;;  %2835 = vmatprep.mubr.bf16.mxu1 %v4339_v0  ;;  %v4155_v20 = vcombine.high %v337_v15, %v361_v16  ;;  %v410_v7 = vld [vmem:[#allocation2 + $0xb80] sm:$0xff] }
  0x64   :  { %2765 = vmatpush1.bf16.msra.mxu0 %v4148_v23  ;;  %2806 = vmatpush1.bf16.msra.mxu1 %v4150_v24  ;;  %v289_v23 = vld [vmem:[#allocation2 + $0x7b8] sm:$0xff] }
  0x65   :  { %2766 = vmatprep.subr.bf16.mxu0 %v4101_v25  ;;  %2807 = vmatprep.subr.bf16.mxu1 %v4103_v26  ;;  %v313_v24 = vld [vmem:[#allocation2 + $0x878] sm:$0xff]  ;;  %v4152_v25 = vcombine.low %v336_v13, %v360_v14  ;;  %v4154_v26 = vcombine.low %v337_v15, %v361_v16  ;;  %v4205_v13 = vcombine.high %v386_v6, %v410_v7  ;;  %v338_v15 = vld [vmem:[#allocation2 + $0x940] sm:$0xff] }
  0x66   :  { %v4107_v28 = vcombine.high %v289_v23, %v313_v24  ;;  %v362_v16 = vld [vmem:[#allocation2 + $0xa00] sm:$0xff] }
  0x68   :  { %2767 = vmatpush1.bf16.msra.mxu0 %v4100_v31  ;;  %2808 = vmatpush1.bf16.msra.mxu1 %v4102_v32  ;;  %v241_v31 = vld [vmem:[#allocation2 + $0x638] sm:$0xff] }
  0x69   :  { %2768 = vmatprep.subr.bf16.mxu0 %v4053_v33  ;;  %2809 = vmatprep.subr.bf16.mxu1 %v4055_v34  ;;  %v265_v32 = vld [vmem:[#allocation2 + $0x6f8] sm:$0xff]  ;;  %v4104_v33 = vcombine.low %v288_v21, %v312_v22  ;;  %v4106_v34 = vcombine.low %v289_v23, %v313_v24  ;;  %v4157_v21 = vcombine.high %v338_v15, %v362_v16  ;;  %v290_v23 = vld [vmem:[#allocation2 + $0x7c0] sm:$0xff] }
  0x6a   :  { %v4059_v36 = vcombine.high %v241_v31, %v265_v32  ;;  %v314_v24 = vld [vmem:[#allocation2 + $0x880] sm:$0xff] }
  0x6c   :  { %2769 = vmatpush1.bf16.msra.mxu0 %v4052_v39  ;;  %2810 = vmatpush1.bf16.msra.mxu1 %v4054_v40  ;;  %v193_v39 = vld [vmem:[#allocation2 + $0x4b8] sm:$0xff] }
  0x6d   :  { %2770 = vmatprep.subr.bf16.mxu0 %v4005_v41  ;;  %2811 = vmatprep.subr.bf16.mxu1 %v4007_v42  ;;  %v217_v40 = vld [vmem:[#allocation2 + $0x578] sm:$0xff]  ;;  %v4056_v41 = vcombine.low %v240_v29, %v264_v30  ;;  %v4058_v42 = vcombine.low %v241_v31, %v265_v32  ;;  %v4109_v29 = vcombine.high %v290_v23, %v314_v24  ;;  %v242_v31 = vld [vmem:[#allocation2 + $0x640] sm:$0xff] }
  0x6e   :  { %v4011_v44 = vcombine.high %v193_v39, %v217_v40  ;;  %v266_v32 = vld [vmem:[#allocation2 + $0x700] sm:$0xff] }
  0x70   :  { %2771 = vmatpush1.bf16.msra.mxu0 %v4004_v47  ;;  %2812 = vmatpush1.bf16.msra.mxu1 %v4006_v48  ;;  %v145_v47 = vld [vmem:[#allocation2 + $0x338] sm:$0xff] }
  0x71   :  { %2772 = vmatprep.subr.bf16.mxu0 %v3957_v49  ;;  %2813 = vmatprep.subr.bf16.mxu1 %v3959_v50  ;;  %v169_v48 = vld [vmem:[#allocation2 + $0x3f8] sm:$0xff]  ;;  %v4008_v49 = vcombine.low %v192_v37, %v216_v38  ;;  %v4010_v50 = vcombine.low %v193_v39, %v217_v40  ;;  %v4061_v37 = vcombine.high %v242_v31, %v266_v32  ;;  %v194_v39 = vld [vmem:[#allocation2 + $0x4c0] sm:$0xff] }
  0x72   :  { %v3963_v52 = vcombine.high %v145_v47, %v169_v48  ;;  %v218_v40 = vld [vmem:[#allocation2 + $0x580] sm:$0xff] }
  0x74   :  { %2773 = vmatpush1.bf16.msra.mxu0 %v3956_v55  ;;  %2814 = vmatpush1.bf16.msra.mxu1 %v3958_v56  ;;  %v97_v55 = vld [vmem:[#allocation2 + $0x1b8] sm:$0xff] }
  0x75   :  { %2774 = vmatprep.subr.bf16.mxu0 %v3909_v57  ;;  %2815 = vmatprep.subr.bf16.mxu1 %v3911_v58  ;;  %v121_v56 = vld [vmem:[#allocation2 + $0x278] sm:$0xff]  ;;  %v3960_v57 = vcombine.low %v144_v45, %v168_v46  ;;  %v3962_v58 = vcombine.low %v145_v47, %v169_v48  ;;  %v4013_v45 = vcombine.high %v194_v39, %v218_v40  ;;  %v146_v47 = vld [vmem:[#allocation2 + $0x340] sm:$0xff] }
  0x76   :  { %v3915_v60 = vcombine.high %v97_v55, %v121_v56  ;;  %v170_v48 = vld [vmem:[#allocation2 + $0x400] sm:$0xff] }
  0x78   :  { %2775 = vmatpush1.bf16.msra.mxu0 %v3908_v63  ;;  %2816 = vmatpush1.bf16.msra.mxu1 %v3910_v1  ;;  %v49_v63 = vld [vmem:[#allocation2 + $0x38] sm:$0xff] }
  0x79   :  { %2776 = vmatprep.subr.bf16.mxu0 %v3861_v2  ;;  %2817 = vmatprep.subr.bf16.mxu1 %v3863_v3  ;;  %v73_v1 = vld [vmem:[#allocation2 + $0xf8] sm:$0xff]  ;;  %v3912_v2 = vcombine.low %v96_v53, %v120_v54  ;;  %v3914_v3 = vcombine.low %v97_v55, %v121_v56  ;;  %v3965_v53 = vcombine.high %v146_v47, %v170_v48  ;;  %v98_v55 = vld [vmem:[#allocation2 + $0x1c0] sm:$0xff] }
  0x7a   :  { %v3867_v5 = vcombine.high %v49_v63, %v73_v1  ;;  %v122_v56 = vld [vmem:[#allocation2 + $0x280] sm:$0xff] }
  0x7c   :  { %2777 = vmatpush1.bf16.msra.mxu0 %v3860_v8  ;;  %2818 = vmatpush1.bf16.msra.mxu1 %v3862_v9  ;;  %v387_v8 = vld [vmem:[#allocation2 + $0xac8] sm:$0xff] }
  0x7d   :  { %2844 = vmatprep.subr.bf16.mxu0 %v4201_v10  ;;  %2885 = vmatprep.subr.bf16.mxu1 %v4203_v11  ;;  %v411_v9 = vld [vmem:[#allocation2 + $0xb88] sm:$0xff]  ;;  %v3864_v10 = vcombine.low %v48_v61, %v72_v62  ;;  %v3866_v11 = vcombine.low %v49_v63, %v73_v1  ;;  %v3917_v61 = vcombine.high %v98_v55, %v122_v56  ;;  %v50_v63 = vld [vmem:[#allocation2 + $0x40] sm:$0xff] }
  0x7e   :  { %v4207_v14 = vcombine.high %v387_v8, %v411_v9  ;;  %v74_v1 = vld [vmem:[#allocation2 + $0x100] sm:$0xff] }
  0x7f   :  { %2795 = vmatmul.mubr.bf16.vlgmr.msra.gmra.mxu0 %v4371_v12  ;;  %2836 = vmatmul.mubr.bf16.vlgmr.msra.gmra.mxu1 %v4371_v12 }
  0x80   :  { %2845 = vmatpush1.bf16.msra.mxu0 %v4200_v17  ;;  %2886 = vmatpush1.bf16.msra.mxu1 %v4202_v18  ;;  %v339_v17 = vld [vmem:[#allocation2 + $0x948] sm:$0xff] }
  0x81   :  { %2846 = vmatprep.subr.bf16.mxu0 %v4153_v19  ;;  %2887 = vmatprep.subr.bf16.mxu1 %v4155_v20  ;;  %v363_v18 = vld [vmem:[#allocation2 + $0xa08] sm:$0xff]  ;;  %v4204_v19 = vcombine.low %v386_v6, %v410_v7  ;;  %v4206_v20 = vcombine.low %v387_v8, %v411_v9  ;;  %v3869_v6 = vcombine.high %v50_v63, %v74_v1  ;;  %v388_v8 = vld [vmem:[#allocation2 + $0xad0] sm:$0xff] }
  0x82   :  { %2876 = vmatprep.mubr.bf16.mxu0 %v4339_v0  ;;  %2917 = vmatprep.mubr.bf16.mxu1 %v4339_v0  ;;  %v4159_v22 = vcombine.high %v339_v17, %v363_v18  ;;  %v412_v9 = vld [vmem:[#allocation2 + $0xb90] sm:$0xff] }
  0x84   :  { %2847 = vmatpush1.bf16.msra.mxu0 %v4152_v25  ;;  %2888 = vmatpush1.bf16.msra.mxu1 %v4154_v26  ;;  %v291_v25 = vld [vmem:[#allocation2 + $0x7c8] sm:$0xff] }
  0x85   :  { %2848 = vmatprep.subr.bf16.mxu0 %v4105_v27  ;;  %2889 = vmatprep.subr.bf16.mxu1 %v4107_v28  ;;  %v315_v26 = vld [vmem:[#allocation2 + $0x888] sm:$0xff]  ;;  %v4156_v27 = vcombine.low %v338_v15, %v362_v16  ;;  %v4158_v28 = vcombine.low %v339_v17, %v363_v18  ;;  %v4209_v15 = vcombine.high %v388_v8, %v412_v9  ;;  %v340_v17 = vld [vmem:[#allocation2 + $0x950] sm:$0xff] }
  0x86   :  { %v4111_v30 = vcombine.high %v291_v25, %v315_v26  ;;  %v364_v18 = vld [vmem:[#allocation2 + $0xa10] sm:$0xff] }
  0x88   :  { %2849 = vmatpush1.bf16.msra.mxu0 %v4104_v33  ;;  %2890 = vmatpush1.bf16.msra.mxu1 %v4106_v34  ;;  %v243_v33 = vld [vmem:[#allocation2 + $0x648] sm:$0xff] }
  0x89   :  { %2850 = vmatprep.subr.bf16.mxu0 %v4057_v35  ;;  %2891 = vmatprep.subr.bf16.mxu1 %v4059_v36  ;;  %v267_v34 = vld [vmem:[#allocation2 + $0x708] sm:$0xff]  ;;  %v4108_v35 = vcombine.low %v290_v23, %v314_v24  ;;  %v4110_v36 = vcombine.low %v291_v25, %v315_v26  ;;  %v4161_v23 = vcombine.high %v340_v17, %v364_v18  ;;  %v292_v25 = vld [vmem:[#allocation2 + $0x7d0] sm:$0xff] }
  0x8a   :  { %v4063_v38 = vcombine.high %v243_v33, %v267_v34  ;;  %v316_v26 = vld [vmem:[#allocation2 + $0x890] sm:$0xff] }
  0x8c   :  { %2851 = vmatpush1.bf16.msra.mxu0 %v4056_v41  ;;  %2892 = vmatpush1.bf16.msra.mxu1 %v4058_v42  ;;  %v195_v41 = vld [vmem:[#allocation2 + $0x4c8] sm:$0xff] }
  0x8d   :  { %2852 = vmatprep.subr.bf16.mxu0 %v4009_v43  ;;  %2893 = vmatprep.subr.bf16.mxu1 %v4011_v44  ;;  %v219_v42 = vld [vmem:[#allocation2 + $0x588] sm:$0xff]  ;;  %v4060_v43 = vcombine.low %v242_v31, %v266_v32  ;;  %v4062_v44 = vcombine.low %v243_v33, %v267_v34  ;;  %v4113_v31 = vcombine.high %v292_v25, %v316_v26  ;;  %v244_v33 = vld [vmem:[#allocation2 + $0x650] sm:$0xff] }
  0x8e   :  { %v4015_v46 = vcombine.high %v195_v41, %v219_v42  ;;  %v268_v34 = vld [vmem:[#allocation2 + $0x710] sm:$0xff] }
  0x90   :  { %2853 = vmatpush1.bf16.msra.mxu0 %v4008_v49  ;;  %2894 = vmatpush1.bf16.msra.mxu1 %v4010_v50  ;;  %v147_v49 = vld [vmem:[#allocation2 + $0x348] sm:$0xff] }
  0x91   :  { %2854 = vmatprep.subr.bf16.mxu0 %v3961_v51  ;;  %2895 = vmatprep.subr.bf16.mxu1 %v3963_v52  ;;  %v171_v50 = vld [vmem:[#allocation2 + $0x408] sm:$0xff]  ;;  %v4012_v51 = vcombine.low %v194_v39, %v218_v40  ;;  %v4014_v52 = vcombine.low %v195_v41, %v219_v42  ;;  %v4065_v39 = vcombine.high %v244_v33, %v268_v34  ;;  %v196_v41 = vld [vmem:[#allocation2 + $0x4d0] sm:$0xff] }
  0x92   :  { %v3967_v54 = vcombine.high %v147_v49, %v171_v50  ;;  %v220_v42 = vld [vmem:[#allocation2 + $0x590] sm:$0xff] }
  0x94   :  { %2855 = vmatpush1.bf16.msra.mxu0 %v3960_v57  ;;  %2896 = vmatpush1.bf16.msra.mxu1 %v3962_v58  ;;  %v99_v57 = vld [vmem:[#allocation2 + $0x1c8] sm:$0xff] }
  0x95   :  { %2856 = vmatprep.subr.bf16.mxu0 %v3913_v59  ;;  %2897 = vmatprep.subr.bf16.mxu1 %v3915_v60  ;;  %v123_v58 = vld [vmem:[#allocation2 + $0x288] sm:$0xff]  ;;  %v3964_v59 = vcombine.low %v146_v47, %v170_v48  ;;  %v3966_v60 = vcombine.low %v147_v49, %v171_v50  ;;  %v4017_v47 = vcombine.high %v196_v41, %v220_v42  ;;  %v148_v49 = vld [vmem:[#allocation2 + $0x350] sm:$0xff] }
  0x96   :  { %v3919_v62 = vcombine.high %v99_v57, %v123_v58  ;;  %v172_v50 = vld [vmem:[#allocation2 + $0x410] sm:$0xff] }
  0x98   :  { %2857 = vmatpush1.bf16.msra.mxu0 %v3912_v2  ;;  %2898 = vmatpush1.bf16.msra.mxu1 %v3914_v3  ;;  %v51_v2 = vld [vmem:[#allocation2 + $0x48] sm:$0xff] }
  0x99   :  { %2858 = vmatprep.subr.bf16.mxu0 %v3865_v4  ;;  %2899 = vmatprep.subr.bf16.mxu1 %v3867_v5  ;;  %v75_v3 = vld [vmem:[#allocation2 + $0x108] sm:$0xff]  ;;  %v3916_v4 = vcombine.low %v98_v55, %v122_v56  ;;  %v3918_v5 = vcombine.low %v99_v57, %v123_v58  ;;  %v3969_v55 = vcombine.high %v148_v49, %v172_v50  ;;  %v100_v57 = vld [vmem:[#allocation2 + $0x1d0] sm:$0xff] }
  0x9a   :  { %v3871_v7 = vcombine.high %v51_v2, %v75_v3  ;;  %v124_v58 = vld [vmem:[#allocation2 + $0x290] sm:$0xff] }
  0x9c   :  { %2859 = vmatpush1.bf16.msra.mxu0 %v3864_v10  ;;  %2900 = vmatpush1.bf16.msra.mxu1 %v3866_v11  ;;  %v389_v10 = vld [vmem:[#allocation2 + $0xad8] sm:$0xff] }
  0x9d   :  { %2926 = vmatprep.subr.bf16.mxu0 %v4205_v13  ;;  %2967 = vmatprep.subr.bf16.mxu1 %v4207_v14  ;;  %v413_v11 = vld [vmem:[#allocation2 + $0xb98] sm:$0xff]  ;;  %v3868_v13 = vcombine.low %v50_v63, %v74_v1  ;;  %v3870_v14 = vcombine.low %v51_v2, %v75_v3  ;;  %v3921_v63 = vcombine.high %v100_v57, %v124_v58  ;;  %v52_v2 = vld [vmem:[#allocation2 + $0x50] sm:$0xff] }
  0x9e   :  { %v4211_v16 = vcombine.high %v389_v10, %v413_v11  ;;  %v76_v3 = vld [vmem:[#allocation2 + $0x110] sm:$0xff] }
  0x9f   :  { %2877 = vmatmul.mubr.bf16.vlgmr.msra.gmra.mxu0 %v4371_v12  ;;  %2918 = vmatmul.mubr.bf16.vlgmr.msra.gmra.mxu1 %v4371_v12 }
  0xa0   :  { %2927 = vmatpush1.bf16.msra.mxu0 %v4204_v19  ;;  %2968 = vmatpush1.bf16.msra.mxu1 %v4206_v20  ;;  %v341_v19 = vld [vmem:[#allocation2 + $0x958] sm:$0xff] }
  0xa1   :  { %2928 = vmatprep.subr.bf16.mxu0 %v4157_v21  ;;  %2969 = vmatprep.subr.bf16.mxu1 %v4159_v22  ;;  %v365_v20 = vld [vmem:[#allocation2 + $0xa18] sm:$0xff]  ;;  %v4208_v21 = vcombine.low %v388_v8, %v412_v9  ;;  %v4210_v22 = vcombine.low %v389_v10, %v413_v11  ;;  %v3873_v8 = vcombine.high %v52_v2, %v76_v3  ;;  %v390_v10 = vld [vmem:[#allocation2 + $0xae0] sm:$0xff] }
  0xa2   :  { %2958 = vmatprep.mubr.bf16.mxu0 %v4339_v0  ;;  %2999 = vmatprep.mubr.bf16.mxu1 %v4339_v0  ;;  %v4163_v24 = vcombine.high %v341_v19, %v365_v20  ;;  %v414_v11 = vld [vmem:[#allocation2 + $0xba0] sm:$0xff] }
  0xa4   :  { %2929 = vmatpush1.bf16.msra.mxu0 %v4156_v27  ;;  %2970 = vmatpush1.bf16.msra.mxu1 %v4158_v28  ;;  %v293_v27 = vld [vmem:[#allocation2 + $0x7d8] sm:$0xff] }
  0xa5   :  { %2930 = vmatprep.subr.bf16.mxu0 %v4109_v29  ;;  %2971 = vmatprep.subr.bf16.mxu1 %v4111_v30  ;;  %v317_v28 = vld [vmem:[#allocation2 + $0x898] sm:$0xff]  ;;  %v4160_v29 = vcombine.low %v340_v17, %v364_v18  ;;  %v4162_v30 = vcombine.low %v341_v19, %v365_v20  ;;  %v4213_v17 = vcombine.high %v390_v10, %v414_v11  ;;  %v342_v19 = vld [vmem:[#allocation2 + $0x960] sm:$0xff] }
  0xa6   :  { %v4115_v32 = vcombine.high %v293_v27, %v317_v28  ;;  %v366_v20 = vld [vmem:[#allocation2 + $0xa20] sm:$0xff] }
  0xa8   :  { %2931 = vmatpush1.bf16.msra.mxu0 %v4108_v35  ;;  %2972 = vmatpush1.bf16.msra.mxu1 %v4110_v36  ;;  %v245_v35 = vld [vmem:[#allocation2 + $0x658] sm:$0xff] }
  0xa9   :  { %2932 = vmatprep.subr.bf16.mxu0 %v4061_v37  ;;  %2973 = vmatprep.subr.bf16.mxu1 %v4063_v38  ;;  %v269_v36 = vld [vmem:[#allocation2 + $0x718] sm:$0xff]  ;;  %v4112_v37 = vcombine.low %v292_v25, %v316_v26  ;;  %v4114_v38 = vcombine.low %v293_v27, %v317_v28  ;;  %v4165_v25 = vcombine.high %v342_v19, %v366_v20  ;;  %v294_v27 = vld [vmem:[#allocation2 + $0x7e0] sm:$0xff] }
  0xaa   :  { %v4067_v40 = vcombine.high %v245_v35, %v269_v36  ;;  %v318_v28 = vld [vmem:[#allocation2 + $0x8a0] sm:$0xff] }
  0xac   :  { %2933 = vmatpush1.bf16.msra.mxu0 %v4060_v43  ;;  %2974 = vmatpush1.bf16.msra.mxu1 %v4062_v44  ;;  %v197_v43 = vld [vmem:[#allocation2 + $0x4d8] sm:$0xff] }
  0xad   :  { %2934 = vmatprep.subr.bf16.mxu0 %v4013_v45  ;;  %2975 = vmatprep.subr.bf16.mxu1 %v4015_v46  ;;  %v221_v44 = vld [vmem:[#allocation2 + $0x598] sm:$0xff]  ;;  %v4064_v45 = vcombine.low %v244_v33, %v268_v34  ;;  %v4066_v46 = vcombine.low %v245_v35, %v269_v36  ;;  %v4117_v34 = vcombine.high %v294_v27, %v318_v28  ;;  %v246_v36 = vld [vmem:[#allocation2 + $0x660] sm:$0xff] }
  0xae   :  { %v4019_v48 = vcombine.high %v197_v43, %v221_v44 }
  0xb0   :  { %2935 = vmatpush1.bf16.msra.mxu0 %v4012_v51  ;;  %2976 = vmatpush1.bf16.msra.mxu1 %v4014_v52  ;;  %v149_v51 = vld [vmem:[#allocation2 + $0x358] sm:$0xff] }
  0xb1   :  { %2936 = vmatprep.subr.bf16.mxu0 %v3965_v53  ;;  %2977 = vmatprep.subr.bf16.mxu1 %v3967_v54  ;;  %v173_v52 = vld [vmem:[#allocation2 + $0x418] sm:$0xff]  ;;  %v4016_v53 = vcombine.low %v196_v41, %v220_v42  ;;  %v4018_v54 = vcombine.low %v197_v43, %v221_v44  ;;  %v198_v43 = vld [vmem:[#allocation2 + $0x4e0] sm:$0xff] }
  0xb2   :  { %v3971_v56 = vcombine.high %v149_v51, %v173_v52  ;;  %v222_v44 = vld [vmem:[#allocation2 + $0x5a0] sm:$0xff] }
  0xb4   :  { %2937 = vmatpush1.bf16.msra.mxu0 %v3964_v59  ;;  %2978 = vmatpush1.bf16.msra.mxu1 %v3966_v60  ;;  %v101_v59 = vld [vmem:[#allocation2 + $0x1d8] sm:$0xff] }
  0xb5   :  { %2938 = vmatprep.subr.bf16.mxu0 %v3917_v61  ;;  %2979 = vmatprep.subr.bf16.mxu1 %v3919_v62  ;;  %v125_v60 = vld [vmem:[#allocation2 + $0x298] sm:$0xff]  ;;  %v3968_v61 = vcombine.low %v148_v49, %v172_v50  ;;  %v3970_v62 = vcombine.low %v149_v51, %v173_v52  ;;  %v4021_v49 = vcombine.high %v198_v43, %v222_v44  ;;  %v150_v51 = vld [vmem:[#allocation2 + $0x360] sm:$0xff] }
  0xb6   :  { %v3923_v1 = vcombine.high %v101_v59, %v125_v60  ;;  %v174_v52 = vld [vmem:[#allocation2 + $0x420] sm:$0xff] }
  0xb8   :  { %2939 = vmatpush1.bf16.msra.mxu0 %v3916_v4  ;;  %2980 = vmatpush1.bf16.msra.mxu1 %v3918_v5  ;;  %v53_v4 = vld [vmem:[#allocation2 + $0x58] sm:$0xff] }
  0xb9   :  { %2940 = vmatprep.subr.bf16.mxu0 %v3869_v6  ;;  %2981 = vmatprep.subr.bf16.mxu1 %v3871_v7  ;;  %v77_v5 = vld [vmem:[#allocation2 + $0x118] sm:$0xff]  ;;  %v3920_v6 = vcombine.low %v100_v57, %v124_v58  ;;  %v3922_v7 = vcombine.low %v101_v59, %v125_v60  ;;  %v3973_v57 = vcombine.high %v150_v51, %v174_v52  ;;  %v102_v59 = vld [vmem:[#allocation2 + $0x1e0] sm:$0xff] }
  0xba   :  { %v3875_v9 = vcombine.high %v53_v4, %v77_v5  ;;  %v126_v60 = vld [vmem:[#allocation2 + $0x2a0] sm:$0xff] }
  0xbc   :  { %2941 = vmatpush1.bf16.msra.mxu0 %v3868_v13  ;;  %2982 = vmatpush1.bf16.msra.mxu1 %v3870_v14  ;;  %v391_v13 = vld [vmem:[#allocation2 + $0xae8] sm:$0xff] }
  0xbd   :  { %3008 = vmatprep.subr.bf16.mxu0 %v4209_v15  ;;  %3049 = vmatprep.subr.bf16.mxu1 %v4211_v16  ;;  %v415_v14 = vld [vmem:[#allocation2 + $0xba8] sm:$0xff]  ;;  %v3872_v15 = vcombine.low %v52_v2, %v76_v3  ;;  %v3874_v16 = vcombine.low %v53_v4, %v77_v5  ;;  %v3925_v3 = vcombine.high %v102_v59, %v126_v60  ;;  %v54_v5 = vld [vmem:[#allocation2 + $0x60] sm:$0xff] }
  0xbe   :  { %v4215_v18 = vcombine.high %v391_v13, %v415_v14 }
  0xbf   :  { %2959 = vmatmul.mubr.bf16.vlgmr.msra.gmra.mxu0 %v4371_v12  ;;  %3000 = vmatmul.mubr.bf16.vlgmr.msra.gmra.mxu1 %v4371_v12 }
  0xc0   :  { %3009 = vmatpush1.bf16.msra.mxu0 %v4208_v21  ;;  %3050 = vmatpush1.bf16.msra.mxu1 %v4210_v22  ;;  %v343_v21 = vld [vmem:[#allocation2 + $0x968] sm:$0xff] }
  0xc1   :  { %3010 = vmatprep.subr.bf16.mxu0 %v4161_v23  ;;  %3051 = vmatprep.subr.bf16.mxu1 %v4163_v24  ;;  %v367_v22 = vld [vmem:[#allocation2 + $0xa28] sm:$0xff]  ;;  %v4212_v23 = vcombine.low %v390_v10, %v414_v11  ;;  %v4214_v24 = vcombine.low %v391_v13, %v415_v14 }
  0xc2   :  { %3040 = vmatprep.mubr.bf16.mxu0 %v4339_v0  ;;  %3081 = vmatprep.mubr.bf16.mxu1 %v4339_v0  ;;  %v4167_v26 = vcombine.high %v343_v21, %v367_v22  ;;  %v4166_v33 = vcombine.low %v343_v21, %v367_v22  ;;  %v4407_v22 = vld [vmem:[#allocation4] sm:$0xff] }
  0xc4   :  { %3011 = vmatpush1.bf16.msra.mxu0 %v4160_v29  ;;  %3052 = vmatpush1.bf16.msra.mxu1 %v4162_v30  ;;  %v295_v29 = vld [vmem:[#allocation2 + $0x7e8] sm:$0xff] }
  0xc5   :  { %3012 = vmatprep.subr.bf16.mxu0 %v4113_v31  ;;  %3053 = vmatprep.subr.bf16.mxu1 %v4115_v32  ;;  %v319_v30 = vld [vmem:[#allocation2 + $0x8a8] sm:$0xff]  ;;  %v4397_v31 = vld [vmem:[%s4605_s0] sm:$0xf]  ;;  %v4164_v32 = vcombine.low %v342_v19, %v366_v20 }
  0xc6   :  { %v4119_v35 = vcombine.high %v295_v29, %v319_v30 }
  0xc8   :  { %3013 = vmatpush1.bf16.msra.mxu0 %v4112_v37  ;;  %3054 = vmatpush1.bf16.msra.mxu1 %v4114_v38  ;;  %v270_v37 = vld [vmem:[#allocation2 + $0x720] sm:$0xff]  ;;  %v271_v38 = vld [vmem:[#allocation2 + $0x728] sm:$0xff] }
  0xc9   :  { %3014 = vmatprep.subr.bf16.mxu0 %v4065_v39  ;;  %3055 = vmatprep.subr.bf16.mxu1 %v4067_v40  ;;  %v4116_v39 = vcombine.low %v294_v27, %v318_v28  ;;  %v4118_v40 = vcombine.low %v295_v29, %v319_v30  ;;  %v4069_v41 = vcombine.high %v246_v36, %v270_v37  ;;  %v344_v27 = vld [vmem:[#allocation2 + $0x970] sm:$0xff]  ;;  %v345_v30 = vld [vmem:[#allocation2 + $0x978] sm:$0xff] }
  0xca   :  { %v368_v28 = vld [vmem:[#allocation2 + $0xa30] sm:$0xff] }
  0xcc   :  { %3015 = vmatpush1.bf16.msra.mxu0 %v4064_v45  ;;  %3056 = vmatpush1.bf16.msra.mxu1 %v4066_v46  ;;  %v199_v45 = vld [vmem:[#allocation2 + $0x4e8] sm:$0xff] }
  0xcd   :  { %3016 = vmatprep.subr.bf16.mxu0 %v4017_v47  ;;  %3057 = vmatprep.subr.bf16.mxu1 %v4019_v48  ;;  %v223_v46 = vld [vmem:[#allocation2 + $0x5a8] sm:$0xff]  ;;  %v4068_v47 = vcombine.low %v246_v36, %v270_v37  ;;  %v4169_v37 = vcombine.high %v344_v27, %v368_v28 }
  0xce   :  { %v4023_v50 = vcombine.high %v199_v45, %v223_v46 }
  0xd0   :  { %3017 = vmatpush1.bf16.msra.mxu0 %v4016_v53  ;;  %3058 = vmatpush1.bf16.msra.mxu1 %v4018_v54  ;;  %v151_v53 = vld [vmem:[#allocation2 + $0x368] sm:$0xff] }
  0xd1   :  { %3018 = vmatprep.subr.bf16.mxu0 %v3969_v55  ;;  %3059 = vmatprep.subr.bf16.mxu1 %v3971_v56  ;;  %v175_v54 = vld [vmem:[#allocation2 + $0x428] sm:$0xff]  ;;  %v4020_v55 = vcombine.low %v198_v43, %v222_v44  ;;  %v4022_v56 = vcombine.low %v199_v45, %v223_v46  ;;  %v297_v43 = vld [vmem:[#allocation2 + $0x7f8] sm:$0xff] }
  0xd2   :  { %v3975_v58 = vcombine.high %v151_v53, %v175_v54  ;;  %v3974_v2 = vcombine.low %v151_v53, %v175_v54  ;;  %v321_v44 = vld [vmem:[#allocation2 + $0x8b8] sm:$0xff] }
  0xd4   :  { %3019 = vmatpush1.bf16.msra.mxu0 %v3968_v61  ;;  %3060 = vmatpush1.bf16.msra.mxu1 %v3970_v62  ;;  %v103_v61 = vld [vmem:[#allocation2 + $0x1e8] sm:$0xff] }
  0xd5   :  { %3020 = vmatprep.subr.bf16.mxu0 %v3921_v63  ;;  %3061 = vmatprep.subr.bf16.mxu1 %v3923_v1  ;;  %v127_v62 = vld [vmem:[#allocation2 + $0x2a8] sm:$0xff]  ;;  %v3972_v63 = vcombine.low %v150_v51, %v174_v52  ;;  %v438_v1 = vlaneseq }
  0xd6   :  { %v3927_v4 = vcombine.high %v103_v61, %v127_v62  ;;  %v3926_v11 = vcombine.low %v103_v61, %v127_v62  ;;  %v249_v61 = vld [vmem:[#allocation2 + $0x678] sm:$0xff] }
  0xd7   :  { %v4402_v10 = vshrl.u32 %v438_v1, 7  ;;  %v273_v62 = vld [vmem:[#allocation2 + $0x738] sm:$0xff] }
  0xd8   :  { %3021 = vmatpush1.bf16.msra.mxu0 %v3920_v6  ;;  %3062 = vmatpush1.bf16.msra.mxu1 %v3922_v7  ;;  %v78_v6 = vld [vmem:[#allocation2 + $0x120] sm:$0xff]  ;;  %v55_v7 = vld [vmem:[#allocation2 + $0x68] sm:$0xff] }
  0xd9   :  { %3022 = vmatprep.subr.bf16.mxu0 %v3873_v8  ;;  %3063 = vmatprep.subr.bf16.mxu1 %v3875_v9  ;;  %v79_v8 = vld [vmem:[#allocation2 + $0x128] sm:$0xff]  ;;  %v3924_v9 = vcombine.low %v102_v59, %v126_v60  ;;  %v3877_v13 = vcombine.high %v54_v5, %v78_v6  ;;  %v3876_v19 = vcombine.low %v54_v5, %v78_v6  ;;  %v4405_v20 = vsub.s32 0, %v4402_v10 }
  0xda   :  { %v3879_v14 = vcombine.high %v55_v7, %v79_v8  ;;  %v3878_v21 = vcombine.low %v55_v7, %v79_v8  ;;  %v4416_v29 = vsub.s32 3, %v4402_v10  ;;  %v4122_v5 = vcombine.low %v297_v43, %v321_v44 }
  0xdc   :  { %3023 = vmatpush1.bf16.msra.mxu0 %v3872_v15  ;;  %3064 = vmatpush1.bf16.msra.mxu1 %v3874_v16  ;;  %v392_v15 = vld [vmem:[#allocation2 + $0xaf0] sm:$0xff] }
  0xdd   :  { %3090 = vmatprep.subr.bf16.mxu0 %v4213_v17  ;;  %3131 = vmatprep.subr.bf16.mxu1 %v4215_v18  ;;  %v416_v16 = vld [vmem:[#allocation2 + $0xbb0] sm:$0xff]  ;;  %v393_v17 = vld [vmem:[#allocation2 + $0xaf8] sm:$0xff] }
  0xde   :  { %v417_v18 = vld [vmem:[#allocation2 + $0xbb8] sm:$0xff] }
  0xdf   :  { %3041 = vmatmul.mubr.bf16.vlgmr.msra.gmra.mxu0 %v4371_v12  ;;  %3082 = vmatmul.mubr.bf16.vlgmr.msra.gmra.mxu1 %v4397_v31  ;;  %v247_v12 = vld [vmem:[#allocation2 + $0x668] sm:$0xff]  ;;  %v4218_v36 = vcombine.low %v393_v17, %v417_v18 }
  0xe0   :  { %3091 = vmatpush1.bf16.msra.mxu0 %v4212_v23  ;;  %3132 = vmatpush1.bf16.msra.mxu1 %v4214_v24  ;;  %v4071_v42 = vcombine.high %v247_v12, %v271_v38  ;;  %v4070_v48 = vcombine.low %v247_v12, %v271_v38  ;;  %v4410_v23 = vsub.s32 2, %v4402_v10  ;;  %v4217_v24 = vcombine.high %v392_v15, %v416_v16 }
  0xe1   :  { %3092 = vmatprep.subr.bf16.mxu0 %v4165_v25  ;;  %3133 = vmatprep.subr.bf16.mxu1 %v4167_v26  ;;  %v4219_v25 = vcombine.high %v393_v17, %v417_v18  ;;  %v4413_v26 = vsub.s32 1, %v4402_v10  ;;  %v4074_v18 = vcombine.low %v249_v61, %v273_v62 }
  0xe2   :  { %3122 = vmatprep.mubr.bf16.mxu0 %v4339_v0  ;;  %3163 = vmatprep.mubr.bf16.mxu1 %v4339_v0 }
  0xe3   :  { %v445_v12 = vrot.slane %v4407_v22, %v4413_v26 }
  0xe4   :  { %3093 = vmatpush1.bf16.msra.mxu0 %v4164_v32  ;;  %3134 = vmatpush1.bf16.msra.mxu1 %v4166_v33  ;;  %v369_v32 = vld [vmem:[#allocation2 + $0xa38] sm:$0xff]  ;;  %v441_v33 = vrot.slane %v4407_v22, %v4405_v20 }
  0xe5   :  { %3094 = vmatprep.subr.bf16.mxu0 %v4117_v34  ;;  %3135 = vmatprep.subr.bf16.mxu1 %v4119_v35  ;;  %v4216_v34 = vcombine.low %v392_v15, %v416_v16  ;;  %v449_v35 = vrot.slane %v4407_v22, %v4410_v23  ;;  %v4171_v38 = vcombine.high %v345_v30, %v369_v32  ;;  %v201_v15 = vld [vmem:[#allocation2 + $0x4f8] sm:$0xff] }
  0xe6   :  { %v225_v16 = vld [vmem:[#allocation2 + $0x5b8] sm:$0xff] }
  0xe8   :  { %3095 = vmatpush1.bf16.msra.mxu0 %v4116_v39  ;;  %3136 = vmatpush1.bf16.msra.mxu1 %v4118_v40  ;;  %v296_v39 = vld [vmem:[#allocation2 + $0x7f0] sm:$0xff] }
  0xe9   :  { %3096 = vmatprep.subr.bf16.mxu0 %v4069_v41  ;;  %3137 = vmatprep.subr.bf16.mxu1 %v4071_v42  ;;  %v320_v40 = vld [vmem:[#allocation2 + $0x8b0] sm:$0xff]  ;;  %v453_v42 = vrot.slane %v4407_v22, %v4416_v29 }
  0xea   :  { %v4121_v51 = vcombine.high %v296_v39, %v320_v40 }
  0xec   :  { %3097 = vmatpush1.bf16.msra.mxu0 %v4068_v47  ;;  %3138 = vmatpush1.bf16.msra.mxu1 %v4070_v48  ;;  %v4168_v47 = vcombine.low %v344_v27, %v368_v28  ;;  %v153_v27 = vld [vmem:[#allocation2 + $0x378] sm:$0xff] }
  0xed   :  { %3098 = vmatprep.subr.bf16.mxu0 %v4021_v49  ;;  %3139 = vmatprep.subr.bf16.mxu1 %v4023_v50  ;;  %v4170_v50 = vcombine.low %v345_v30, %v369_v32  ;;  %v177_v28 = vld [vmem:[#allocation2 + $0x438] sm:$0xff]  ;;  %v4026_v32 = vcombine.low %v201_v15, %v225_v16 }
  0xf0   :  { %3099 = vmatpush1.bf16.msra.mxu0 %v4020_v55  ;;  %3140 = vmatpush1.bf16.msra.mxu1 %v4022_v56  ;;  %v4123_v55 = vcombine.high %v297_v43, %v321_v44  ;;  %v248_v56 = vld [vmem:[#allocation2 + $0x670] sm:$0xff]  ;;  %v57_v44 = vld [vmem:[#allocation2 + $0x78] sm:$0xff] }
  0xf1   :  { %3100 = vmatprep.subr.bf16.mxu0 %v3973_v57  ;;  %3141 = vmatprep.subr.bf16.mxu1 %v3975_v58  ;;  %v272_v57 = vld [vmem:[#allocation2 + $0x730] sm:$0xff] }
  0xf2   :  { %v4073_v6 = vcombine.high %v248_v56, %v272_v57  ;;  %v4072_v17 = vcombine.low %v248_v56, %v272_v57  ;;  %v80_v43 = vld [vmem:[#allocation2 + $0x130] sm:$0xff]  ;;  %v4440_v57 = vsub.s32 6, %v4402_v10 }
  0xf4   :  { %3101 = vmatpush1.bf16.msra.mxu0 %v3972_v63  ;;  %3142 = vmatpush1.bf16.msra.mxu1 %v3974_v2  ;;  %v4120_v2 = vcombine.low %v296_v39, %v320_v40  ;;  %v3978_v39 = vcombine.low %v153_v27, %v177_v28 }
  0xf5   :  { %3102 = vmatprep.subr.bf16.mxu0 %v3925_v3  ;;  %3143 = vmatprep.subr.bf16.mxu1 %v3927_v4 }
  0xf8   :  { %3103 = vmatpush1.bf16.msra.mxu0 %v3924_v9  ;;  %3144 = vmatpush1.bf16.msra.mxu1 %v3926_v11  ;;  %v4075_v9 = vcombine.high %v249_v61, %v273_v62  ;;  %v200_v11 = vld [vmem:[#allocation2 + $0x4f0] sm:$0xff]  ;;  %v346_v61 = vld [vmem:[#allocation2 + $0x980] sm:$0xff] }
  0xf9   :  { %3104 = vmatprep.subr.bf16.mxu0 %v3877_v13  ;;  %3145 = vmatprep.subr.bf16.mxu1 %v3879_v14  ;;  %v224_v13 = vld [vmem:[#allocation2 + $0x5b0] sm:$0xff]  ;;  %v370_v62 = vld [vmem:[#allocation2 + $0xa40] sm:$0xff] }
  0xfa   :  { %v4024_v30 = vcombine.low %v200_v11, %v224_v13 }
  0xfc   :  { %3105 = vmatpush1.bf16.msra.mxu0 %v3876_v19  ;;  %3146 = vmatpush1.bf16.msra.mxu1 %v3878_v21  ;;  %v4025_v19 = vcombine.high %v200_v11, %v224_v13  ;;  %v4027_v21 = vcombine.high %v201_v15, %v225_v16  ;;  %v322_v11 = vld [vmem:[#allocation2 + $0x8c0] sm:$0xff]  ;;  %v299_v15 = vld [vmem:[#allocation2 + $0x808] sm:$0xff] }
  0xfd   :  { %3172 = vmatprep.subr.bf16.mxu0 %v4217_v24  ;;  %3213 = vmatprep.subr.bf16.mxu1 %v4219_v25  ;;  %v152_v24 = vld [vmem:[#allocation2 + $0x370] sm:$0xff]  ;;  %v323_v16 = vld [vmem:[#allocation2 + $0x8c8] sm:$0xff] }
  0xfe   :  { %v176_v25 = vld [vmem:[#allocation2 + $0x430] sm:$0xff] }
  0xff   :  { %v2632_v41 = vpop.f32.mrf.mxu0  ;;  %3123 = vmatmul.mubr.bf16.vlgmr.msra.gmra.mxu0 %v4397_v31  ;;  %v2673_v46 = vpop.f32.mrf.mxu1  ;;  %3164 = vmatmul.mubr.bf16.vlgmr.msra.gmra.mxu1 %v4397_v31 }
 0x100   :  { %v2633_v45 = vadd.f32 %v2632_v41, %v441_v33  ;;  %3173 = vmatpush1.bf16.msra.mxu0 %v4216_v34  ;;  %v2674_v48 = vadd.f32 %v2673_v46, %v449_v35  ;;  %3214 = vmatpush1.bf16.msra.mxu1 %v4218_v36  ;;  %v3977_v33 = vcombine.high %v152_v24, %v176_v25  ;;  %v104_v35 = vld [vmem:[#allocation2 + $0x1f0] sm:$0xff] }
 0x101   :  { %v2634_v49 = vpop.f32.mrf.mxu0  ;;  %3174 = vmatprep.subr.bf16.mxu0 %v4169_v37  ;;  %v2675_v54 = vpop.f32.mrf.mxu1  ;;  %3215 = vmatprep.subr.bf16.mxu1 %v4171_v38  ;;  %v3979_v34 = vcombine.high %v153_v27, %v177_v28  ;;  %v128_v36 = vld [vmem:[#allocation2 + $0x2b0] sm:$0xff]  ;;  %v105_v37 = vld [vmem:[#allocation2 + $0x1f8] sm:$0xff]  ;;  %v3976_v38 = vcombine.low %v152_v24, %v176_v25 }
 0x102   :  { %v3582_v52 = vmax.f32 %v2633_v45, 0.0  ;;  %v2635_v53 = vadd.f32 %v2634_v49, %v445_v12  ;;  %3204 = vmatprep.mubr.bf16.mxu0 %v4339_v0  ;;  %v3584_v58 = vmax.f32 %v2674_v48, 0.0  ;;  %v2676_v59 = vadd.f32 %v2675_v54, %v453_v42  ;;  %3245 = vmatprep.mubr.bf16.mxu1 %v4339_v0  ;;  %v129_v12 = vld [vmem:[#allocation2 + $0x2b8] sm:$0xff]  ;;  %v56_v42 = vld [vmem:[#allocation2 + $0x70] sm:$0xff] }
 0x103   :  { %v2636_v60 = vpop.f32.mrf.mxu0  ;;  %v2677_v1 = vpop.f32.mrf.mxu1  ;;  %v3929_v40 = vcombine.high %v104_v35, %v128_v36  ;;  %v3931_v41 = vcombine.high %v105_v37, %v129_v12  ;;  %v81_v45 = vld [vmem:[#allocation2 + $0x138] sm:$0xff]  ;;  %v3928_v46 = vcombine.low %v104_v35, %v128_v36  ;;  %v3881_v48 = vcombine.high %v56_v42, %v80_v43 }
 0x104   :  { %v3583_v63 = vmax.f32 %v2635_v53, 0.0  ;;  %3175 = vmatpush1.bf16.msra.mxu0 %v4168_v47  ;;  %v3585_v3 = vmax.f32 %v2676_v59, 0.0  ;;  %3216 = vmatpush1.bf16.msra.mxu1 %v4170_v50  ;;  %v3930_v47 = vcombine.low %v105_v37, %v129_v12  ;;  %v3883_v49 = vcombine.high %v57_v44, %v81_v45  ;;  %v394_v50 = vld [vmem:[#allocation2 + $0xb00] sm:$0xff]  ;;  %v419_v53 = vld [vmem:[#allocation2 + $0xbc8] sm:$0xff] }
 0x105   :  { %v2637_v4 = vpop.f32.mrf.mxu0  ;;  %3176 = vmatprep.subr.bf16.mxu0 %v4121_v51  ;;  %v2678_v8 = vpop.f32.mrf.mxu1  ;;  %3217 = vmatprep.subr.bf16.mxu1 %v4123_v55  ;;  %v418_v51 = vld [vmem:[#allocation2 + $0xbc0] sm:$0xff]  ;;  %v3880_v54 = vcombine.low %v56_v42, %v80_v43  ;;  %v4437_v55 = vsub.s32 4, %v4402_v10  ;;  %v3882_v56 = vcombine.low %v57_v44, %v81_v45  ;;  %v4443_v60 = vsub.s32 5, %v4402_v10  ;;  %v347_v1 = vld [vmem:[#allocation2 + $0x988] sm:$0xff] }
 0x106   :  { %v4260_v7 = vpack.c.bf16 %v3583_v63, %v3582_v52  ;;  %v4261_v14 = vpack.c.bf16 %v3585_v3, %v3584_v58  ;;  %v395_v52 = vld [vmem:[#allocation2 + $0xb08] sm:$0xff]  ;;  %v4221_v58 = vcombine.high %v394_v50, %v418_v51  ;;  %v4446_v63 = vsub.s32 7, %v4402_v10 }
 0x107   :  { %v4223_v59 = vcombine.high %v395_v52, %v419_v53  ;;  %v457_v3 = vrot.slane %v4407_v22, %v4437_v55  ;;  %v4220_v4 = vcombine.low %v394_v50, %v418_v51  ;;  %v461_v8 = vrot.slane %v4407_v22, %v4443_v60  ;;  %v251_v12 = vld [vmem:[#allocation2 + $0x688] sm:$0xff]  ;;  %v226_v50 = vld [vmem:[#allocation2 + $0x5c0] sm:$0xff] }
 0x108   :  { %3822 = vst [vmem:[%s4608_s3] sm:$0xff] %v4260_v7  ;;  %3177 = vmatpush1.bf16.msra.mxu0 %v4120_v2  ;;  %3823 = vst [vmem:[%s4608_s3 + $0x8] sm:$0xff] %v4261_v14  ;;  %3218 = vmatpush1.bf16.msra.mxu1 %v4122_v5  ;;  %v371_v2 = vld [vmem:[#allocation2 + $0xa48] sm:$0xff]  ;;  %v465_v5 = vrot.slane %v4407_v22, %v4440_v57  ;;  %v4173_v7 = vcombine.high %v346_v61, %v370_v62 }
 0x109   :  { %3178 = vmatprep.subr.bf16.mxu0 %v4073_v6  ;;  %3219 = vmatprep.subr.bf16.mxu1 %v4075_v9  ;;  %v4222_v6 = vcombine.low %v395_v52, %v419_v53  ;;  %v4175_v10 = vcombine.high %v347_v1, %v371_v2  ;;  %v298_v9 = vld [vmem:[#allocation2 + $0x800] sm:$0xff]  ;;  %v469_v14 = vrot.slane %v4407_v22, %v4446_v63  ;;  %v203_v52 = vld [vmem:[#allocation2 + $0x508] sm:$0xff] }
 0x10a   :  { %v4174_v25 = vcombine.low %v347_v1, %v371_v2  ;;  %v4125_v27 = vcombine.high %v298_v9, %v322_v11  ;;  %v250_v22 = vld [vmem:[#allocation2 + $0x680] sm:$0xff]  ;;  %v4126_v44 = vcombine.low %v299_v15, %v323_v16  ;;  %v227_v53 = vld [vmem:[#allocation2 + $0x5c8] sm:$0xff] }
 0x10b   :  { %v155_v1 = vld [vmem:[#allocation2 + $0x388] sm:$0xff] }
 0x10c   :  { %3179 = vmatpush1.bf16.msra.mxu0 %v4072_v17  ;;  %3220 = vmatpush1.bf16.msra.mxu1 %v4074_v18  ;;  %v179_v2 = vld [vmem:[#allocation2 + $0x448] sm:$0xff] }
 0x10d   :  { %3180 = vmatprep.subr.bf16.mxu0 %v4025_v19  ;;  %3221 = vmatprep.subr.bf16.mxu1 %v4027_v21  ;;  %v4172_v19 = vcombine.low %v346_v61, %v370_v62  ;;  %v154_v61 = vld [vmem:[#allocation2 + $0x380] sm:$0xff] }
 0x10e   :  { %v178_v62 = vld [vmem:[#allocation2 + $0x440] sm:$0xff] }
 0x110   :  { %3181 = vmatpush1.bf16.msra.mxu0 %v4024_v30  ;;  %3222 = vmatpush1.bf16.msra.mxu1 %v4026_v32 }
 0x111   :  { %3182 = vmatprep.subr.bf16.mxu0 %v3977_v33  ;;  %3223 = vmatprep.subr.bf16.mxu1 %v3979_v34  ;;  %v4127_v33 = vcombine.high %v299_v15, %v323_v16  ;;  %v274_v34 = vld [vmem:[#allocation2 + $0x740] sm:$0xff] }
 0x112   :  { %v4077_v45 = vcombine.high %v250_v22, %v274_v34  ;;  %v58_v16 = vld [vmem:[#allocation2 + $0x80] sm:$0xff] }
 0x114   :  { %3183 = vmatpush1.bf16.msra.mxu0 %v3976_v38  ;;  %3224 = vmatpush1.bf16.msra.mxu1 %v3978_v39  ;;  %v275_v38 = vld [vmem:[#allocation2 + $0x748] sm:$0xff] }
 0x115   :  { %3184 = vmatprep.subr.bf16.mxu0 %v3929_v40  ;;  %3225 = vmatprep.subr.bf16.mxu1 %v3931_v41  ;;  %v4124_v41 = vcombine.low %v298_v9, %v322_v11  ;;  %v131_v9 = vld [vmem:[#allocation2 + $0x2c8] sm:$0xff]  ;;  %v3980_v11 = vcombine.low %v154_v61, %v178_v62 }
 0x118   :  { %3185 = vmatpush1.bf16.msra.mxu0 %v3928_v46  ;;  %3226 = vmatpush1.bf16.msra.mxu1 %v3930_v47 }
 0x119   :  { %3186 = vmatprep.subr.bf16.mxu0 %v3881_v48  ;;  %3227 = vmatprep.subr.bf16.mxu1 %v3883_v49  ;;  %v4079_v48 = vcombine.high %v251_v12, %v275_v38  ;;  %v202_v49 = vld [vmem:[#allocation2 + $0x500] sm:$0xff] }
 0x11c   :  { %3187 = vmatpush1.bf16.msra.mxu0 %v3880_v54  ;;  %3228 = vmatpush1.bf16.msra.mxu1 %v3882_v56  ;;  %v4076_v54 = vcombine.low %v250_v22, %v274_v34  ;;  %v4078_v56 = vcombine.low %v251_v12, %v275_v38  ;;  %v348_v12 = vld [vmem:[#allocation2 + $0x990] sm:$0xff] }
 0x11d   :  { %3254 = vmatprep.subr.bf16.mxu0 %v4221_v58  ;;  %3295 = vmatprep.subr.bf16.mxu1 %v4223_v59  ;;  %v4029_v58 = vcombine.high %v202_v49, %v226_v50  ;;  %v4031_v59 = vcombine.high %v203_v52, %v227_v53  ;;  %v372_v38 = vld [vmem:[#allocation2 + $0xa50] sm:$0xff] }
 0x11f   :  { %v2714_v13 = vpop.f32.mrf.mxu0  ;;  %3205 = vmatmul.mubr.bf16.vlgmr.msra.gmra.mxu0 %v4397_v31  ;;  %v2755_v18 = vpop.f32.mrf.mxu1  ;;  %3246 = vmatmul.mubr.bf16.vlgmr.msra.gmra.mxu1 %v4397_v31 }
 0x120   :  { %v2715_v17 = vadd.f32 %v2714_v13, %v457_v3  ;;  %3255 = vmatpush1.bf16.msra.mxu0 %v4220_v4  ;;  %v2756_v21 = vadd.f32 %v2755_v18, %v465_v5  ;;  %3296 = vmatpush1.bf16.msra.mxu1 %v4222_v6  ;;  %v4028_v3 = vcombine.low %v202_v49, %v226_v50  ;;  %v59_v18 = vld [vmem:[#allocation2 + $0x88] sm:$0xff]  ;;  %v324_v49 = vld [vmem:[#allocation2 + $0x8d0] sm:$0xff] }
 0x121   :  { %v2716_v24 = vpop.f32.mrf.mxu0  ;;  %3256 = vmatprep.subr.bf16.mxu0 %v4173_v7  ;;  %v2757_v32 = vpop.f32.mrf.mxu1  ;;  %3297 = vmatprep.subr.bf16.mxu1 %v4175_v10  ;;  %v4030_v4 = vcombine.low %v203_v52, %v227_v53  ;;  %v3981_v5 = vcombine.high %v154_v61, %v178_v62  ;;  %v3983_v6 = vcombine.high %v155_v1, %v179_v2  ;;  %v106_v7 = vld [vmem:[#allocation2 + $0x200] sm:$0xff]  ;;  %v107_v10 = vld [vmem:[#allocation2 + $0x208] sm:$0xff]  ;;  %v301_v52 = vld [vmem:[#allocation2 + $0x818] sm:$0xff] }
 0x122   :  { %v3586_v28 = vmax.f32 %v2715_v17, 0.0  ;;  %v2717_v30 = vadd.f32 %v2716_v24, %v461_v8  ;;  %3286 = vmatprep.mubr.bf16.mxu0 %v4339_v0  ;;  %v3588_v35 = vmax.f32 %v2756_v21, 0.0  ;;  %v2758_v36 = vadd.f32 %v2757_v32, %v469_v14  ;;  %3327 = vmatprep.mubr.bf16.mxu1 %v4339_v0  ;;  %v130_v8 = vld [vmem:[#allocation2 + $0x2c0] sm:$0xff]  ;;  %v397_v32 = vld [vmem:[#allocation2 + $0xb18] sm:$0xff] }
 0x123   :  { %v2718_v37 = vpop.f32.mrf.mxu0  ;;  %v2759_v40 = vpop.f32.mrf.mxu1  ;;  %v3982_v13 = vcombine.low %v155_v1, %v179_v2  ;;  %v3933_v14 = vcombine.high %v106_v7, %v130_v8  ;;  %v3935_v15 = vcombine.high %v107_v10, %v131_v9  ;;  %v82_v17 = vld [vmem:[#allocation2 + $0x140] sm:$0xff]  ;;  %v3932_v21 = vcombine.low %v106_v7, %v130_v8  ;;  %v325_v53 = vld [vmem:[#allocation2 + $0x8d8] sm:$0xff]  ;;  %v276_v7 = vld [vmem:[#allocation2 + $0x750] sm:$0xff] }
 0x124   :  { %v3587_v39 = vmax.f32 %v2717_v30, 0.0  ;;  %3257 = vmatpush1.bf16.msra.mxu0 %v4172_v19  ;;  %v3589_v42 = vmax.f32 %v2758_v36, 0.0  ;;  %3298 = vmatpush1.bf16.msra.mxu1 %v4174_v25  ;;  %v83_v19 = vld [vmem:[#allocation2 + $0x148] sm:$0xff]  ;;  %v3934_v24 = vcombine.low %v107_v10, %v131_v9  ;;  %v3885_v25 = vcombine.high %v58_v16, %v82_v17  ;;  %v420_v30 = vld [vmem:[#allocation2 + $0xbd0] sm:$0xff]  ;;  %v373_v40 = vld [vmem:[#allocation2 + $0xa58] sm:$0xff] }
 0x125   :  { %v2719_v43 = vpop.f32.mrf.mxu0  ;;  %3258 = vmatprep.subr.bf16.mxu0 %v4125_v27  ;;  %v2760_v47 = vpop.f32.mrf.mxu1  ;;  %3299 = vmatprep.subr.bf16.mxu1 %v4127_v33  ;;  %v3887_v27 = vcombine.high %v59_v18, %v83_v19  ;;  %v421_v33 = vld [vmem:[#allocation2 + $0xbd8] sm:$0xff]  ;;  %v3884_v22 = vcombine.low %v58_v16, %v82_v17  ;;  %v3886_v34 = vcombine.low %v59_v18, %v83_v19 }
 0x126   :  { %v4262_v46 = vpack.c.bf16 %v3587_v39, %v3586_v28  ;;  %v4263_v51 = vpack.c.bf16 %v3589_v42, %v3588_v35  ;;  %v396_v28 = vld [vmem:[#allocation2 + $0xb10] sm:$0xff]  ;;  %v4466_v35 = vld [vmem:[#allocation4 + $0x8] sm:$0xff]  ;;  %v4227_v37 = vcombine.high %v397_v32, %v421_v33  ;;  %v349_v39 = vld [vmem:[#allocation2 + $0x998] sm:$0xff]  ;;  %v4130_v19 = vcombine.low %v301_v52, %v325_v53 }
 0x127   :  { %v4225_v36 = vcombine.high %v396_v28, %v420_v30  ;;  %v4224_v42 = vcombine.low %v396_v28, %v420_v30  ;;  %v481_v43 = vrot.slane %v4466_v35, %v4410_v23  ;;  %v4179_v47 = vcombine.high %v349_v39, %v373_v40  ;;  %v204_v28 = vld [vmem:[#allocation2 + $0x510] sm:$0xff] }
 0x128   :  { %3824 = vst [vmem:[%s4608_s3 + $0x10] sm:$0xff] %v4262_v46  ;;  %3259 = vmatpush1.bf16.msra.mxu0 %v4124_v41  ;;  %3825 = vst [vmem:[%s4608_s3 + $0x18] sm:$0xff] %v4263_v51  ;;  %3300 = vmatpush1.bf16.msra.mxu1 %v4126_v44  ;;  %v473_v41 = vrot.slane %v4466_v35, %v4405_v20  ;;  %v4226_v44 = vcombine.low %v397_v32, %v421_v33  ;;  %v228_v30 = vld [vmem:[#allocation2 + $0x5d0] sm:$0xff]  ;;  %v205_v33 = vld [vmem:[#allocation2 + $0x518] sm:$0xff] }
 0x129   :  { %3260 = vmatprep.subr.bf16.mxu0 %v4077_v45  ;;  %3301 = vmatprep.subr.bf16.mxu1 %v4079_v48  ;;  %v4177_v45 = vcombine.high %v348_v12, %v372_v38  ;;  %v477_v46 = vrot.slane %v4466_v35, %v4413_v26  ;;  %v300_v48 = vld [vmem:[#allocation2 + $0x810] sm:$0xff]  ;;  %v485_v51 = vrot.slane %v4466_v35, %v4416_v29 }
 0x12a   :  { %v4178_v62 = vcombine.low %v349_v39, %v373_v40  ;;  %v4129_v1 = vcombine.high %v300_v48, %v324_v49  ;;  %v4128_v16 = vcombine.low %v300_v48, %v324_v49  ;;  %v180_v39 = vld [vmem:[#allocation2 + $0x450] sm:$0xff]  ;;  %v157_v40 = vld [vmem:[#allocation2 + $0x398] sm:$0xff] }
 0x12b   :  { %v109_v48 = vld [vmem:[#allocation2 + $0x218] sm:$0xff] }
 0x12c   :  { %3261 = vmatpush1.bf16.msra.mxu0 %v4076_v54  ;;  %3302 = vmatpush1.bf16.msra.mxu1 %v4078_v56  ;;  %v133_v49 = vld [vmem:[#allocation2 + $0x2d8] sm:$0xff] }
 0x12d   :  { %3262 = vmatprep.subr.bf16.mxu0 %v4029_v58  ;;  %3303 = vmatprep.subr.bf16.mxu1 %v4031_v59  ;;  %v4176_v58 = vcombine.low %v348_v12, %v372_v38  ;;  %v156_v38 = vld [vmem:[#allocation2 + $0x390] sm:$0xff] }
 0x130   :  { %3263 = vmatpush1.bf16.msra.mxu0 %v4028_v3  ;;  %3304 = vmatpush1.bf16.msra.mxu1 %v4030_v4 }
 0x131   :  { %3264 = vmatprep.subr.bf16.mxu0 %v3981_v5  ;;  %3305 = vmatprep.subr.bf16.mxu1 %v3983_v6  ;;  %v4131_v5 = vcombine.high %v301_v52, %v325_v53  ;;  %v252_v6 = vld [vmem:[#allocation2 + $0x690] sm:$0xff]  ;;  %v3939_v53 = vcombine.high %v109_v48, %v133_v49 }
 0x134   :  { %3265 = vmatpush1.bf16.msra.mxu0 %v3980_v11  ;;  %3306 = vmatpush1.bf16.msra.mxu1 %v3982_v13  ;;  %v253_v11 = vld [vmem:[#allocation2 + $0x698] sm:$0xff] }
 0x135   :  { %3266 = vmatprep.subr.bf16.mxu0 %v3933_v14  ;;  %3307 = vmatprep.subr.bf16.mxu1 %v3935_v15  ;;  %v277_v13 = vld [vmem:[#allocation2 + $0x758] sm:$0xff] }
 0x138   :  { %3267 = vmatpush1.bf16.msra.mxu0 %v3932_v21  ;;  %3308 = vmatpush1.bf16.msra.mxu1 %v3934_v24  ;;  %v4081_v21 = vcombine.high %v252_v6, %v276_v7 }
 0x139   :  { %3268 = vmatprep.subr.bf16.mxu0 %v3885_v25  ;;  %3309 = vmatprep.subr.bf16.mxu1 %v3887_v27  ;;  %v4083_v27 = vcombine.high %v253_v11, %v277_v13 }
 0x13c   :  { %3269 = vmatpush1.bf16.msra.mxu0 %v3884_v22  ;;  %3310 = vmatpush1.bf16.msra.mxu1 %v3886_v34  ;;  %v229_v22 = vld [vmem:[#allocation2 + $0x5d8] sm:$0xff]  ;;  %v4080_v34 = vcombine.low %v252_v6, %v276_v7  ;;  %v423_v6 = vld [vmem:[#allocation2 + $0xbe8] sm:$0xff] }
 0x13d   :  { %3336 = vmatprep.subr.bf16.mxu0 %v4225_v36  ;;  %3377 = vmatprep.subr.bf16.mxu1 %v4227_v37  ;;  %v4082_v36 = vcombine.low %v253_v11, %v277_v13  ;;  %v4033_v37 = vcombine.high %v204_v28, %v228_v30  ;;  %v4035_v12 = vcombine.high %v205_v33, %v229_v22  ;;  %v350_v11 = vld [vmem:[#allocation2 + $0x9a0] sm:$0xff] }
 0x13e   :  { %v374_v13 = vld [vmem:[#allocation2 + $0xa60] sm:$0xff] }
 0x13f   :  { %v2796_v50 = vpop.f32.mrf.mxu0  ;;  %3287 = vmatmul.mubr.bf16.vlgmr.msra.gmra.mxu0 %v4397_v31  ;;  %v2837_v56 = vpop.f32.mrf.mxu1  ;;  %3328 = vmatmul.mubr.bf16.vlgmr.msra.gmra.mxu1 %v4397_v31 }
 0x140   :  { %v2797_v54 = vadd.f32 %v2796_v50, %v473_v41  ;;  %3337 = vmatpush1.bf16.msra.mxu0 %v4224_v42  ;;  %v2838_v59 = vadd.f32 %v2837_v56, %v481_v43  ;;  %3378 = vmatpush1.bf16.msra.mxu1 %v4226_v44  ;;  %v181_v41 = vld [vmem:[#allocation2 + $0x458] sm:$0xff]  ;;  %v4032_v42 = vcombine.low %v204_v28, %v228_v30  ;;  %v84_v56 = vld [vmem:[#allocation2 + $0x150] sm:$0xff]  ;;  %v326_v28 = vld [vmem:[#allocation2 + $0x8e0] sm:$0xff] }
 0x141   :  { %v2798_v61 = vpop.f32.mrf.mxu0  ;;  %3338 = vmatprep.subr.bf16.mxu0 %v4177_v45  ;;  %v2839_v4 = vpop.f32.mrf.mxu1  ;;  %3379 = vmatprep.subr.bf16.mxu1 %v4179_v47  ;;  %v4034_v43 = vcombine.low %v205_v33, %v229_v22  ;;  %v3985_v44 = vcombine.high %v156_v38, %v180_v39  ;;  %v3987_v45 = vcombine.high %v157_v40, %v181_v41  ;;  %v132_v47 = vld [vmem:[#allocation2 + $0x2d0] sm:$0xff]  ;;  %v303_v33 = vld [vmem:[#allocation2 + $0x828] sm:$0xff] }
 0x142   :  { %v3590_v2 = vmax.f32 %v2797_v54, 0.0  ;;  %v2799_v3 = vadd.f32 %v2798_v61, %v477_v46  ;;  %3368 = vmatprep.mubr.bf16.mxu0 %v4339_v0  ;;  %v3592_v8 = vmax.f32 %v2838_v59, 0.0  ;;  %v2840_v10 = vadd.f32 %v2839_v4, %v485_v51  ;;  %3409 = vmatprep.mubr.bf16.mxu1 %v4339_v0  ;;  %v108_v46 = vld [vmem:[#allocation2 + $0x210] sm:$0xff]  ;;  %v85_v59 = vld [vmem:[#allocation2 + $0x158] sm:$0xff]  ;;  %v422_v4 = vld [vmem:[#allocation2 + $0xbe0] sm:$0xff] }
 0x143   :  { %v2800_v9 = vpop.f32.mrf.mxu0  ;;  %v2841_v15 = vpop.f32.mrf.mxu1  ;;  %v3984_v50 = vcombine.low %v156_v38, %v180_v39  ;;  %v3986_v51 = vcombine.low %v157_v40, %v181_v41  ;;  %v3937_v52 = vcombine.high %v108_v46, %v132_v47  ;;  %v60_v54 = vld [vmem:[#allocation2 + $0x90] sm:$0xff]  ;;  %v3936_v61 = vcombine.low %v108_v46, %v132_v47  ;;  %v327_v22 = vld [vmem:[#allocation2 + $0x8e8] sm:$0xff] }
 0x144   :  { %v3591_v14 = vmax.f32 %v2799_v3, 0.0  ;;  %3339 = vmatpush1.bf16.msra.mxu0 %v4176_v58  ;;  %v3593_v17 = vmax.f32 %v2840_v10, 0.0  ;;  %3380 = vmatpush1.bf16.msra.mxu1 %v4178_v62  ;;  %v61_v58 = vld [vmem:[#allocation2 + $0x98] sm:$0xff]  ;;  %v3938_v62 = vcombine.low %v109_v48, %v133_v49  ;;  %v398_v3 = vld [vmem:[#allocation2 + $0xb20] sm:$0xff]  ;;  %v3888_v7 = vcombine.low %v60_v54, %v84_v56  ;;  %v375_v15 = vld [vmem:[#allocation2 + $0xa68] sm:$0xff] }
 0x145   :  { %v2801_v18 = vpop.f32.mrf.mxu0  ;;  %3340 = vmatprep.subr.bf16.mxu0 %v4129_v1  ;;  %v2842_v25 = vpop.f32.mrf.mxu1  ;;  %3381 = vmatprep.subr.bf16.mxu1 %v4131_v5  ;;  %v3889_v1 = vcombine.high %v60_v54, %v84_v56  ;;  %v399_v5 = vld [vmem:[#allocation2 + $0xb28] sm:$0xff]  ;;  %v4229_v10 = vcombine.high %v398_v3, %v422_v4  ;;  %v4134_v56 = vcombine.low %v303_v33, %v327_v22 }
 0x146   :  { %v4264_v24 = vpack.c.bf16 %v3591_v14, %v3590_v2  ;;  %v4265_v32 = vpack.c.bf16 %v3593_v17, %v3592_v8  ;;  %v3891_v2 = vcombine.high %v61_v58, %v85_v59  ;;  %v3890_v8 = vcombine.low %v61_v58, %v85_v59  ;;  %v351_v14 = vld [vmem:[#allocation2 + $0x9a8] sm:$0xff] }
 0x147   :  { %v4231_v9 = vcombine.high %v399_v5, %v423_v6  ;;  %v4228_v17 = vcombine.low %v398_v3, %v422_v4  ;;  %v497_v18 = vrot.slane %v4466_v35, %v4440_v57  ;;  %v4183_v25 = vcombine.high %v351_v14, %v375_v15  ;;  %v255_v48 = vld [vmem:[#allocation2 + $0x6a8] sm:$0xff] }
 0x148   :  { %3826 = vst [vmem:[%s4608_s3 + $0x20] sm:$0xff] %v4264_v24  ;;  %3341 = vmatpush1.bf16.msra.mxu0 %v4128_v16  ;;  %3827 = vst [vmem:[%s4608_s3 + $0x28] sm:$0xff] %v4265_v32  ;;  %3382 = vmatpush1.bf16.msra.mxu1 %v4130_v19  ;;  %v489_v16 = vrot.slane %v4466_v35, %v4437_v55  ;;  %v4230_v19 = vcombine.low %v399_v5, %v423_v6  ;;  %v279_v49 = vld [vmem:[#allocation2 + $0x768] sm:$0xff] }
 0x149   :  { %3342 = vmatprep.subr.bf16.mxu0 %v4081_v21  ;;  %3383 = vmatprep.subr.bf16.mxu1 %v4083_v27  ;;  %v4181_v21 = vcombine.high %v350_v11, %v374_v13  ;;  %v493_v24 = vrot.slane %v4466_v35, %v4443_v60  ;;  %v302_v27 = vld [vmem:[#allocation2 + $0x820] sm:$0xff]  ;;  %v501_v32 = vrot.slane %v4466_v35, %v4446_v63  ;;  %v207_v4 = vld [vmem:[#allocation2 + $0x528] sm:$0xff] }
 0x14a   :  { %v4182_v39 = vcombine.low %v351_v14, %v375_v15  ;;  %v4133_v40 = vcombine.high %v302_v27, %v326_v28  ;;  %v254_v35 = vld [vmem:[#allocation2 + $0x6a0] sm:$0xff]  ;;  %v231_v5 = vld [vmem:[#allocation2 + $0x5e8] sm:$0xff] }
 0x14b   :  { %v183_v14 = vld [vmem:[#allocation2 + $0x468] sm:$0xff] }
 0x14c   :  { %3343 = vmatpush1.bf16.msra.mxu0 %v4080_v34  ;;  %3384 = vmatpush1.bf16.msra.mxu1 %v4082_v36 }
 0x14d   :  { %3344 = vmatprep.subr.bf16.mxu0 %v4033_v37  ;;  %3385 = vmatprep.subr.bf16.mxu1 %v4035_v12  ;;  %v4180_v37 = vcombine.low %v350_v11, %v374_v13  ;;  %v182_v11 = vld [vmem:[#allocation2 + $0x460] sm:$0xff]  ;;  %v159_v13 = vld [vmem:[#allocation2 + $0x3a8] sm:$0xff] }
 0x150   :  { %3345 = vmatpush1.bf16.msra.mxu0 %v4032_v42  ;;  %3386 = vmatpush1.bf16.msra.mxu1 %v4034_v43 }
 0x151   :  { %3346 = vmatprep.subr.bf16.mxu0 %v3985_v44  ;;  %3387 = vmatprep.subr.bf16.mxu1 %v3987_v45  ;;  %v4135_v44 = vcombine.high %v303_v33, %v327_v22  ;;  %v278_v45 = vld [vmem:[#allocation2 + $0x760] sm:$0xff] }
 0x152   :  { %v4085_v58 = vcombine.high %v254_v35, %v278_v45  ;;  %v4084_v6 = vcombine.low %v254_v35, %v278_v45  ;;  %v62_v33 = vld [vmem:[#allocation2 + $0xa0] sm:$0xff]  ;;  %v4504_v45 = vld [vmem:[#allocation4 + $0x10] sm:$0xff] }
 0x153   :  { %v86_v22 = vld [vmem:[#allocation2 + $0x160] sm:$0xff] }
 0x154   :  { %3347 = vmatpush1.bf16.msra.mxu0 %v3984_v50  ;;  %3388 = vmatpush1.bf16.msra.mxu1 %v3986_v51 }
 0x155   :  { %3348 = vmatprep.subr.bf16.mxu0 %v3937_v52  ;;  %3389 = vmatprep.subr.bf16.mxu1 %v3939_v53  ;;  %v4132_v52 = vcombine.low %v302_v27, %v326_v28  ;;  %v3990_v28 = vcombine.low %v159_v13, %v183_v14 }
 0x158   :  { %3349 = vmatpush1.bf16.msra.mxu0 %v3936_v61  ;;  %3390 = vmatpush1.bf16.msra.mxu1 %v3938_v62  ;;  %v4087_v62 = vcombine.high %v255_v48, %v279_v49 }
 0x159   :  { %3350 = vmatprep.subr.bf16.mxu0 %v3889_v1  ;;  %3391 = vmatprep.subr.bf16.mxu1 %v3891_v2  ;;  %v206_v1 = vld [vmem:[#allocation2 + $0x520] sm:$0xff] }
 0x15a   :  { %v230_v2 = vld [vmem:[#allocation2 + $0x5e0] sm:$0xff] }
 0x15b   :  { %v4036_v15 = vcombine.low %v206_v1, %v230_v2 }
 0x15c   :  { %3351 = vmatpush1.bf16.msra.mxu0 %v3888_v7  ;;  %3392 = vmatpush1.bf16.msra.mxu1 %v3890_v8  ;;  %v4086_v7 = vcombine.low %v255_v48, %v279_v49  ;;  %v4037_v8 = vcombine.high %v206_v1, %v230_v2  ;;  %v376_v48 = vld [vmem:[#allocation2 + $0xa70] sm:$0xff]  ;;  %v353_v49 = vld [vmem:[#allocation2 + $0x9b8] sm:$0xff]  ;;  %v4515_v2 = vld [vmem:[%s4605_s0] sm:$0xf] }
 0x15d   :  { %3418 = vmatprep.subr.bf16.mxu0 %v4229_v10  ;;  %3459 = vmatprep.subr.bf16.mxu1 %v4231_v9  ;;  %v4039_v10 = vcombine.high %v207_v4, %v231_v5  ;;  %v158_v9 = vld [vmem:[#allocation2 + $0x3a0] sm:$0xff] }
 0x15e   :  { %v3988_v27 = vcombine.low %v158_v9, %v182_v11 }
 0x15f   :  { %v2878_v30 = vpop.f32.mrf.mxu0  ;;  %3369 = vmatmul.mubr.bf16.vlgmr.msra.gmra.mxu0 %v4397_v31  ;;  %v2919_v36 = vpop.f32.mrf.mxu1  ;;  %3410 = vmatmul.mubr.bf16.vlgmr.msra.gmra.mxu1 %v4397_v31 }
 0x160   :  { %v2879_v34 = vadd.f32 %v2878_v30, %v489_v16  ;;  %3419 = vmatpush1.bf16.msra.mxu0 %v4228_v17  ;;  %v2920_v12 = vadd.f32 %v2919_v36, %v497_v18  ;;  %3460 = vmatpush1.bf16.msra.mxu1 %v4230_v19  ;;  %v4038_v16 = vcombine.low %v207_v4, %v231_v5  ;;  %v110_v19 = vld [vmem:[#allocation2 + $0x220] sm:$0xff]  ;;  %v87_v36 = vld [vmem:[#allocation2 + $0x168] sm:$0xff]  ;;  %v305_v4 = vld [vmem:[#allocation2 + $0x838] sm:$0xff] }
 0x161   :  { %v2880_v38 = vpop.f32.mrf.mxu0  ;;  %3420 = vmatprep.subr.bf16.mxu0 %v4181_v21  ;;  %v2921_v43 = vpop.f32.mrf.mxu1  ;;  %3461 = vmatprep.subr.bf16.mxu1 %v4183_v25  ;;  %v3989_v17 = vcombine.high %v158_v9, %v182_v11  ;;  %v3991_v18 = vcombine.high %v159_v13, %v183_v14  ;;  %v134_v21 = vld [vmem:[#allocation2 + $0x2e0] sm:$0xff]  ;;  %v135_v25 = vld [vmem:[#allocation2 + $0x2e8] sm:$0xff]  ;;  %v329_v5 = vld [vmem:[#allocation2 + $0x8f8] sm:$0xff] }
 0x162   :  { %v3594_v41 = vmax.f32 %v2879_v34, 0.0  ;;  %v2881_v42 = vadd.f32 %v2880_v38, %v493_v24  ;;  %3450 = vmatprep.mubr.bf16.mxu0 %v4339_v0  ;;  %v3596_v46 = vmax.f32 %v2920_v12, 0.0  ;;  %v2922_v47 = vadd.f32 %v2921_v43, %v501_v32  ;;  %3491 = vmatprep.mubr.bf16.mxu1 %v4339_v0  ;;  %v111_v24 = vld [vmem:[#allocation2 + $0x228] sm:$0xff]  ;;  %v425_v43 = vld [vmem:[#allocation2 + $0xbf8] sm:$0xff] }
 0x163   :  { %v2882_v31 = vpop.f32.mrf.mxu0  ;;  %v2923_v51 = vpop.f32.mrf.mxu1  ;;  %v3941_v30 = vcombine.high %v110_v19, %v134_v21  ;;  %v3943_v32 = vcombine.high %v111_v24, %v135_v25  ;;  %v63_v34 = vld [vmem:[#allocation2 + $0xa8] sm:$0xff]  ;;  %v3942_v12 = vcombine.low %v111_v24, %v135_v25  ;;  %v3893_v38 = vcombine.high %v62_v33, %v86_v22 }
 0x164   :  { %v3595_v50 = vmax.f32 %v2881_v42, 0.0  ;;  %3421 = vmatpush1.bf16.msra.mxu0 %v4180_v37  ;;  %v3597_v53 = vmax.f32 %v2922_v47, 0.0  ;;  %3462 = vmatpush1.bf16.msra.mxu1 %v4182_v39  ;;  %v3940_v37 = vcombine.low %v110_v19, %v134_v21  ;;  %v3895_v39 = vcombine.high %v63_v34, %v87_v36  ;;  %v401_v42 = vld [vmem:[#allocation2 + $0xb38] sm:$0xff]  ;;  %v352_v31 = vld [vmem:[#allocation2 + $0x9b0] sm:$0xff] }
 0x165   :  { %v2883_v54 = vpop.f32.mrf.mxu0  ;;  %3422 = vmatprep.subr.bf16.mxu0 %v4133_v40  ;;  %v2924_v61 = vpop.f32.mrf.mxu1  ;;  %3463 = vmatprep.subr.bf16.mxu1 %v4135_v44  ;;  %v400_v40 = vld [vmem:[#allocation2 + $0xb30] sm:$0xff]  ;;  %v3892_v44 = vcombine.low %v62_v33, %v86_v22  ;;  %v3894_v35 = vcombine.low %v63_v34, %v87_v36  ;;  %v4235_v47 = vcombine.high %v401_v42, %v425_v43 }
 0x166   :  { %v4266_v59 = vpack.c.bf16 %v3595_v50, %v3594_v41  ;;  %v4267_v3 = vpack.c.bf16 %v3597_v53, %v3596_v46  ;;  %v424_v41 = vld [vmem:[#allocation2 + $0xbf0] sm:$0xff]  ;;  %v377_v50 = vld [vmem:[#allocation2 + $0xa78] sm:$0xff]  ;;  %v505_v51 = vrot.slane %v4504_v45, %v4405_v20  ;;  %v513_v53 = vrot.slane %v4504_v45, %v4410_v23 }
 0x167   :  { %v4233_v46 = vcombine.high %v400_v40, %v424_v41  ;;  %v4234_v54 = vcombine.low %v401_v42, %v425_v43  ;;  %v304_v61 = vld [vmem:[#allocation2 + $0x830] sm:$0xff]  ;;  %v4186_v11 = vcombine.low %v353_v49, %v377_v50  ;;  %v4138_v36 = vcombine.low %v305_v4, %v329_v5  ;;  %v209_v43 = vld [vmem:[#allocation2 + $0x538] sm:$0xff] }
 0x168   :  { %3828 = vst [vmem:[%s4608_s3 + $0x30] sm:$0xff] %v4266_v59  ;;  %3423 = vmatpush1.bf16.msra.mxu0 %v4132_v52  ;;  %3829 = vst [vmem:[%s4608_s3 + $0x38] sm:$0xff] %v4267_v3  ;;  %3464 = vmatpush1.bf16.msra.mxu1 %v4134_v56  ;;  %v4232_v52 = vcombine.low %v400_v40, %v424_v41  ;;  %v4185_v56 = vcombine.high %v352_v31, %v376_v48  ;;  %v280_v19 = vld [vmem:[#allocation2 + $0x770] sm:$0xff] }
 0x169   :  { %3424 = vmatprep.subr.bf16.mxu0 %v4085_v58  ;;  %3465 = vmatprep.subr.bf16.mxu1 %v4087_v62  ;;  %v509_v58 = vrot.slane %v4504_v45, %v4413_v26  ;;  %v4187_v59 = vcombine.high %v353_v49, %v377_v50  ;;  %v328_v62 = vld [vmem:[#allocation2 + $0x8f0] sm:$0xff]  ;;  %v517_v3 = vrot.slane %v4504_v45, %v4416_v29  ;;  %v161_v49 = vld [vmem:[#allocation2 + $0x3b8] sm:$0xff] }
 0x16a   :  { %v4137_v13 = vcombine.high %v304_v61, %v328_v62  ;;  %v4136_v33 = vcombine.low %v304_v61, %v328_v62  ;;  %v208_v40 = vld [vmem:[#allocation2 + $0x530] sm:$0xff]  ;;  %v185_v50 = vld [vmem:[#allocation2 + $0x478] sm:$0xff] }
 0x16b   :  { %v232_v41 = vld [vmem:[#allocation2 + $0x5f0] sm:$0xff]  ;;  %v137_v61 = vld [vmem:[#allocation2 + $0x2f8] sm:$0xff] }
 0x16c   :  { %3425 = vmatpush1.bf16.msra.mxu0 %v4084_v6  ;;  %3466 = vmatpush1.bf16.msra.mxu1 %v4086_v7 }
 0x16d   :  { %3426 = vmatprep.subr.bf16.mxu0 %v4037_v8  ;;  %3467 = vmatprep.subr.bf16.mxu1 %v4039_v10  ;;  %v4184_v8 = vcombine.low %v352_v31, %v376_v48  ;;  %v160_v31 = vld [vmem:[#allocation2 + $0x3b0] sm:$0xff] }
 0x16e   :  { %v184_v48 = vld [vmem:[#allocation2 + $0x470] sm:$0xff] }
 0x16f   :  { %v3992_v62 = vcombine.low %v160_v31, %v184_v48 }
 0x170   :  { %3427 = vmatpush1.bf16.msra.mxu0 %v4036_v15  ;;  %3468 = vmatpush1.bf16.msra.mxu1 %v4038_v16 }
 0x171   :  { %3428 = vmatprep.subr.bf16.mxu0 %v3989_v17  ;;  %3469 = vmatprep.subr.bf16.mxu1 %v3991_v18  ;;  %v4139_v17 = vcombine.high %v305_v4, %v329_v5  ;;  %v256_v18 = vld [vmem:[#allocation2 + $0x6b0] sm:$0xff] }
 0x172   :  { %v64_v5 = vld [vmem:[#allocation2 + $0xb0] sm:$0xff] }
 0x174   :  { %3429 = vmatpush1.bf16.msra.mxu0 %v3988_v27  ;;  %3470 = vmatpush1.bf16.msra.mxu1 %v3990_v28  ;;  %v257_v27 = vld [vmem:[#allocation2 + $0x6b8] sm:$0xff] }
 0x175   :  { %3430 = vmatprep.subr.bf16.mxu0 %v3941_v30  ;;  %3471 = vmatprep.subr.bf16.mxu1 %v3943_v32  ;;  %v281_v28 = vld [vmem:[#allocation2 + $0x778] sm:$0xff] }
 0x178   :  { %3431 = vmatpush1.bf16.msra.mxu0 %v3940_v37  ;;  %3472 = vmatpush1.bf16.msra.mxu1 %v3942_v12  ;;  %v4089_v37 = vcombine.high %v256_v18, %v280_v19 }
 0x179   :  { %3432 = vmatprep.subr.bf16.mxu0 %v3893_v38  ;;  %3473 = vmatprep.subr.bf16.mxu1 %v3895_v39  ;;  %v4091_v39 = vcombine.high %v257_v27, %v281_v28 }
 0x17c   :  { %3433 = vmatpush1.bf16.msra.mxu0 %v3892_v44  ;;  %3474 = vmatpush1.bf16.msra.mxu1 %v3894_v35  ;;  %v233_v44 = vld [vmem:[#allocation2 + $0x5f8] sm:$0xff]  ;;  %v4090_v35 = vcombine.low %v257_v27, %v281_v28 }
 0x17d   :  { %3500 = vmatprep.subr.bf16.mxu0 %v4233_v46  ;;  %3541 = vmatprep.subr.bf16.mxu1 %v4235_v47  ;;  %v4041_v46 = vcombine.high %v208_v40, %v232_v41  ;;  %v4043_v47 = vcombine.high %v209_v43, %v233_v44 }
 0x17f   :  { %v2960_v1 = vpop.f32.mrf.mxu0  ;;  %3451 = vmatmul.mubr.bf16.vlgmr.msra.gmra.mxu0 %v4515_v2  ;;  %v3001_v7 = vpop.f32.mrf.mxu1  ;;  %3492 = vmatmul.mubr.bf16.vlgmr.msra.gmra.mxu1 %v4515_v2 }
 0x180   :  { %v2961_v6 = vadd.f32 %v2960_v1, %v505_v51  ;;  %3501 = vmatpush1.bf16.msra.mxu0 %v4232_v52  ;;  %v3002_v10 = vadd.f32 %v3001_v7, %v513_v53  ;;  %3542 = vmatpush1.bf16.msra.mxu1 %v4234_v54  ;;  %v4040_v51 = vcombine.low %v208_v40, %v232_v41  ;;  %v65_v7 = vld [vmem:[#allocation2 + $0xb8] sm:$0xff] }
 0x181   :  { %v2962_v9 = vpop.f32.mrf.mxu0  ;;  %3502 = vmatprep.subr.bf16.mxu0 %v4185_v56  ;;  %v3003_v16 = vpop.f32.mrf.mxu1  ;;  %3543 = vmatprep.subr.bf16.mxu1 %v4187_v59  ;;  %v4042_v52 = vcombine.low %v209_v43, %v233_v44  ;;  %v3993_v53 = vcombine.high %v160_v31, %v184_v48  ;;  %v3995_v54 = vcombine.high %v161_v49, %v185_v50  ;;  %v112_v56 = vld [vmem:[#allocation2 + $0x230] sm:$0xff]  ;;  %v113_v59 = vld [vmem:[#allocation2 + $0x238] sm:$0xff] }
 0x182   :  { %v3598_v14 = vmax.f32 %v2961_v6, 0.0  ;;  %v2963_v15 = vadd.f32 %v2962_v9, %v509_v58  ;;  %3532 = vmatprep.mubr.bf16.mxu0 %v4339_v0  ;;  %v3600_v21 = vmax.f32 %v3002_v10, 0.0  ;;  %v3004_v24 = vadd.f32 %v3003_v16, %v517_v3  ;;  %3573 = vmatprep.mubr.bf16.mxu1 %v4339_v0  ;;  %v136_v58 = vld [vmem:[#allocation2 + $0x2f0] sm:$0xff] }
 0x183   :  { %v2964_v25 = vpop.f32.mrf.mxu0  ;;  %v3005_v32 = vpop.f32.mrf.mxu1  ;;  %v4088_v0 = vcombine.low %v256_v18, %v280_v19  ;;  %v3994_v1 = vcombine.low %v161_v49, %v185_v50  ;;  %v3945_v3 = vcombine.high %v112_v56, %v136_v58  ;;  %v3947_v4 = vcombine.high %v113_v59, %v137_v61  ;;  %v88_v6 = vld [vmem:[#allocation2 + $0x170] sm:$0xff] }
 0x184   :  { %v3599_v30 = vmax.f32 %v2963_v15, 0.0  ;;  %3503 = vmatpush1.bf16.msra.mxu0 %v4184_v8  ;;  %v3601_v22 = vmax.f32 %v3004_v24, 0.0  ;;  %3544 = vmatpush1.bf16.msra.mxu1 %v4186_v11  ;;  %v89_v8 = vld [vmem:[#allocation2 + $0x178] sm:$0xff]  ;;  %v3944_v10 = vcombine.low %v112_v56, %v136_v58  ;;  %v3946_v9 = vcombine.low %v113_v59, %v137_v61 }
 0x185   :  { %v2965_v34 = vpop.f32.mrf.mxu0  ;;  %3504 = vmatprep.subr.bf16.mxu0 %v4137_v13  ;;  %v3006_v38 = vpop.f32.mrf.mxu1  ;;  %3545 = vmatprep.subr.bf16.mxu1 %v4139_v17  ;;  %v3897_v11 = vcombine.high %v64_v5, %v88_v6  ;;  %v3899_v13 = vcombine.high %v65_v7, %v89_v8  ;;  %v3898_v15 = vcombine.low %v65_v7, %v89_v8 }
 0x186   :  { %v4268_v12 = vpack.c.bf16 %v3599_v30, %v3598_v14  ;;  %v4269_v42 = vpack.c.bf16 %v3601_v22, %v3600_v21  ;;  %v3896_v14 = vcombine.low %v64_v5, %v88_v6  ;;  %v521_v16 = vrot.slane %v4504_v45, %v4437_v55 }
 0x187   :  { %v529_v17 = vrot.slane %v4504_v45, %v4440_v57  ;;  %v525_v18 = vrot.slane %v4504_v45, %v4443_v60  ;;  %v533_v21 = vrot.slane %v4504_v45, %v4446_v63  ;;  %v429_v45 = vld [vmem:[#allocation4 + $0x18] sm:$0xff] }
 0x188   :  { %3830 = vst [vmem:[%s4608_s3 + $0x40] sm:$0xff] %v4268_v12  ;;  %3505 = vmatpush1.bf16.msra.mxu0 %v4136_v33  ;;  %3831 = vst [vmem:[%s4608_s3 + $0x48] sm:$0xff] %v4269_v42  ;;  %3546 = vmatpush1.bf16.msra.mxu1 %v4138_v36  ;;  %v545_v43 = vrot.slane %v429_v45, %v4410_v23  ;;  %v541_v44 = vrot.slane %v429_v45, %v4413_v26 }
 0x189   :  { %3506 = vmatprep.subr.bf16.mxu0 %v4089_v37  ;;  %3547 = vmatprep.subr.bf16.mxu1 %v4091_v39  ;;  %v561_v5 = vrot.slane %v429_v45, %v4440_v57  ;;  %v557_v6 = vrot.slane %v429_v45, %v4443_v60  ;;  %v565_v8 = vrot.slane %v429_v45, %v4446_v63 }
 0x18c   :  { %3507 = vmatpush1.bf16.msra.mxu0 %v4088_v0  ;;  %3548 = vmatpush1.bf16.msra.mxu1 %v4090_v35  ;;  %v549_v35 = vrot.slane %v429_v45, %v4416_v29 }
 0x18d   :  { %3508 = vmatprep.subr.bf16.mxu0 %v4041_v46  ;;  %3549 = vmatprep.subr.bf16.mxu1 %v4043_v47 }
 0x190   :  { %3509 = vmatpush1.bf16.msra.mxu0 %v4040_v51  ;;  %3550 = vmatpush1.bf16.msra.mxu1 %v4042_v52 }
 0x191   :  { %3510 = vmatprep.subr.bf16.mxu0 %v3993_v53  ;;  %3551 = vmatprep.subr.bf16.mxu1 %v3995_v54 }
 0x194   :  { %3511 = vmatpush1.bf16.msra.mxu0 %v3992_v62  ;;  %3552 = vmatpush1.bf16.msra.mxu1 %v3994_v1 }
 0x195   :  { %3512 = vmatprep.subr.bf16.mxu0 %v3945_v3  ;;  %3553 = vmatprep.subr.bf16.mxu1 %v3947_v4  ;;  %v553_v4 = vrot.slane %v429_v45, %v4437_v55 }
 0x198   :  { %3513 = vmatpush1.bf16.msra.mxu0 %v3944_v10  ;;  %3554 = vmatpush1.bf16.msra.mxu1 %v3946_v9 }
 0x199   :  { %3514 = vmatprep.subr.bf16.mxu0 %v3897_v11  ;;  %3555 = vmatprep.subr.bf16.mxu1 %v3899_v13 }
 0x19c   :  { %3515 = vmatpush1.bf16.msra.mxu0 %v3896_v14  ;;  %3556 = vmatpush1.bf16.msra.mxu1 %v3898_v15 }
 0x19f   :  { %v3042_v19 = vpop.f32.mrf.mxu0  ;;  %3533 = vmatmul.mubr.bf16.vlgmr.msra.gmra.mxu0 %v4515_v2  ;;  %v3083_v25 = vpop.f32.mrf.mxu1  ;;  %3574 = vmatmul.mubr.bf16.vlgmr.msra.gmra.mxu1 %v4515_v2  ;;  %v537_v2 = vrot.slane %v429_v45, %v4405_v20 }
 0x1a0   :  { %v3043_v24 = vadd.f32 %v3042_v19, %v521_v16  ;;  %v3084_v27 = vadd.f32 %v3083_v25, %v529_v17 }
 0x1a1   :  { %v3044_v28 = vpop.f32.mrf.mxu0  ;;  %v3085_v33 = vpop.f32.mrf.mxu1 }
 0x1a2   :  { %v3602_v30 = vmax.f32 %v3043_v24, 0.0  ;;  %v3045_v32 = vadd.f32 %v3044_v28, %v525_v18  ;;  %v3604_v22 = vmax.f32 %v3084_v27, 0.0  ;;  %v3086_v34 = vadd.f32 %v3085_v33, %v533_v21  ;;  %v430_v33 = vld [vmem:[#allocation4 + $0x20] sm:$0xff] }
 0x1a3   :  { %v3046_v36 = vpop.f32.mrf.mxu0  ;;  %v3087_v12 = vpop.f32.mrf.mxu1 }
 0x1a4   :  { %v3603_v37 = vmax.f32 %v3045_v32, 0.0  ;;  %v3605_v38 = vmax.f32 %v3086_v34, 0.0  ;;  %v577_v34 = vrot.slane %v430_v33, %v4410_v23  ;;  %v573_v36 = vrot.slane %v430_v33, %v4413_v26 }
 0x1a5   :  { %v3047_v39 = vpop.f32.mrf.mxu0  ;;  %v3088_v41 = vpop.f32.mrf.mxu1  ;;  %v581_v12 = vrot.slane %v430_v33, %v4416_v29 }
 0x1a6   :  { %v4270_v40 = vpack.c.bf16 %v3603_v37, %v3602_v30  ;;  %v4271_v42 = vpack.c.bf16 %v3605_v38, %v3604_v22  ;;  %v569_v22 = vrot.slane %v430_v33, %v4405_v20 }
 0x1a8   :  { %3832 = vst [vmem:[%s4608_s3 + $0x50] sm:$0xff] %v4270_v40  ;;  %3833 = vst [vmem:[%s4608_s3 + $0x58] sm:$0xff] %v4271_v42 }
 0x1bf   :  { %v3124_v0 = vpop.f32.mrf.mxu0  ;;  %v3165_v47 = vpop.f32.mrf.mxu1 }
 0x1c0   :  { %v3125_v46 = vadd.f32 %v3124_v0, %v537_v2  ;;  %v3166_v31 = vadd.f32 %v3165_v47, %v545_v43 }
 0x1c1   :  { %v3126_v48 = vpop.f32.mrf.mxu0  ;;  %v3167_v51 = vpop.f32.mrf.mxu1 }
 0x1c2   :  { %v3606_v49 = vmax.f32 %v3125_v46, 0.0  ;;  %v3127_v50 = vadd.f32 %v3126_v48, %v541_v44  ;;  %v3608_v52 = vmax.f32 %v3166_v31, 0.0  ;;  %v3168_v53 = vadd.f32 %v3167_v51, %v549_v35 }
 0x1c3   :  { %v3128_v54 = vpop.f32.mrf.mxu0  ;;  %v3169_v58 = vpop.f32.mrf.mxu1  ;;  %v585_v51 = vrot.slane %v430_v33, %v4437_v55 }
 0x1c4   :  { %v3607_v56 = vmax.f32 %v3127_v50, 0.0  ;;  %v3609_v59 = vmax.f32 %v3168_v53, 0.0  ;;  %v589_v53 = vrot.slane %v430_v33, %v4443_v60 }
 0x1c5   :  { %v3129_v61 = vpop.f32.mrf.mxu0  ;;  %v3170_v1 = vpop.f32.mrf.mxu1 }
 0x1c6   :  { %v4272_v62 = vpack.c.bf16 %v3607_v56, %v3606_v49  ;;  %v4273_v3 = vpack.c.bf16 %v3609_v59, %v3608_v52  ;;  %v593_v52 = vrot.slane %v430_v33, %v4440_v57  ;;  %v597_v56 = vrot.slane %v430_v33, %v4446_v63 }
 0x1c8   :  { %3834 = vst [vmem:[%s4608_s3 + $0x60] sm:$0xff] %v4272_v62  ;;  %3835 = vst [vmem:[%s4608_s3 + $0x68] sm:$0xff] %v4273_v3 }
 0x1df   :  { %v3206_v7 = vpop.f32.mrf.mxu0  ;;  %v3247_v9 = vpop.f32.mrf.mxu1 }
 0x1e0   :  { %v3207_v10 = vadd.f32 %v3206_v7, %v553_v4  ;;  %v3248_v11 = vadd.f32 %v3247_v9, %v561_v5 }
 0x1e1   :  { %v3208_v13 = vpop.f32.mrf.mxu0  ;;  %v3249_v16 = vpop.f32.mrf.mxu1 }
 0x1e2   :  { %v3610_v14 = vmax.f32 %v3207_v10, 0.0  ;;  %v3209_v15 = vadd.f32 %v3208_v13, %v557_v6  ;;  %v3612_v17 = vmax.f32 %v3248_v11, 0.0  ;;  %v3250_v18 = vadd.f32 %v3249_v16, %v565_v8  ;;  %v431_v16 = vld [vmem:[#allocation4 + $0x28] sm:$0xff] }
 0x1e3   :  { %v3210_v19 = vpop.f32.mrf.mxu0  ;;  %v3251_v24 = vpop.f32.mrf.mxu1 }
 0x1e4   :  { %v3611_v21 = vmax.f32 %v3209_v15, 0.0  ;;  %v3613_v25 = vmax.f32 %v3250_v18, 0.0  ;;  %v609_v18 = vrot.slane %v431_v16, %v4410_v23  ;;  %v605_v19 = vrot.slane %v431_v16, %v4413_v26 }
 0x1e5   :  { %v3211_v27 = vpop.f32.mrf.mxu0  ;;  %v3252_v30 = vpop.f32.mrf.mxu1  ;;  %v613_v24 = vrot.slane %v431_v16, %v4416_v29  ;;  %v617_v29 = vrot.slane %v431_v16, %v4437_v55 }
 0x1e6   :  { %v4274_v28 = vpack.c.bf16 %v3611_v21, %v3610_v14  ;;  %v4275_v32 = vpack.c.bf16 %v3613_v25, %v3612_v17  ;;  %v601_v17 = vrot.slane %v431_v16, %v4405_v20 }
 0x1e8   :  { %3836 = vst [vmem:[%s4608_s3 + $0x70] sm:$0xff] %v4274_v28  ;;  %3837 = vst [vmem:[%s4608_s3 + $0x78] sm:$0xff] %v4275_v32 }
 0x1ff   :  { %v3288_v37 = vpop.f32.mrf.mxu0  ;;  %v3329_v39 = vpop.f32.mrf.mxu1 }
 0x200   :  { %v3289_v38 = vadd.f32 %v3288_v37, %v569_v22  ;;  %v3330_v40 = vadd.f32 %v3329_v39, %v577_v34 }
 0x201   :  { %v3290_v41 = vpop.f32.mrf.mxu0  ;;  %v3331_v2 = vpop.f32.mrf.mxu1 }
 0x202   :  { %v3614_v42 = vmax.f32 %v3289_v38, 0.0  ;;  %v3291_v45 = vadd.f32 %v3290_v41, %v573_v36  ;;  %v3616_v43 = vmax.f32 %v3330_v40, 0.0  ;;  %v3332_v44 = vadd.f32 %v3331_v2, %v581_v12 }
 0x203   :  { %v3292_v0 = vpop.f32.mrf.mxu0  ;;  %v3333_v46 = vpop.f32.mrf.mxu1  ;;  %v625_v41 = vrot.slane %v431_v16, %v4440_v57  ;;  %v629_v2 = vrot.slane %v431_v16, %v4446_v63 }
 0x204   :  { %v3615_v35 = vmax.f32 %v3291_v45, 0.0  ;;  %v3617_v47 = vmax.f32 %v3332_v44, 0.0 }
 0x205   :  { %v3293_v31 = vpop.f32.mrf.mxu0  ;;  %v3334_v49 = vpop.f32.mrf.mxu1 }
 0x206   :  { %v4276_v48 = vpack.c.bf16 %v3615_v35, %v3614_v42  ;;  %v4277_v50 = vpack.c.bf16 %v3617_v47, %v3616_v43  ;;  %v621_v42 = vrot.slane %v431_v16, %v4443_v60 }
 0x208   :  { %3838 = vst [vmem:[%s4608_s3 + $0x80] sm:$0xff] %v4276_v48  ;;  %3839 = vst [vmem:[%s4608_s3 + $0x88] sm:$0xff] %v4277_v50 }
 0x21f   :  { %v3370_v54 = vpop.f32.mrf.mxu0  ;;  %v3411_v59 = vpop.f32.mrf.mxu1 }
 0x220   :  { %v3371_v58 = vadd.f32 %v3370_v54, %v585_v51  ;;  %v3412_v61 = vadd.f32 %v3411_v59, %v593_v52 }
 0x221   :  { %v3372_v62 = vpop.f32.mrf.mxu0  ;;  %v3413_v4 = vpop.f32.mrf.mxu1 }
 0x222   :  { %v3618_v1 = vmax.f32 %v3371_v58, 0.0  ;;  %v3373_v3 = vadd.f32 %v3372_v62, %v589_v53  ;;  %v3620_v5 = vmax.f32 %v3412_v61, 0.0  ;;  %v3414_v6 = vadd.f32 %v3413_v4, %v597_v56 }
 0x223   :  { %v3374_v7 = vpop.f32.mrf.mxu0  ;;  %v3415_v10 = vpop.f32.mrf.mxu1 }
 0x224   :  { %v3619_v8 = vmax.f32 %v3373_v3, 0.0  ;;  %v3621_v9 = vmax.f32 %v3414_v6, 0.0 }
 0x225   :  { %v3375_v11 = vpop.f32.mrf.mxu0  ;;  %v3416_v14 = vpop.f32.mrf.mxu1 }
 0x226   :  { %v4278_v13 = vpack.c.bf16 %v3619_v8, %v3618_v1  ;;  %v4279_v15 = vpack.c.bf16 %v3621_v9, %v3620_v5 }
 0x228   :  { %3840 = vst [vmem:[%s4608_s3 + $0x90] sm:$0xff] %v4278_v13  ;;  %3841 = vst [vmem:[%s4608_s3 + $0x98] sm:$0xff] %v4279_v15 }
 0x23f   :  { %v3452_v21 = vpop.f32.mrf.mxu0  ;;  %v3493_v27 = vpop.f32.mrf.mxu1 }
 0x240   :  { %v3453_v25 = vadd.f32 %v3452_v21, %v601_v17  ;;  %v3494_v28 = vadd.f32 %v3493_v27, %v609_v18 }
 0x241   :  { %v3454_v30 = vpop.f32.mrf.mxu0  ;;  %v3495_v22 = vpop.f32.mrf.mxu1 }
 0x242   :  { %v3622_v32 = vmax.f32 %v3453_v25, 0.0  ;;  %v3455_v33 = vadd.f32 %v3454_v30, %v605_v19  ;;  %v3624_v34 = vmax.f32 %v3494_v28, 0.0  ;;  %v3496_v36 = vadd.f32 %v3495_v22, %v613_v24 }
 0x243   :  { %v3456_v37 = vpop.f32.mrf.mxu0  ;;  %v3497_v38 = vpop.f32.mrf.mxu1 }
 0x244   :  { %v3623_v12 = vmax.f32 %v3455_v33, 0.0  ;;  %v3625_v20 = vmax.f32 %v3496_v36, 0.0 }
 0x245   :  { %v3457_v39 = vpop.f32.mrf.mxu0  ;;  %v3498_v40 = vpop.f32.mrf.mxu1 }
 0x246   :  { %v4280_v23 = vpack.c.bf16 %v3623_v12, %v3622_v32  ;;  %v4281_v26 = vpack.c.bf16 %v3625_v20, %v3624_v34 }
 0x248   :  { %3842 = vst [vmem:[%s4608_s3 + $0xa0] sm:$0xff] %v4280_v23  ;;  %3843 = vst [vmem:[%s4608_s3 + $0xa8] sm:$0xff] %v4281_v26 }
 0x25f   :  { %v3534_v45 = vpop.f32.mrf.mxu0  ;;  %v3575_v44 = vpop.f32.mrf.mxu1 }
 0x260   :  { %v3535_v43 = vadd.f32 %v3534_v45, %v617_v29  ;;  %v3576_v0 = vadd.f32 %v3575_v44, %v625_v41 }
 0x261   :  { %v3536_v35 = vpop.f32.mrf.mxu0  ;;  %v3577_v47 = vpop.f32.mrf.mxu1 }
 0x262   :  { %v3537_v46 = vadd.f32 %v3536_v35, %v621_v42  ;;  %v3578_v31 = vadd.f32 %v3577_v47, %v629_v2  ;;  %v3626_v49 = vmax.f32 %v3535_v43, 0.0  ;;  %v3628_v52 = vmax.f32 %v3576_v0, 0.0 }
 0x263   :  { %v3538_v48 = vpop.f32.mrf.mxu0  ;;  %v3579_v51 = vpop.f32.mrf.mxu1 }
 0x264   :  { %v3627_v50 = vmax.f32 %v3537_v46, 0.0  ;;  %v3629_v55 = vmax.f32 %v3578_v31, 0.0 }
 0x265   :  { %v3539_v53 = vpop.f32.mrf.mxu0  ;;  %v3580_v54 = vpop.f32.mrf.mxu1 }
 0x266   :  { %v4282_v57 = vpack.c.bf16 %v3627_v50, %v3626_v49  ;;  %v4283_v60 = vpack.c.bf16 %v3629_v55, %v3628_v52 }
 0x268   :  { %3844 = vst [vmem:[%s4608_s3 + $0xb0] sm:$0xff] %v4282_v57  ;;  %3845 = vst [vmem:[%s4608_s3 + $0xb8] sm:$0xff] %v4283_v60 }
 0x269   :  { %3850 = vsyncpa [#allocation3], 1 }
 0x26a   :  { %3851 = vsyncpa [#allocation5], 1 }

// kernel: convcgenerator_forward.6
= control target key start
LH: loop header
LB: loop body
LE: loop exit
PB: predicated region body
PF: predicated region fallthrough
CT: control target
= control target key end

     0   :  { %s1903_s1 = inlined_call_operand.vmem [shape: bf16[512,256], index: 1, kind: input, shape index: {}]   ;;  %s1904_s0 = inlined_call_operand.vmem [shape: bf16[168,512], index: 0, kind: input, shape index: {}]   ;;  %s1905_s2 = inlined_call_operand.vmem [shape: f32[1,256], index: 2, kind: input, shape index: {}]   ;;  %s1906_s3 = inlined_call_operand.vmem [shape: bf16[168,256], index: 3, kind: output, shape index: {}]  }
   0x1   :  { %v1293_v0 = vld [vmem:[%s1903_s1 + $0x74] ss:$8 sps:$4 sm:$0xff]   ;;  %v1297_v2 = vld [vmem:[%s1903_s1 + $0x70] ss:$8 sps:$4 sm:$0xff]   ;;  %v1299_v4 = vld [vmem:[%s1903_s1 + $0x64] ss:$8 sps:$4 sm:$0xff]  }
   0x2   :  { %v1295_v1 = vld [vmem:[%s1903_s1 + $0x174] ss:$8 sps:$4 sm:$0xff]   ;;  %666 = vmatprep.subr.bf16.mxu0 %v1293_v0  ;;  %v1298_v3 = vld [vmem:[%s1903_s1 + $0x170] ss:$8 sps:$4 sm:$0xff]   ;;  %v1301_v5 = vld [vmem:[%s1903_s1 + $0x164] ss:$8 sps:$4 sm:$0xff]  }
   0x3   :  { %807 = vmatprep.subr.bf16.mxu1 %v1295_v1  ;;  %667 = vmatpush1.bf16.msra.mxu0 %v1297_v2  ;;  %v1303_v6 = vld [vmem:[%s1903_s1 + $0x60] ss:$8 sps:$4 sm:$0xff]   ;;  %v1305_v8 = vld [vmem:[%s1903_s1 + $0x54] ss:$8 sps:$4 sm:$0xff]   ;;  %v1309_v10 = vld [vmem:[%s1903_s1 + $0x50] ss:$8 sps:$4 sm:$0xff]  }
   0x4   :  { %808 = vmatpush1.bf16.msra.mxu1 %v1298_v3  ;;  %668 = vmatprep.subr.bf16.mxu0 %v1299_v4  ;;  %v1304_v7 = vld [vmem:[%s1903_s1 + $0x160] ss:$8 sps:$4 sm:$0xff]   ;;  %v1307_v9 = vld [vmem:[%s1903_s1 + $0x154] ss:$8 sps:$4 sm:$0xff]   ;;  %v1310_v11 = vld [vmem:[%s1903_s1 + $0x150] ss:$8 sps:$4 sm:$0xff]  }
   0x5   :  { %809 = vmatprep.subr.bf16.mxu1 %v1301_v5  ;;  %v1311_v12 = vld [vmem:[%s1903_s1 + $0x44] ss:$8 sps:$4 sm:$0xff]   ;;  %v1315_v14 = vld [vmem:[%s1903_s1 + $0x40] ss:$8 sps:$4 sm:$0xff]   ;;  %v1317_v16 = vld [vmem:[%s1903_s1 + $0x34] ss:$8 sps:$4 sm:$0xff]  }
   0x6   :  { %v1313_v13 = vld [vmem:[%s1903_s1 + $0x144] ss:$8 sps:$4 sm:$0xff]   ;;  %v1316_v15 = vld [vmem:[%s1903_s1 + $0x140] ss:$8 sps:$4 sm:$0xff]   ;;  %v1319_v17 = vld [vmem:[%s1903_s1 + $0x134] ss:$8 sps:$4 sm:$0xff]  }
   0x7   :  { %669 = vmatpush1.bf16.msra.mxu0 %v1303_v6  ;;  %v1321_v18 = vld [vmem:[%s1903_s1 + $0x30] ss:$8 sps:$4 sm:$0xff]   ;;  %v1323_v20 = vld [vmem:[%s1903_s1 + $0x24] ss:$8 sps:$4 sm:$0xff]   ;;  %v1327_v22 = vld [vmem:[%s1903_s1 + $0x20] ss:$8 sps:$4 sm:$0xff]  }
   0x8   :  { %810 = vmatpush1.bf16.msra.mxu1 %v1304_v7  ;;  %670 = vmatprep.subr.bf16.mxu0 %v1305_v8  ;;  %v1322_v19 = vld [vmem:[%s1903_s1 + $0x130] ss:$8 sps:$4 sm:$0xff]   ;;  %v1325_v21 = vld [vmem:[%s1903_s1 + $0x124] ss:$8 sps:$4 sm:$0xff]   ;;  %v1328_v23 = vld [vmem:[%s1903_s1 + $0x120] ss:$8 sps:$4 sm:$0xff]  }
   0x9   :  { %811 = vmatprep.subr.bf16.mxu1 %v1307_v9  ;;  %v1329_v24 = vld [vmem:[%s1903_s1 + $0x14] ss:$8 sps:$4 sm:$0xff]   ;;  %v1333_v26 = vld [vmem:[%s1903_s1 + $0x10] ss:$8 sps:$4 sm:$0xff]   ;;  %v1335_v28 = vld [vmem:[%s1903_s1 + $0x4] ss:$8 sps:$4 sm:$0xff]  }
   0xa   :  { %v1331_v25 = vld [vmem:[%s1903_s1 + $0x114] ss:$8 sps:$4 sm:$0xff]   ;;  %v1334_v27 = vld [vmem:[%s1903_s1 + $0x110] ss:$8 sps:$4 sm:$0xff]   ;;  %v1337_v29 = vld [vmem:[%s1903_s1 + $0x104] ss:$8 sps:$4 sm:$0xff]  }
   0xb   :  { %671 = vmatpush1.bf16.msra.mxu0 %v1309_v10  ;;  %v1339_v30 = vld [vmem:[%s1903_s1] ss:$8 sps:$4 sm:$0xff]   ;;  %v1341_v32 = vld [vmem:[%s1903_s1 + $0xf4] ss:$8 sps:$4 sm:$0xff]   ;;  %v1345_v34 = vld [vmem:[%s1903_s1 + $0xf0] ss:$8 sps:$4 sm:$0xff]  }
   0xc   :  { %812 = vmatpush1.bf16.msra.mxu1 %v1310_v11  ;;  %672 = vmatprep.subr.bf16.mxu0 %v1311_v12  ;;  %v1340_v31 = vld [vmem:[%s1903_s1 + $0x100] ss:$8 sps:$4 sm:$0xff]   ;;  %v1343_v33 = vld [vmem:[%s1903_s1 + $0x1f4] ss:$8 sps:$4 sm:$0xff]   ;;  %v1346_v35 = vld [vmem:[%s1903_s1 + $0x1f0] ss:$8 sps:$4 sm:$0xff]  }
   0xd   :  { %813 = vmatprep.subr.bf16.mxu1 %v1313_v13  ;;  %v1347_v36 = vld [vmem:[%s1903_s1 + $0xe4] ss:$8 sps:$4 sm:$0xff]   ;;  %v1351_v38 = vld [vmem:[%s1903_s1 + $0xe0] ss:$8 sps:$4 sm:$0xff]   ;;  %v1353_v40 = vld [vmem:[%s1903_s1 + $0xd4] ss:$8 sps:$4 sm:$0xff]  }
   0xe   :  { %v1349_v37 = vld [vmem:[%s1903_s1 + $0x1e4] ss:$8 sps:$4 sm:$0xff]   ;;  %v1352_v39 = vld [vmem:[%s1903_s1 + $0x1e0] ss:$8 sps:$4 sm:$0xff]   ;;  %v1355_v41 = vld [vmem:[%s1903_s1 + $0x1d4] ss:$8 sps:$4 sm:$0xff]  }
   0xf   :  { %673 = vmatpush1.bf16.msra.mxu0 %v1315_v14  ;;  %v1357_v42 = vld [vmem:[%s1903_s1 + $0xd0] ss:$8 sps:$4 sm:$0xff]   ;;  %v1359_v44 = vld [vmem:[%s1903_s1 + $0xc4] ss:$8 sps:$4 sm:$0xff]   ;;  %v1363_v46 = vld [vmem:[%s1903_s1 + $0xc0] ss:$8 sps:$4 sm:$0xff]  }
  0x10   :  { %814 = vmatpush1.bf16.msra.mxu1 %v1316_v15  ;;  %674 = vmatprep.subr.bf16.mxu0 %v1317_v16  ;;  %v1358_v43 = vld [vmem:[%s1903_s1 + $0x1d0] ss:$8 sps:$4 sm:$0xff]   ;;  %v1361_v45 = vld [vmem:[%s1903_s1 + $0x1c4] ss:$8 sps:$4 sm:$0xff]   ;;  %v1364_v47 = vld [vmem:[%s1903_s1 + $0x1c0] ss:$8 sps:$4 sm:$0xff]  }
  0x11   :  { %815 = vmatprep.subr.bf16.mxu1 %v1319_v17  ;;  %v1365_v48 = vld [vmem:[%s1903_s1 + $0xb4] ss:$8 sps:$4 sm:$0xff]   ;;  %v1369_v52 = vld [vmem:[%s1903_s1 + $0xb0] ss:$8 sps:$4 sm:$0xff]   ;;  %v1371_v54 = vld [vmem:[%s1903_s1 + $0xa4] ss:$8 sps:$4 sm:$0xff]  }
  0x12   :  { %v1391_v49 = vld [vmem:[%s1904_s0 + $0x4] ss:$16 sps:$4 sm:$0xff]   ;;  %v1394_v51 = vld [vmem:[%s1904_s0 + $0xc] ss:$16 sps:$4 sm:$0xff]   ;;  %v1370_v53 = vld [vmem:[%s1903_s1 + $0x1b0] ss:$8 sps:$4 sm:$0xff]  }
  0x13   :  { %675 = vmatpush1.bf16.msra.mxu0 %v1321_v18  ;;  %v1367_v50 = vld [vmem:[%s1903_s1 + $0x1b4] ss:$8 sps:$4 sm:$0xff]   ;;  %698 = vmatprep.mubr.bf16.mxu0 %v1391_v49  ;;  %v1373_v55 = vld [vmem:[%s1903_s1 + $0x1a4] ss:$8 sps:$4 sm:$0xff]   ;;  %v1375_v56 = vld [vmem:[%s1903_s1 + $0xa0] ss:$8 sps:$4 sm:$0xff]  }
  0x14   :  { %816 = vmatpush1.bf16.msra.mxu1 %v1322_v19  ;;  %676 = vmatprep.subr.bf16.mxu0 %v1323_v20  ;;  %v1376_v57 = vld [vmem:[%s1903_s1 + $0x1a0] ss:$8 sps:$4 sm:$0xff]   ;;  %v1377_v58 = vld [vmem:[%s1903_s1 + $0x94] ss:$8 sps:$4 sm:$0xff]   ;;  %v1381_v60 = vld [vmem:[%s1903_s1 + $0x90] ss:$8 sps:$4 sm:$0xff]  }
  0x15   :  { %817 = vmatprep.subr.bf16.mxu1 %v1325_v21  ;;  %839 = vmatprep.mubr.bf16.mxu1 %v1394_v51  ;;  %v1379_v59 = vld [vmem:[%s1903_s1 + $0x194] ss:$8 sps:$4 sm:$0xff]   ;;  %v1382_v61 = vld [vmem:[%s1903_s1 + $0x190] ss:$8 sps:$4 sm:$0xff]   ;;  %v1383_v62 = vld [vmem:[%s1903_s1 + $0x84] ss:$8 sps:$4 sm:$0xff]  }
  0x16   :  { %v1385_v63 = vld [vmem:[%s1903_s1 + $0x184] ss:$8 sps:$4 sm:$0xff]   ;;  %v1387_v0 = vld [vmem:[%s1903_s1 + $0x80] ss:$8 sps:$4 sm:$0xff]  }
  0x17   :  { %677 = vmatpush1.bf16.msra.mxu0 %v1327_v22  ;;  %v1388_v1 = vld [vmem:[%s1903_s1 + $0x180] ss:$8 sps:$4 sm:$0xff]   ;;  %v1395_v4 = vld [vmem:[%s1904_s0 + $0x24] ss:$16 sps:$4 sm:$0xff]   ;;  %v1397_v5 = vld [vmem:[%s1904_s0 + $0x2c] ss:$16 sps:$4 sm:$0xff]  }
  0x18   :  { %818 = vmatpush1.bf16.msra.mxu1 %v1328_v23  ;;  %678 = vmatprep.subr.bf16.mxu0 %v1329_v24  ;;  %v1389_v2 = vld [vmem:[%s1904_s0] ss:$16 sps:$4 sm:$0xff]   ;;  %v1392_v3 = vld [vmem:[%s1904_s0 + $0x8] ss:$16 sps:$4 sm:$0xff]   ;;  %v1401_v8 = vld [vmem:[%s1904_s0 + $0x44] ss:$16 sps:$4 sm:$0xff]  }
  0x19   :  { %819 = vmatprep.subr.bf16.mxu1 %v1331_v25  ;;  %v1399_v6 = vld [vmem:[%s1904_s0 + $0x20] ss:$16 sps:$4 sm:$0xff]   ;;  %v1400_v7 = vld [vmem:[%s1904_s0 + $0x28] ss:$16 sps:$4 sm:$0xff]   ;;  %v1403_v9 = vld [vmem:[%s1904_s0 + $0x4c] ss:$16 sps:$4 sm:$0xff]  }
  0x1a   :  { %v1405_v10 = vld [vmem:[%s1904_s0 + $0x40] ss:$16 sps:$4 sm:$0xff]   ;;  %v1406_v11 = vld [vmem:[%s1904_s0 + $0x48] ss:$16 sps:$4 sm:$0xff]   ;;  %v1407_v12 = vld [vmem:[%s1904_s0 + $0x64] ss:$16 sps:$4 sm:$0xff]  }
  0x1b   :  { %679 = vmatpush1.bf16.msra.mxu0 %v1333_v26  ;;  %v1409_v13 = vld [vmem:[%s1904_s0 + $0x6c] ss:$16 sps:$4 sm:$0xff]   ;;  %v1411_v14 = vld [vmem:[%s1904_s0 + $0x60] ss:$16 sps:$4 sm:$0xff]   ;;  %v1412_v15 = vld [vmem:[%s1904_s0 + $0x68] ss:$16 sps:$4 sm:$0xff]  }
  0x1c   :  { %820 = vmatpush1.bf16.msra.mxu1 %v1334_v27  ;;  %680 = vmatprep.subr.bf16.mxu0 %v1335_v28  ;;  %v1413_v16 = vld [vmem:[%s1904_s0 + $0x84] ss:$16 sps:$4 sm:$0xff]   ;;  %v1415_v17 = vld [vmem:[%s1904_s0 + $0x8c] ss:$16 sps:$4 sm:$0xff]   ;;  %v1417_v18 = vld [vmem:[%s1904_s0 + $0x80] ss:$16 sps:$4 sm:$0xff]  }
  0x1d   :  { %821 = vmatprep.subr.bf16.mxu1 %v1337_v29  ;;  %v1418_v19 = vld [vmem:[%s1904_s0 + $0x88] ss:$16 sps:$4 sm:$0xff]   ;;  %v1419_v20 = vld [vmem:[%s1904_s0 + $0xa4] ss:$16 sps:$4 sm:$0xff]   ;;  %v1421_v21 = vld [vmem:[%s1904_s0 + $0xac] ss:$16 sps:$4 sm:$0xff]  }
  0x1e   :  { %v1423_v22 = vld [vmem:[%s1904_s0 + $0xa0] ss:$16 sps:$4 sm:$0xff]   ;;  %v1424_v23 = vld [vmem:[%s1904_s0 + $0xa8] ss:$16 sps:$4 sm:$0xff]   ;;  %v1425_v24 = vld [vmem:[%s1904_s0 + $0xc4] ss:$16 sps:$4 sm:$0xff]  }
  0x1f   :  { %681 = vmatpush1.bf16.msra.mxu0 %v1339_v30  ;;  %v1427_v25 = vld [vmem:[%s1904_s0 + $0xcc] ss:$16 sps:$4 sm:$0xff]   ;;  %v1429_v26 = vld [vmem:[%s1904_s0 + $0xc0] ss:$16 sps:$4 sm:$0xff]   ;;  %v1430_v27 = vld [vmem:[%s1904_s0 + $0xc8] ss:$16 sps:$4 sm:$0xff]  }
  0x20   :  { %822 = vmatpush1.bf16.msra.mxu1 %v1340_v31  ;;  %682 = vmatprep.subr.bf16.mxu0 %v1341_v32  ;;  %v1431_v28 = vld [vmem:[%s1904_s0 + $0xe4] ss:$16 sps:$4 sm:$0xff]   ;;  %v1433_v29 = vld [vmem:[%s1904_s0 + $0xec] ss:$16 sps:$4 sm:$0xff]   ;;  %v1435_v30 = vld [vmem:[%s1904_s0 + $0xe0] ss:$16 sps:$4 sm:$0xff]  }
  0x21   :  { %823 = vmatprep.subr.bf16.mxu1 %v1343_v33  ;;  %v1436_v31 = vld [vmem:[%s1904_s0 + $0xe8] ss:$16 sps:$4 sm:$0xff]   ;;  %v1437_v32 = vld [vmem:[%s1904_s0 + $0x104] ss:$16 sps:$4 sm:$0xff]   ;;  %v1439_v33 = vld [vmem:[%s1904_s0 + $0x10c] ss:$16 sps:$4 sm:$0xff]  }
  0x22   :  { %v120_v49 = vld [vmem:[%s1905_s2] sm:$0x3] }
  0x23   :  { %683 = vmatpush2.bf16.msra.mxu0 %v1345_v34  ;;  %v1441_v34 = vld [vmem:[%s1904_s0 + $0x100] ss:$16 sps:$4 sm:$0xff]  }
  0x24   :  { %824 = vmatpush2.bf16.msra.mxu1 %v1346_v35  ;;  %684 = vmatprep.subr.bf16.mxu0 %v1347_v36  ;;  %v1442_v35 = vld [vmem:[%s1904_s0 + $0x108] ss:$16 sps:$4 sm:$0xff]   ;;  %v1443_v36 = vld [vmem:[%s1904_s0 + $0x124] ss:$16 sps:$4 sm:$0xff]  }
  0x25   :  { %825 = vmatprep.subr.bf16.mxu1 %v1349_v37  ;;  %v1445_v37 = vld [vmem:[%s1904_s0 + $0x12c] ss:$16 sps:$4 sm:$0xff]  }
  0x27   :  { %685 = vmatpush2.bf16.msra.mxu0 %v1351_v38  ;;  %v54_v38 = vld [vmem:[%s1904_s0 + $0x140] sm:$0xff] }
  0x28   :  { %826 = vmatpush2.bf16.msra.mxu1 %v1352_v39  ;;  %686 = vmatprep.subr.bf16.mxu0 %v1353_v40  ;;  %v55_v39 = vld [vmem:[%s1904_s0 + $0x148] sm:$0xff]  ;;  %v1447_v40 = vld [vmem:[%s1904_s0 + $0x120] ss:$16 sps:$4 sm:$0xff]  }
  0x29   :  { %827 = vmatprep.subr.bf16.mxu1 %v1355_v41  ;;  %v1448_v41 = vld [vmem:[%s1904_s0 + $0x128] ss:$16 sps:$4 sm:$0xff]  }
  0x2b   :  { %687 = vmatpush2.bf16.msra.mxu0 %v1357_v42  ;;  %v1184_v42 = vcombine.high %v54_v38, %v54_v38 }
  0x2c   :  { %828 = vmatpush2.bf16.msra.mxu1 %v1358_v43  ;;  %688 = vmatprep.subr.bf16.mxu0 %v1359_v44  ;;  %v1186_v43 = vcombine.high %v55_v39, %v55_v39  ;;  %v1183_v44 = vcombine.low %v54_v38, %v54_v38 }
  0x2d   :  { %829 = vmatprep.subr.bf16.mxu1 %v1361_v45  ;;  %v1185_v45 = vcombine.low %v55_v39, %v55_v39 }
  0x2f   :  { %689 = vmatpush2.bf16.msra.mxu0 %v1363_v46  ;;  %v122_v46 = vlaneseq }
  0x30   :  { %830 = vmatpush2.bf16.msra.mxu1 %v1364_v47  ;;  %690 = vmatprep.subr.bf16.mxu0 %v1365_v48 }
  0x31   :  { %831 = vmatprep.subr.bf16.mxu1 %v1367_v50  ;;  %v123_v47 = vshrl.u32 %v122_v46, 7 }
  0x33   :  { %691 = vmatpush2.bf16.msra.mxu0 %v1369_v52  ;;  %v124_v48 = vsub.s32 0, %v123_v47  ;;  %v128_v50 = vsub.s32 1, %v123_v47 }
  0x34   :  { %832 = vmatpush2.bf16.msra.mxu1 %v1370_v53  ;;  %692 = vmatprep.subr.bf16.mxu0 %v1371_v54 }
  0x35   :  { %833 = vmatprep.subr.bf16.mxu1 %v1373_v55  ;;  %v1794_v51 = vrot.slane %v120_v49, %v124_v48  ;;  %v1796_v52 = vrot.slane %v120_v49, %v128_v50 }
  0x37   :  { %693 = vmatpush2.bf16.msra.mxu0 %v1375_v56 }
  0x38   :  { %834 = vmatpush2.bf16.msra.mxu1 %v1376_v57  ;;  %694 = vmatprep.subr.bf16.mxu0 %v1377_v58 }
  0x39   :  { %835 = vmatprep.subr.bf16.mxu1 %v1379_v59 }
  0x3b   :  { %695 = vmatpush2.bf16.msra.mxu0 %v1381_v60 }
  0x3c   :  { %836 = vmatpush2.bf16.msra.mxu1 %v1382_v61  ;;  %696 = vmatprep.subr.bf16.mxu0 %v1383_v62 }
  0x3d   :  { %837 = vmatprep.subr.bf16.mxu1 %v1385_v63 }
  0x3f   :  { %697 = vmatpush2.bf16.msra.mxu0 %v1387_v0 }
  0x40   :  { %838 = vmatpush2.bf16.msra.mxu1 %v1388_v1 }
  0x42   :  { %699 = vmatmul.mubr.bf16.vlgmr.msra.gmra.mxu0 %v1389_v2 }
  0x43   :  { %840 = vmatmul.mubr.bf16.vlgmr.msra.gmra.mxu1 %v1392_v3  ;;  %708 = vmatprep.mubr.bf16.mxu0 %v1395_v4 }
  0x44   :  { %849 = vmatprep.mubr.bf16.mxu1 %v1397_v5 }
  0x4a   :  { %709 = vmatmul.mubr.bf16.gmra.mxu0 %v1399_v6 }
  0x4b   :  { %850 = vmatmul.mubr.bf16.gmra.mxu1 %v1400_v7  ;;  %718 = vmatprep.mubr.bf16.mxu0 %v1401_v8 }
  0x4c   :  { %859 = vmatprep.mubr.bf16.mxu1 %v1403_v9 }
  0x52   :  { %719 = vmatmul.mubr.bf16.gmra.mxu0 %v1405_v10 }
  0x53   :  { %860 = vmatmul.mubr.bf16.gmra.mxu1 %v1406_v11  ;;  %728 = vmatprep.mubr.bf16.mxu0 %v1407_v12 }
  0x54   :  { %869 = vmatprep.mubr.bf16.mxu1 %v1409_v13 }
  0x5a   :  { %729 = vmatmul.mubr.bf16.gmra.mxu0 %v1411_v14 }
  0x5b   :  { %870 = vmatmul.mubr.bf16.gmra.mxu1 %v1412_v15  ;;  %738 = vmatprep.mubr.bf16.mxu0 %v1413_v16 }
  0x5c   :  { %879 = vmatprep.mubr.bf16.mxu1 %v1415_v17 }
  0x62   :  { %739 = vmatmul.mubr.bf16.gmra.mxu0 %v1417_v18 }
  0x63   :  { %880 = vmatmul.mubr.bf16.gmra.mxu1 %v1418_v19  ;;  %748 = vmatprep.mubr.bf16.mxu0 %v1419_v20 }
  0x64   :  { %889 = vmatprep.mubr.bf16.mxu1 %v1421_v21 }
  0x6a   :  { %749 = vmatmul.mubr.bf16.gmra.mxu0 %v1423_v22 }
  0x6b   :  { %890 = vmatmul.mubr.bf16.gmra.mxu1 %v1424_v23  ;;  %758 = vmatprep.mubr.bf16.mxu0 %v1425_v24 }
  0x6c   :  { %899 = vmatprep.mubr.bf16.mxu1 %v1427_v25 }
  0x72   :  { %759 = vmatmul.mubr.bf16.gmra.mxu0 %v1429_v26 }
  0x73   :  { %900 = vmatmul.mubr.bf16.gmra.mxu1 %v1430_v27  ;;  %768 = vmatprep.mubr.bf16.mxu0 %v1431_v28 }
  0x74   :  { %909 = vmatprep.mubr.bf16.mxu1 %v1433_v29 }
  0x7a   :  { %769 = vmatmul.mubr.bf16.gmra.mxu0 %v1435_v30 }
  0x7b   :  { %910 = vmatmul.mubr.bf16.gmra.mxu1 %v1436_v31  ;;  %778 = vmatprep.mubr.bf16.mxu0 %v1437_v32 }
  0x7c   :  { %919 = vmatprep.mubr.bf16.mxu1 %v1439_v33 }
  0x82   :  { %779 = vmatmul.mubr.bf16.gmra.mxu0 %v1441_v34 }
  0x83   :  { %920 = vmatmul.mubr.bf16.gmra.mxu1 %v1442_v35  ;;  %788 = vmatprep.mubr.bf16.mxu0 %v1443_v36 }
  0x84   :  { %929 = vmatprep.mubr.bf16.mxu1 %v1445_v37 }
  0x8a   :  { %789 = vmatmul.mubr.bf16.gmra.mxu0 %v1447_v40 }
  0x8b   :  { %930 = vmatmul.mubr.bf16.gmra.mxu1 %v1448_v41  ;;  %798 = vmatprep.mubr.bf16.mxu0 %v1184_v42 }
  0x8c   :  { %939 = vmatprep.mubr.bf16.mxu1 %v1186_v43 }
  0x92   :  { %799 = vmatmul.mubr.bf16.gmra.mxu0 %v1183_v44 }
  0x93   :  { %940 = vmatmul.mubr.bf16.gmra.mxu1 %v1185_v45 }
 0x102   :  { %v700_v53 = vpop.f32.mrf.mxu0 }
 0x103   :  { %v841_v54 = vpop.f32.mrf.mxu1  ;;  %v701_v55 = vadd.f32 %v700_v53, %v1794_v51 }
 0x104   :  { %v702_v56 = vpop.f32.mrf.mxu0 }
 0x105   :  { %v843_v57 = vpop.f32.mrf.mxu1  ;;  %v842_v58 = vadd.f32 %v841_v54, %v701_v55  ;;  %v703_v59 = vadd.f32 %v702_v56, %v1796_v52 }
 0x106   :  { %v704_v60 = vpop.f32.mrf.mxu0 }
 0x107   :  { %v845_v61 = vpop.f32.mrf.mxu1  ;;  %v844_v62 = vadd.f32 %v843_v57, %v703_v59  ;;  %v705_v63 = vadd.f32 %v704_v60, %v1794_v51  ;;  %v948_v2 = vmax.f32 %v842_v58, 0.0 }
 0x108   :  { %v706_v0 = vpop.f32.mrf.mxu0 }
 0x109   :  { %v847_v1 = vpop.f32.mrf.mxu1  ;;  %v949_v3 = vmax.f32 %v844_v62, 0.0  ;;  %v846_v4 = vadd.f32 %v845_v61, %v705_v63  ;;  %v707_v5 = vadd.f32 %v706_v0, %v1796_v52 }
 0x10a   :  { %v710_v6 = vpop.f32.mrf.mxu0 }
 0x10b   :  { %v851_v7 = vpop.f32.mrf.mxu1  ;;  %v1272_v8 = vpack.c.bf16 %v949_v3, %v948_v2  ;;  %v848_v9 = vadd.f32 %v847_v1, %v707_v5  ;;  %v711_v10 = vadd.f32 %v710_v6, %v1794_v51  ;;  %v950_v13 = vmax.f32 %v846_v4, 0.0 }
 0x10c   :  { %v712_v11 = vpop.f32.mrf.mxu0 }
 0x10d   :  { %v853_v12 = vpop.f32.mrf.mxu1  ;;  %1118 = vst [vmem:[%s1906_s3] sm:$0xff] %v1272_v8  ;;  %v951_v14 = vmax.f32 %v848_v9, 0.0  ;;  %v852_v15 = vadd.f32 %v851_v7, %v711_v10  ;;  %v713_v16 = vadd.f32 %v712_v11, %v1796_v52 }
 0x10e   :  { %v714_v17 = vpop.f32.mrf.mxu0 }
 0x10f   :  { %v855_v18 = vpop.f32.mrf.mxu1  ;;  %v1273_v19 = vpack.c.bf16 %v951_v14, %v950_v13  ;;  %v854_v20 = vadd.f32 %v853_v12, %v713_v16  ;;  %v715_v21 = vadd.f32 %v714_v17, %v1794_v51  ;;  %v952_v24 = vmax.f32 %v852_v15, 0.0 }
 0x110   :  { %v716_v22 = vpop.f32.mrf.mxu0 }
 0x111   :  { %v857_v23 = vpop.f32.mrf.mxu1  ;;  %1119 = vst [vmem:[%s1906_s3 + $0x8] sm:$0xff] %v1273_v19  ;;  %v953_v25 = vmax.f32 %v854_v20, 0.0  ;;  %v856_v26 = vadd.f32 %v855_v18, %v715_v21  ;;  %v717_v27 = vadd.f32 %v716_v22, %v1796_v52 }
 0x112   :  { %v720_v28 = vpop.f32.mrf.mxu0 }
 0x113   :  { %v861_v29 = vpop.f32.mrf.mxu1  ;;  %v1274_v30 = vpack.c.bf16 %v953_v25, %v952_v24  ;;  %v858_v31 = vadd.f32 %v857_v23, %v717_v27  ;;  %v721_v32 = vadd.f32 %v720_v28, %v1794_v51  ;;  %v954_v35 = vmax.f32 %v856_v26, 0.0 }
 0x114   :  { %v722_v33 = vpop.f32.mrf.mxu0 }
 0x115   :  { %v863_v34 = vpop.f32.mrf.mxu1  ;;  %1120 = vst [vmem:[%s1906_s3 + $0x10] sm:$0xff] %v1274_v30  ;;  %v955_v36 = vmax.f32 %v858_v31, 0.0  ;;  %v862_v37 = vadd.f32 %v861_v29, %v721_v32  ;;  %v723_v38 = vadd.f32 %v722_v33, %v1796_v52 }
 0x116   :  { %v724_v39 = vpop.f32.mrf.mxu0 }
 0x117   :  { %v865_v40 = vpop.f32.mrf.mxu1  ;;  %v1275_v41 = vpack.c.bf16 %v955_v36, %v954_v35  ;;  %v864_v42 = vadd.f32 %v863_v34, %v723_v38  ;;  %v725_v43 = vadd.f32 %v724_v39, %v1794_v51  ;;  %v956_v46 = vmax.f32 %v862_v37, 0.0 }
 0x118   :  { %v726_v44 = vpop.f32.mrf.mxu0 }
 0x119   :  { %v867_v45 = vpop.f32.mrf.mxu1  ;;  %1121 = vst [vmem:[%s1906_s3 + $0x18] sm:$0xff] %v1275_v41  ;;  %v957_v47 = vmax.f32 %v864_v42, 0.0  ;;  %v866_v48 = vadd.f32 %v865_v40, %v725_v43  ;;  %v727_v49 = vadd.f32 %v726_v44, %v1796_v52 }
 0x11a   :  { %v730_v50 = vpop.f32.mrf.mxu0 }
 0x11b   :  { %v871_v53 = vpop.f32.mrf.mxu1  ;;  %v1276_v54 = vpack.c.bf16 %v957_v47, %v956_v46  ;;  %v868_v55 = vadd.f32 %v867_v45, %v727_v49  ;;  %v731_v56 = vadd.f32 %v730_v50, %v1794_v51  ;;  %v958_v59 = vmax.f32 %v866_v48, 0.0 }
 0x11c   :  { %v732_v57 = vpop.f32.mrf.mxu0 }
 0x11d   :  { %v873_v58 = vpop.f32.mrf.mxu1  ;;  %1122 = vst [vmem:[%s1906_s3 + $0x20] sm:$0xff] %v1276_v54  ;;  %v959_v60 = vmax.f32 %v868_v55, 0.0  ;;  %v872_v61 = vadd.f32 %v871_v53, %v731_v56  ;;  %v733_v62 = vadd.f32 %v732_v57, %v1796_v52 }
 0x11e   :  { %v734_v63 = vpop.f32.mrf.mxu0 }
 0x11f   :  { %v875_v0 = vpop.f32.mrf.mxu1  ;;  %v1277_v1 = vpack.c.bf16 %v959_v60, %v958_v59  ;;  %v874_v2 = vadd.f32 %v873_v58, %v733_v62  ;;  %v735_v3 = vadd.f32 %v734_v63, %v1794_v51  ;;  %v960_v6 = vmax.f32 %v872_v61, 0.0 }
 0x120   :  { %v736_v4 = vpop.f32.mrf.mxu0 }
 0x121   :  { %v877_v5 = vpop.f32.mrf.mxu1  ;;  %1123 = vst [vmem:[%s1906_s3 + $0x28] sm:$0xff] %v1277_v1  ;;  %v961_v7 = vmax.f32 %v874_v2, 0.0  ;;  %v876_v8 = vadd.f32 %v875_v0, %v735_v3  ;;  %v737_v9 = vadd.f32 %v736_v4, %v1796_v52 }
 0x122   :  { %v740_v10 = vpop.f32.mrf.mxu0 }
 0x123   :  { %v881_v11 = vpop.f32.mrf.mxu1  ;;  %v1278_v12 = vpack.c.bf16 %v961_v7, %v960_v6  ;;  %v878_v13 = vadd.f32 %v877_v5, %v737_v9  ;;  %v741_v14 = vadd.f32 %v740_v10, %v1794_v51  ;;  %v962_v17 = vmax.f32 %v876_v8, 0.0 }
 0x124   :  { %v742_v15 = vpop.f32.mrf.mxu0 }
 0x125   :  { %v883_v16 = vpop.f32.mrf.mxu1  ;;  %1124 = vst [vmem:[%s1906_s3 + $0x30] sm:$0xff] %v1278_v12  ;;  %v963_v18 = vmax.f32 %v878_v13, 0.0  ;;  %v882_v19 = vadd.f32 %v881_v11, %v741_v14  ;;  %v743_v20 = vadd.f32 %v742_v15, %v1796_v52 }
 0x126   :  { %v744_v21 = vpop.f32.mrf.mxu0 }
 0x127   :  { %v885_v22 = vpop.f32.mrf.mxu1  ;;  %v1279_v23 = vpack.c.bf16 %v963_v18, %v962_v17  ;;  %v884_v24 = vadd.f32 %v883_v16, %v743_v20  ;;  %v745_v25 = vadd.f32 %v744_v21, %v1794_v51  ;;  %v964_v28 = vmax.f32 %v882_v19, 0.0 }
 0x128   :  { %v746_v26 = vpop.f32.mrf.mxu0 }
 0x129   :  { %v887_v27 = vpop.f32.mrf.mxu1  ;;  %1125 = vst [vmem:[%s1906_s3 + $0x38] sm:$0xff] %v1279_v23  ;;  %v965_v29 = vmax.f32 %v884_v24, 0.0  ;;  %v886_v30 = vadd.f32 %v885_v22, %v745_v25  ;;  %v747_v31 = vadd.f32 %v746_v26, %v1796_v52 }
 0x12a   :  { %v750_v32 = vpop.f32.mrf.mxu0 }
 0x12b   :  { %v891_v33 = vpop.f32.mrf.mxu1  ;;  %v1280_v34 = vpack.c.bf16 %v965_v29, %v964_v28  ;;  %v888_v35 = vadd.f32 %v887_v27, %v747_v31  ;;  %v751_v36 = vadd.f32 %v750_v32, %v1794_v51  ;;  %v966_v39 = vmax.f32 %v886_v30, 0.0 }
 0x12c   :  { %v752_v37 = vpop.f32.mrf.mxu0 }
 0x12d   :  { %v893_v38 = vpop.f32.mrf.mxu1  ;;  %1126 = vst [vmem:[%s1906_s3 + $0x40] sm:$0xff] %v1280_v34  ;;  %v967_v40 = vmax.f32 %v888_v35, 0.0  ;;  %v892_v41 = vadd.f32 %v891_v33, %v751_v36  ;;  %v753_v42 = vadd.f32 %v752_v37, %v1796_v52 }
 0x12e   :  { %v754_v43 = vpop.f32.mrf.mxu0 }
 0x12f   :  { %v895_v44 = vpop.f32.mrf.mxu1  ;;  %v1281_v45 = vpack.c.bf16 %v967_v40, %v966_v39  ;;  %v894_v46 = vadd.f32 %v893_v38, %v753_v42  ;;  %v755_v47 = vadd.f32 %v754_v43, %v1794_v51  ;;  %v968_v50 = vmax.f32 %v892_v41, 0.0 }
 0x130   :  { %v756_v48 = vpop.f32.mrf.mxu0 }
 0x131   :  { %v897_v49 = vpop.f32.mrf.mxu1  ;;  %1127 = vst [vmem:[%s1906_s3 + $0x48] sm:$0xff] %v1281_v45  ;;  %v969_v53 = vmax.f32 %v894_v46, 0.0  ;;  %v896_v54 = vadd.f32 %v895_v44, %v755_v47  ;;  %v757_v55 = vadd.f32 %v756_v48, %v1796_v52 }
 0x132   :  { %v760_v56 = vpop.f32.mrf.mxu0 }
 0x133   :  { %v901_v57 = vpop.f32.mrf.mxu1  ;;  %v1282_v58 = vpack.c.bf16 %v969_v53, %v968_v50  ;;  %v898_v59 = vadd.f32 %v897_v49, %v757_v55  ;;  %v761_v60 = vadd.f32 %v760_v56, %v1794_v51  ;;  %v970_v63 = vmax.f32 %v896_v54, 0.0 }
 0x134   :  { %v762_v61 = vpop.f32.mrf.mxu0 }
 0x135   :  { %v903_v62 = vpop.f32.mrf.mxu1  ;;  %1128 = vst [vmem:[%s1906_s3 + $0x50] sm:$0xff] %v1282_v58  ;;  %v971_v0 = vmax.f32 %v898_v59, 0.0  ;;  %v902_v1 = vadd.f32 %v901_v57, %v761_v60  ;;  %v763_v2 = vadd.f32 %v762_v61, %v1796_v52 }
 0x136   :  { %v764_v3 = vpop.f32.mrf.mxu0 }
 0x137   :  { %v905_v4 = vpop.f32.mrf.mxu1  ;;  %v1283_v5 = vpack.c.bf16 %v971_v0, %v970_v63  ;;  %v904_v6 = vadd.f32 %v903_v62, %v763_v2  ;;  %v765_v7 = vadd.f32 %v764_v3, %v1794_v51  ;;  %v972_v10 = vmax.f32 %v902_v1, 0.0 }
 0x138   :  { %v766_v8 = vpop.f32.mrf.mxu0 }
 0x139   :  { %v907_v9 = vpop.f32.mrf.mxu1  ;;  %1129 = vst [vmem:[%s1906_s3 + $0x58] sm:$0xff] %v1283_v5  ;;  %v973_v11 = vmax.f32 %v904_v6, 0.0  ;;  %v906_v12 = vadd.f32 %v905_v4, %v765_v7  ;;  %v767_v13 = vadd.f32 %v766_v8, %v1796_v52 }
 0x13a   :  { %v770_v14 = vpop.f32.mrf.mxu0 }
 0x13b   :  { %v911_v15 = vpop.f32.mrf.mxu1  ;;  %v1284_v16 = vpack.c.bf16 %v973_v11, %v972_v10  ;;  %v908_v17 = vadd.f32 %v907_v9, %v767_v13  ;;  %v771_v18 = vadd.f32 %v770_v14, %v1794_v51  ;;  %v974_v21 = vmax.f32 %v906_v12, 0.0 }
 0x13c   :  { %v772_v19 = vpop.f32.mrf.mxu0 }
 0x13d   :  { %v913_v20 = vpop.f32.mrf.mxu1  ;;  %1130 = vst [vmem:[%s1906_s3 + $0x60] sm:$0xff] %v1284_v16  ;;  %v975_v22 = vmax.f32 %v908_v17, 0.0  ;;  %v912_v23 = vadd.f32 %v911_v15, %v771_v18  ;;  %v773_v24 = vadd.f32 %v772_v19, %v1796_v52 }
 0x13e   :  { %v774_v25 = vpop.f32.mrf.mxu0 }
 0x13f   :  { %v915_v26 = vpop.f32.mrf.mxu1  ;;  %v1285_v27 = vpack.c.bf16 %v975_v22, %v974_v21  ;;  %v914_v28 = vadd.f32 %v913_v20, %v773_v24  ;;  %v775_v29 = vadd.f32 %v774_v25, %v1794_v51  ;;  %v976_v32 = vmax.f32 %v912_v23, 0.0 }
 0x140   :  { %v776_v30 = vpop.f32.mrf.mxu0 }
 0x141   :  { %v917_v31 = vpop.f32.mrf.mxu1  ;;  %1131 = vst [vmem:[%s1906_s3 + $0x68] sm:$0xff] %v1285_v27  ;;  %v977_v33 = vmax.f32 %v914_v28, 0.0  ;;  %v916_v34 = vadd.f32 %v915_v26, %v775_v29  ;;  %v777_v35 = vadd.f32 %v776_v30, %v1796_v52 }
 0x142   :  { %v780_v36 = vpop.f32.mrf.mxu0 }
 0x143   :  { %v921_v37 = vpop.f32.mrf.mxu1  ;;  %v1286_v38 = vpack.c.bf16 %v977_v33, %v976_v32  ;;  %v918_v39 = vadd.f32 %v917_v31, %v777_v35  ;;  %v781_v40 = vadd.f32 %v780_v36, %v1794_v51  ;;  %v978_v43 = vmax.f32 %v916_v34, 0.0 }
 0x144   :  { %v782_v41 = vpop.f32.mrf.mxu0 }
 0x145   :  { %v923_v42 = vpop.f32.mrf.mxu1  ;;  %1132 = vst [vmem:[%s1906_s3 + $0x70] sm:$0xff] %v1286_v38  ;;  %v979_v44 = vmax.f32 %v918_v39, 0.0  ;;  %v922_v45 = vadd.f32 %v921_v37, %v781_v40  ;;  %v783_v46 = vadd.f32 %v782_v41, %v1796_v52 }
 0x146   :  { %v784_v47 = vpop.f32.mrf.mxu0 }
 0x147   :  { %v925_v48 = vpop.f32.mrf.mxu1  ;;  %v1287_v49 = vpack.c.bf16 %v979_v44, %v978_v43  ;;  %v924_v50 = vadd.f32 %v923_v42, %v783_v46  ;;  %v785_v53 = vadd.f32 %v784_v47, %v1794_v51  ;;  %v980_v56 = vmax.f32 %v922_v45, 0.0 }
 0x148   :  { %v786_v54 = vpop.f32.mrf.mxu0 }
 0x149   :  { %v927_v55 = vpop.f32.mrf.mxu1  ;;  %1133 = vst [vmem:[%s1906_s3 + $0x78] sm:$0xff] %v1287_v49  ;;  %v981_v57 = vmax.f32 %v924_v50, 0.0  ;;  %v926_v58 = vadd.f32 %v925_v48, %v785_v53  ;;  %v787_v59 = vadd.f32 %v786_v54, %v1796_v52 }
 0x14a   :  { %v790_v60 = vpop.f32.mrf.mxu0 }
 0x14b   :  { %v931_v61 = vpop.f32.mrf.mxu1  ;;  %v1288_v62 = vpack.c.bf16 %v981_v57, %v980_v56  ;;  %v928_v63 = vadd.f32 %v927_v55, %v787_v59  ;;  %v791_v0 = vadd.f32 %v790_v60, %v1794_v51  ;;  %v982_v3 = vmax.f32 %v926_v58, 0.0 }
 0x14c   :  { %v792_v1 = vpop.f32.mrf.mxu0 }
 0x14d   :  { %v933_v2 = vpop.f32.mrf.mxu1  ;;  %1134 = vst [vmem:[%s1906_s3 + $0x80] sm:$0xff] %v1288_v62  ;;  %v983_v4 = vmax.f32 %v928_v63, 0.0  ;;  %v932_v5 = vadd.f32 %v931_v61, %v791_v0  ;;  %v793_v6 = vadd.f32 %v792_v1, %v1796_v52 }
 0x14e   :  { %v794_v7 = vpop.f32.mrf.mxu0 }
 0x14f   :  { %v935_v8 = vpop.f32.mrf.mxu1  ;;  %v1289_v9 = vpack.c.bf16 %v983_v4, %v982_v3  ;;  %v934_v10 = vadd.f32 %v933_v2, %v793_v6  ;;  %v795_v11 = vadd.f32 %v794_v7, %v1794_v51  ;;  %v984_v14 = vmax.f32 %v932_v5, 0.0 }
 0x150   :  { %v796_v12 = vpop.f32.mrf.mxu0 }
 0x151   :  { %v937_v13 = vpop.f32.mrf.mxu1  ;;  %1135 = vst [vmem:[%s1906_s3 + $0x88] sm:$0xff] %v1289_v9  ;;  %v985_v15 = vmax.f32 %v934_v10, 0.0  ;;  %v936_v16 = vadd.f32 %v935_v8, %v795_v11  ;;  %v797_v17 = vadd.f32 %v796_v12, %v1796_v52 }
 0x152   :  { %v800_v18 = vpop.f32.mrf.mxu0 }
 0x153   :  { %v941_v19 = vpop.f32.mrf.mxu1  ;;  %v1290_v20 = vpack.c.bf16 %v985_v15, %v984_v14  ;;  %v938_v21 = vadd.f32 %v937_v13, %v797_v17  ;;  %v801_v22 = vadd.f32 %v800_v18, %v1794_v51  ;;  %v986_v25 = vmax.f32 %v936_v16, 0.0 }
 0x154   :  { %v802_v23 = vpop.f32.mrf.mxu0 }
 0x155   :  { %v943_v24 = vpop.f32.mrf.mxu1  ;;  %1136 = vst [vmem:[%s1906_s3 + $0x90] sm:$0xff] %v1290_v20  ;;  %v987_v26 = vmax.f32 %v938_v21, 0.0  ;;  %v942_v27 = vadd.f32 %v941_v19, %v801_v22  ;;  %v803_v28 = vadd.f32 %v802_v23, %v1796_v52 }
 0x156   :  { %v804_v29 = vpop.f32.mrf.mxu0 }
 0x157   :  { %v945_v30 = vpop.f32.mrf.mxu1  ;;  %v1291_v31 = vpack.c.bf16 %v987_v26, %v986_v25  ;;  %v944_v32 = vadd.f32 %v943_v24, %v803_v28  ;;  %v988_v51 = vmax.f32 %v942_v27, 0.0 }
 0x158   :  { %v805_v33 = vpop.f32.mrf.mxu0 }
 0x159   :  { %v946_v34 = vpop.f32.mrf.mxu1  ;;  %1137 = vst [vmem:[%s1906_s3 + $0x98] sm:$0xff] %v1291_v31  ;;  %v989_v35 = vmax.f32 %v944_v32, 0.0 }
 0x15b   :  { %v1292_v36 = vpack.c.bf16 %v989_v35, %v988_v51 }
 0x15d   :  { %1138 = vst [vmem:[%s1906_s3 + $0xa0] sm:$0xff] %v1292_v36 }

// kernel: convcgenerator_forward.7
= control target key start
LH: loop header
LB: loop body
LE: loop exit
PB: predicated region body
PF: predicated region fallthrough
CT: control target
= control target key end

     0   :  { %s1140_s12 = smov 0   ;;  %s1317_s0 = inlined_call_operand.vmem [shape: bf16[768,256], index: 0, kind: input, shape index: {}]   ;;  %s1318_s1 = inlined_call_operand.vmem [shape: bf16[256,128], index: 1, kind: input, shape index: {}]   ;;  %s1319_s2 = inlined_call_operand.vmem [shape: f32[1,128], index: 2, kind: input, shape index: {}]   ;;  %s1320_s3 = inlined_call_operand.vmem [shape: f32[768,128], index: 3, kind: output, shape index: {}]  }
   0x1 LB: > { %s786_s13 = sadd.s32 4294967295, %s1118_s12   ;;  %p790_p0 = scmp.ge.s32.totalorder %s1118_s12, 1  ;;  %s1118_s12 = sphi %s1140_s12, %s13_s12  }
   0x2   : > { %p139_p1 = scmp.lt.s32.totalorder %s1118_s12, 4 }
   0x4   : > { %p140_p2 = pnand %p790_p0, %p139_p1 }
   0x5   : > { %s791_s16 = sshll.u32 (!%p140_p2), %s786_s13, 5 }
   0x6   : > { %143 = sbr.rel (%p140_p2) target bundleno = 319 (0x13f), region = 32  ;;  %p165_p3 = scmp.lt.s32.totalorder (!%p140_p2), %s791_s16, 95 }
   0xb   : > { %v984_v0 = vld [vmem:[%s1318_s1 + $0x78] sm:$0xff]   ;;  %v986_v2 = vld [vmem:[%s1318_s1 + $0x70] sm:$0xff]   ;;  %v988_v4 = vld [vmem:[%s1318_s1 + $0x68] sm:$0xff]   ;;  %s1322_s16 = smov (!%p165_p3, %s791_s16), 95 }
   0xc   : > { %v985_v1 = vld [vmem:[%s1318_s1 + $0x38] sm:$0xff]   ;;  %848 = vmatprep.subr.bf16.mxu0 %v984_v0  ;;  %960 = vmatprep.subr.bf16.mxu1 %v984_v0  ;;  %v987_v3 = vld [vmem:[%s1318_s1 + $0x30] sm:$0xff]   ;;  %v989_v5 = vld [vmem:[%s1318_s1 + $0x28] sm:$0xff]   ;;  %s847_s4 = sshll.u32 %s1322_s16, 3 }
   0xd   : > { %849 = vmatpush3.bf16.msra.mxu0 %v985_v1  ;;  %968 = vmatpush3.bf16.msra.mxu1 %v985_v1  ;;  %v990_v6 = vld [vmem:[%s1318_s1 + $0x60] sm:$0xff]   ;;  %v992_v8 = vld [vmem:[%s1318_s1 + $0x58] sm:$0xff]   ;;  %s1183_s9 = scalar_lea.vmem %s1317_s0, %s847_s4  ;;  %v994_v10 = vld [vmem:[%s1318_s1 + $0x50] sm:$0xff]   ;;  %s1256_s30 = scalar_lea.vmem %s1320_s3, %s847_s4 }
   0xe   : > { %850 = vmatprep.subr.bf16.mxu0 %v986_v2  ;;  %961 = vmatprep.subr.bf16.mxu1 %v986_v2  ;;  %v991_v7 = vld [vmem:[%s1318_s1 + $0x20] sm:$0xff]   ;;  %v993_v9 = vld [vmem:[%s1318_s1 + $0x18] sm:$0xff]   ;;  %v995_v13 = vld [vmem:[%s1318_s1 + $0x10] sm:$0xff]  }
   0xf   : > { %v1002_v11 = vld [vmem:[%s1183_s9 + $0x4] ss:$8 sps:$4 sm:$0xff]   ;;  %v1000_v18 = vld [vmem:[%s1183_s9] ss:$8 sps:$4 sm:$0xff]   ;;  %v1006_v20 = vld [vmem:[%s1183_s9 + $0x14] ss:$8 sps:$4 sm:$0xff]  }
  0x10   : > { %v1005_v12 = vld [vmem:[%s1183_s9 + $0x84] ss:$8 sps:$4 sm:$0xff]   ;;  %537 = vmatprep.mubr.bf16.mxu0 %v1002_v11  ;;  %v1003_v19 = vld [vmem:[%s1183_s9 + $0x80] ss:$8 sps:$4 sm:$0xff]   ;;  %v1008_v21 = vld [vmem:[%s1183_s9 + $0x94] ss:$8 sps:$4 sm:$0xff]  }
  0x11   : > { %851 = vmatpush3.bf16.msra.mxu0 %v987_v3  ;;  %969 = vmatpush3.bf16.msra.mxu1 %v987_v3  ;;  %v996_v14 = vld [vmem:[%s1318_s1 + $0x48] sm:$0xff]   ;;  %v998_v16 = vld [vmem:[%s1318_s1 + $0x40] sm:$0xff]   ;;  %v1010_v22 = vld [vmem:[%s1183_s9 + $0x10] ss:$8 sps:$4 sm:$0xff]  }
  0x12   : > { %852 = vmatprep.subr.bf16.mxu0 %v988_v4  ;;  %962 = vmatprep.subr.bf16.mxu1 %v988_v4  ;;  %v997_v15 = vld [vmem:[%s1318_s1 + $0x8] sm:$0xff]   ;;  %v999_v17 = vld [vmem:[%s1318_s1] sm:$0xff]   ;;  %v1011_v23 = vld [vmem:[%s1183_s9 + $0x90] ss:$8 sps:$4 sm:$0xff]  }
  0x13   : > { %601 = vmatprep.mubr.bf16.mxu1 %v1005_v12  ;;  %v1012_v24 = vld [vmem:[%s1183_s9 + $0x24] ss:$8 sps:$4 sm:$0xff]   ;;  %v1016_v26 = vld [vmem:[%s1183_s9 + $0x20] ss:$8 sps:$4 sm:$0xff]   ;;  %v1018_v28 = vld [vmem:[%s1183_s9 + $0x34] ss:$8 sps:$4 sm:$0xff]  }
  0x14   : > { %v1014_v25 = vld [vmem:[%s1183_s9 + $0xa4] ss:$8 sps:$4 sm:$0xff]   ;;  %v1017_v27 = vld [vmem:[%s1183_s9 + $0xa0] ss:$8 sps:$4 sm:$0xff]   ;;  %v1020_v29 = vld [vmem:[%s1183_s9 + $0xb4] ss:$8 sps:$4 sm:$0xff]  }
  0x15   : > { %853 = vmatpush3.bf16.msra.mxu0 %v989_v5  ;;  %970 = vmatpush3.bf16.msra.mxu1 %v989_v5  ;;  %v1022_v30 = vld [vmem:[%s1183_s9 + $0x30] ss:$8 sps:$4 sm:$0xff]   ;;  %v1024_v32 = vld [vmem:[%s1183_s9 + $0x44] ss:$8 sps:$4 sm:$0xff]   ;;  %v1028_v34 = vld [vmem:[%s1183_s9 + $0x40] ss:$8 sps:$4 sm:$0xff]  }
  0x16   : > { %854 = vmatprep.subr.bf16.mxu0 %v990_v6  ;;  %963 = vmatprep.subr.bf16.mxu1 %v990_v6  ;;  %v1023_v31 = vld [vmem:[%s1183_s9 + $0xb0] ss:$8 sps:$4 sm:$0xff]   ;;  %v1026_v33 = vld [vmem:[%s1183_s9 + $0xc4] ss:$8 sps:$4 sm:$0xff]   ;;  %v1029_v35 = vld [vmem:[%s1183_s9 + $0xc0] ss:$8 sps:$4 sm:$0xff]  }
  0x17   : > { %v1030_v36 = vld [vmem:[%s1183_s9 + $0x54] ss:$8 sps:$4 sm:$0xff]   ;;  %v1034_v38 = vld [vmem:[%s1183_s9 + $0x50] ss:$8 sps:$4 sm:$0xff]   ;;  %v1036_v40 = vld [vmem:[%s1183_s9 + $0x64] ss:$8 sps:$4 sm:$0xff]  }
  0x18   : > { %v1032_v37 = vld [vmem:[%s1183_s9 + $0xd4] ss:$8 sps:$4 sm:$0xff]   ;;  %v1035_v39 = vld [vmem:[%s1183_s9 + $0xd0] ss:$8 sps:$4 sm:$0xff]   ;;  %v1038_v41 = vld [vmem:[%s1183_s9 + $0xe4] ss:$8 sps:$4 sm:$0xff]  }
  0x19   : > { %855 = vmatpush3.bf16.msra.mxu0 %v991_v7  ;;  %971 = vmatpush3.bf16.msra.mxu1 %v991_v7  ;;  %v1040_v42 = vld [vmem:[%s1183_s9 + $0x60] ss:$8 sps:$4 sm:$0xff]   ;;  %v1042_v44 = vld [vmem:[%s1183_s9 + $0x74] ss:$8 sps:$4 sm:$0xff]   ;;  %v1046_v46 = vld [vmem:[%s1183_s9 + $0x70] ss:$8 sps:$4 sm:$0xff]  }
  0x1a   : > { %856 = vmatprep.subr.bf16.mxu0 %v992_v8  ;;  %964 = vmatprep.subr.bf16.mxu1 %v992_v8  ;;  %v1041_v43 = vld [vmem:[%s1183_s9 + $0xe0] ss:$8 sps:$4 sm:$0xff]   ;;  %v1044_v45 = vld [vmem:[%s1183_s9 + $0xf4] ss:$8 sps:$4 sm:$0xff]   ;;  %v1047_v47 = vld [vmem:[%s1183_s9 + $0xf0] ss:$8 sps:$4 sm:$0xff]  }
  0x1b   : > { %v1241_v50 = vld [vmem:[%s1319_s2] ss:$0 sm:$0xff] }
  0x1d   : > { %857 = vmatpush3.bf16.msra.mxu0 %v993_v9  ;;  %972 = vmatpush3.bf16.msra.mxu1 %v993_v9 }
  0x1e   : > { %858 = vmatprep.subr.bf16.mxu0 %v994_v10  ;;  %965 = vmatprep.subr.bf16.mxu1 %v994_v10 }
  0x21   : > { %859 = vmatpush3.bf16.msra.mxu0 %v995_v13  ;;  %973 = vmatpush3.bf16.msra.mxu1 %v995_v13 }
  0x22   : > { %860 = vmatprep.subr.bf16.mxu0 %v996_v14  ;;  %966 = vmatprep.subr.bf16.mxu1 %v996_v14 }
  0x25   : > { %861 = vmatpush3.bf16.msra.mxu0 %v997_v15  ;;  %974 = vmatpush3.bf16.msra.mxu1 %v997_v15 }
  0x26   : > { %862 = vmatprep.subr.bf16.mxu0 %v998_v16  ;;  %967 = vmatprep.subr.bf16.mxu1 %v998_v16 }
  0x29   : > { %863 = vmatpush3.bf16.msra.mxu0 %v999_v17  ;;  %975 = vmatpush3.bf16.msra.mxu1 %v999_v17 }
  0x2c   : > { %538 = vmatmul.mubr.bf16.vlgmr.msra.gmra.mxu0 %v1000_v18  ;;  %602 = vmatmul.mubr.bf16.vlgmr.msra.gmra.mxu1 %v1003_v19 }
  0x2d   : > { %545 = vmatprep.mubr.bf16.mxu0 %v1006_v20  ;;  %609 = vmatprep.mubr.bf16.mxu1 %v1008_v21 }
  0x34   : > { %546 = vmatmul.mubr.bf16.gmra.mxu0 %v1010_v22  ;;  %610 = vmatmul.mubr.bf16.gmra.mxu1 %v1011_v23 }
  0x35   : > { %553 = vmatprep.mubr.bf16.mxu0 %v1012_v24  ;;  %617 = vmatprep.mubr.bf16.mxu1 %v1014_v25 }
  0x3c   : > { %554 = vmatmul.mubr.bf16.gmra.mxu0 %v1016_v26  ;;  %618 = vmatmul.mubr.bf16.gmra.mxu1 %v1017_v27 }
  0x3d   : > { %561 = vmatprep.mubr.bf16.mxu0 %v1018_v28  ;;  %625 = vmatprep.mubr.bf16.mxu1 %v1020_v29 }
  0x44   : > { %562 = vmatmul.mubr.bf16.gmra.mxu0 %v1022_v30  ;;  %626 = vmatmul.mubr.bf16.gmra.mxu1 %v1023_v31 }
  0x45   : > { %569 = vmatprep.mubr.bf16.mxu0 %v1024_v32  ;;  %633 = vmatprep.mubr.bf16.mxu1 %v1026_v33 }
  0x4c   : > { %570 = vmatmul.mubr.bf16.gmra.mxu0 %v1028_v34  ;;  %634 = vmatmul.mubr.bf16.gmra.mxu1 %v1029_v35 }
  0x4d   : > { %577 = vmatprep.mubr.bf16.mxu0 %v1030_v36  ;;  %641 = vmatprep.mubr.bf16.mxu1 %v1032_v37 }
  0x54   : > { %578 = vmatmul.mubr.bf16.gmra.mxu0 %v1034_v38  ;;  %642 = vmatmul.mubr.bf16.gmra.mxu1 %v1035_v39 }
  0x55   : > { %585 = vmatprep.mubr.bf16.mxu0 %v1036_v40  ;;  %649 = vmatprep.mubr.bf16.mxu1 %v1038_v41 }
  0x5c   : > { %586 = vmatmul.mubr.bf16.gmra.mxu0 %v1040_v42  ;;  %650 = vmatmul.mubr.bf16.gmra.mxu1 %v1041_v43 }
  0x5d   : > { %593 = vmatprep.mubr.bf16.mxu0 %v1042_v44  ;;  %657 = vmatprep.mubr.bf16.mxu1 %v1044_v45 }
  0x64   : > { %594 = vmatmul.mubr.bf16.gmra.mxu0 %v1046_v46  ;;  %658 = vmatmul.mubr.bf16.gmra.mxu1 %v1047_v47 }
  0xec   : > { %v864_v48 = vpop.f32.mrf.mxu0  ;;  %v912_v49 = vpop.f32.mrf.mxu1 }
  0xee   : > { %v865_v51 = vpop.f32.mrf.mxu0  ;;  %v913_v52 = vpop.f32.mrf.mxu1 }
  0xef   : > { %v866_v53 = vadd.f32 %v865_v51, %v864_v48  ;;  %v914_v54 = vadd.f32 %v913_v52, %v912_v49 }
  0xf0   : > { %v867_v55 = vpop.f32.mrf.mxu0  ;;  %v915_v56 = vpop.f32.mrf.mxu1 }
  0xf1   : > { %v540_v57 = vadd.f32 %v866_v53, %v1241_v50  ;;  %v604_v58 = vadd.f32 %v914_v54, %v1241_v50 }
  0xf2   : > { %v868_v59 = vpop.f32.mrf.mxu0  ;;  %v916_v60 = vpop.f32.mrf.mxu1 }
  0xf3   : > { %1048 = vtanh.f32 %v540_v57  ;;  %v869_v61 = vadd.f32 %v868_v59, %v867_v55  ;;  %v917_v62 = vadd.f32 %v916_v60, %v915_v56 }
  0xf4   : > { %1050 = vtanh.f32 %v604_v58  ;;  %v870_v63 = vpop.f32.mrf.mxu0  ;;  %v918_v0 = vpop.f32.mrf.mxu1 }
  0xf5   : > { %v543_v1 = vadd.f32 %v869_v61, %v1241_v50  ;;  %v607_v2 = vadd.f32 %v917_v62, %v1241_v50 }
  0xf6   : > { %v871_v3 = vpop.f32.mrf.mxu0  ;;  %v919_v4 = vpop.f32.mrf.mxu1 }
  0xf7   : > { %1052 = vtanh.f32 %v543_v1  ;;  %v872_v5 = vadd.f32 %v871_v3, %v870_v63  ;;  %v920_v6 = vadd.f32 %v919_v4, %v918_v0 }
  0xf8   : > { %1054 = vtanh.f32 %v607_v2  ;;  %v873_v7 = vpop.f32.mrf.mxu0  ;;  %v921_v8 = vpop.f32.mrf.mxu1 }
  0xf9   : > { %v548_v9 = vadd.f32 %v872_v5, %v1241_v50  ;;  %v612_v10 = vadd.f32 %v920_v6, %v1241_v50 }
  0xfa   : > { %v874_v11 = vpop.f32.mrf.mxu0  ;;  %v922_v12 = vpop.f32.mrf.mxu1 }
  0xfb   : > { %1056 = vtanh.f32 %v548_v9  ;;  %v875_v13 = vadd.f32 %v874_v11, %v873_v7  ;;  %v923_v14 = vadd.f32 %v922_v12, %v921_v8 }
  0xfc   : > { %1058 = vtanh.f32 %v612_v10  ;;  %v876_v15 = vpop.f32.mrf.mxu0  ;;  %v924_v16 = vpop.f32.mrf.mxu1 }
  0xfd   : > { %v551_v17 = vadd.f32 %v875_v13, %v1241_v50  ;;  %v615_v18 = vadd.f32 %v923_v14, %v1241_v50 }
  0xfe   : > { %v877_v19 = vpop.f32.mrf.mxu0  ;;  %v925_v20 = vpop.f32.mrf.mxu1 }
  0xff   : > { %1060 = vtanh.f32 %v551_v17  ;;  %v878_v21 = vadd.f32 %v877_v19, %v876_v15  ;;  %v926_v22 = vadd.f32 %v925_v20, %v924_v16 }
 0x100   : > { %v1049_v23 = vpop.eup %1048  ;;  %1062 = vtanh.f32 %v615_v18  ;;  %v879_v24 = vpop.f32.mrf.mxu0 }
 0x101   : > { %v927_v25 = vpop.f32.mrf.mxu1  ;;  %v1051_v26 = vpop.eup %1050  ;;  %698 = vst [vmem:[%s1256_s30] sm:$0xff] %v1049_v23  ;;  %v556_v27 = vadd.f32 %v878_v21, %v1241_v50  ;;  %v620_v28 = vadd.f32 %v926_v22, %v1241_v50 }
 0x102   : > { %714 = vst [vmem:[%s1256_s30 + $0x80] sm:$0xff] %v1051_v26  ;;  %v880_v29 = vpop.f32.mrf.mxu0 }
 0x103   : > { %v928_v30 = vpop.f32.mrf.mxu1  ;;  %1064 = vtanh.f32 %v556_v27  ;;  %v881_v31 = vadd.f32 %v880_v29, %v879_v24 }
 0x104   : > { %v929_v32 = vadd.f32 %v928_v30, %v927_v25  ;;  %v1053_v33 = vpop.eup %1052  ;;  %1066 = vtanh.f32 %v620_v28  ;;  %v882_v34 = vpop.f32.mrf.mxu0 }
 0x105   : > { %v930_v35 = vpop.f32.mrf.mxu1  ;;  %v1055_v36 = vpop.eup %1054  ;;  %699 = vst [vmem:[%s1256_s30 + $0x8] sm:$0xff] %v1053_v33  ;;  %v559_v37 = vadd.f32 %v881_v31, %v1241_v50 }
 0x106   : > { %v623_v38 = vadd.f32 %v929_v32, %v1241_v50  ;;  %715 = vst [vmem:[%s1256_s30 + $0x88] sm:$0xff] %v1055_v36  ;;  %v883_v39 = vpop.f32.mrf.mxu0 }
 0x107   : > { %v931_v40 = vpop.f32.mrf.mxu1  ;;  %1068 = vtanh.f32 %v559_v37  ;;  %v884_v41 = vadd.f32 %v883_v39, %v882_v34 }
 0x108   : > { %v932_v42 = vadd.f32 %v931_v40, %v930_v35  ;;  %v1057_v43 = vpop.eup %1056  ;;  %1070 = vtanh.f32 %v623_v38  ;;  %v885_v44 = vpop.f32.mrf.mxu0 }
 0x109   : > { %v933_v45 = vpop.f32.mrf.mxu1  ;;  %v1059_v46 = vpop.eup %1058  ;;  %700 = vst [vmem:[%s1256_s30 + $0x10] sm:$0xff] %v1057_v43  ;;  %v564_v47 = vadd.f32 %v884_v41, %v1241_v50 }
 0x10a   : > { %v628_v48 = vadd.f32 %v932_v42, %v1241_v50  ;;  %716 = vst [vmem:[%s1256_s30 + $0x90] sm:$0xff] %v1059_v46  ;;  %v886_v49 = vpop.f32.mrf.mxu0 }
 0x10b   : > { %v934_v51 = vpop.f32.mrf.mxu1  ;;  %1072 = vtanh.f32 %v564_v47  ;;  %v887_v52 = vadd.f32 %v886_v49, %v885_v44 }
 0x10c   : > { %v935_v53 = vadd.f32 %v934_v51, %v933_v45  ;;  %v1061_v54 = vpop.eup %1060  ;;  %1074 = vtanh.f32 %v628_v48  ;;  %v888_v55 = vpop.f32.mrf.mxu0 }
 0x10d   : > { %v936_v56 = vpop.f32.mrf.mxu1  ;;  %v1063_v57 = vpop.eup %1062  ;;  %701 = vst [vmem:[%s1256_s30 + $0x18] sm:$0xff] %v1061_v54  ;;  %v567_v58 = vadd.f32 %v887_v52, %v1241_v50 }
 0x10e   : > { %v631_v59 = vadd.f32 %v935_v53, %v1241_v50  ;;  %717 = vst [vmem:[%s1256_s30 + $0x98] sm:$0xff] %v1063_v57  ;;  %v889_v60 = vpop.f32.mrf.mxu0 }
 0x10f   : > { %v937_v61 = vpop.f32.mrf.mxu1  ;;  %1076 = vtanh.f32 %v567_v58  ;;  %v890_v62 = vadd.f32 %v889_v60, %v888_v55 }
 0x110   : > { %v938_v63 = vadd.f32 %v937_v61, %v936_v56  ;;  %v1065_v0 = vpop.eup %1064  ;;  %1078 = vtanh.f32 %v631_v59  ;;  %v891_v1 = vpop.f32.mrf.mxu0 }
 0x111   : > { %v939_v2 = vpop.f32.mrf.mxu1  ;;  %v1067_v3 = vpop.eup %1066  ;;  %702 = vst [vmem:[%s1256_s30 + $0x20] sm:$0xff] %v1065_v0  ;;  %v572_v4 = vadd.f32 %v890_v62, %v1241_v50 }
 0x112   : > { %v636_v5 = vadd.f32 %v938_v63, %v1241_v50  ;;  %718 = vst [vmem:[%s1256_s30 + $0xa0] sm:$0xff] %v1067_v3  ;;  %v892_v6 = vpop.f32.mrf.mxu0 }
 0x113   : > { %v940_v7 = vpop.f32.mrf.mxu1  ;;  %1080 = vtanh.f32 %v572_v4  ;;  %v893_v8 = vadd.f32 %v892_v6, %v891_v1 }
 0x114   : > { %v941_v9 = vadd.f32 %v940_v7, %v939_v2  ;;  %v1069_v10 = vpop.eup %1068  ;;  %1082 = vtanh.f32 %v636_v5  ;;  %v894_v11 = vpop.f32.mrf.mxu0 }
 0x115   : > { %v942_v12 = vpop.f32.mrf.mxu1  ;;  %v1071_v13 = vpop.eup %1070  ;;  %703 = vst [vmem:[%s1256_s30 + $0x28] sm:$0xff] %v1069_v10  ;;  %v575_v14 = vadd.f32 %v893_v8, %v1241_v50 }
 0x116   : > { %v639_v15 = vadd.f32 %v941_v9, %v1241_v50  ;;  %719 = vst [vmem:[%s1256_s30 + $0xa8] sm:$0xff] %v1071_v13  ;;  %v895_v16 = vpop.f32.mrf.mxu0 }
 0x117   : > { %v943_v17 = vpop.f32.mrf.mxu1  ;;  %1084 = vtanh.f32 %v575_v14  ;;  %v896_v18 = vadd.f32 %v895_v16, %v894_v11 }
 0x118   : > { %v944_v19 = vadd.f32 %v943_v17, %v942_v12  ;;  %v1073_v20 = vpop.eup %1072  ;;  %1086 = vtanh.f32 %v639_v15  ;;  %v897_v21 = vpop.f32.mrf.mxu0 }
 0x119   : > { %v945_v22 = vpop.f32.mrf.mxu1  ;;  %v1075_v23 = vpop.eup %1074  ;;  %704 = vst [vmem:[%s1256_s30 + $0x30] sm:$0xff] %v1073_v20  ;;  %v580_v24 = vadd.f32 %v896_v18, %v1241_v50 }
 0x11a   : > { %v644_v25 = vadd.f32 %v944_v19, %v1241_v50  ;;  %720 = vst [vmem:[%s1256_s30 + $0xb0] sm:$0xff] %v1075_v23  ;;  %v898_v26 = vpop.f32.mrf.mxu0 }
 0x11b   : > { %v946_v27 = vpop.f32.mrf.mxu1  ;;  %1088 = vtanh.f32 %v580_v24  ;;  %v899_v28 = vadd.f32 %v898_v26, %v897_v21 }
 0x11c   : > { %v947_v29 = vadd.f32 %v946_v27, %v945_v22  ;;  %v1077_v30 = vpop.eup %1076  ;;  %1090 = vtanh.f32 %v644_v25  ;;  %v900_v31 = vpop.f32.mrf.mxu0 }
 0x11d   : > { %v948_v32 = vpop.f32.mrf.mxu1  ;;  %v1079_v33 = vpop.eup %1078  ;;  %705 = vst [vmem:[%s1256_s30 + $0x38] sm:$0xff] %v1077_v30  ;;  %v583_v34 = vadd.f32 %v899_v28, %v1241_v50 }
 0x11e   : > { %v647_v35 = vadd.f32 %v947_v29, %v1241_v50  ;;  %721 = vst [vmem:[%s1256_s30 + $0xb8] sm:$0xff] %v1079_v33  ;;  %v901_v36 = vpop.f32.mrf.mxu0 }
 0x11f   : > { %v949_v37 = vpop.f32.mrf.mxu1  ;;  %1092 = vtanh.f32 %v583_v34  ;;  %v902_v38 = vadd.f32 %v901_v36, %v900_v31 }
 0x120   : > { %v950_v39 = vadd.f32 %v949_v37, %v948_v32  ;;  %v1081_v40 = vpop.eup %1080  ;;  %1094 = vtanh.f32 %v647_v35  ;;  %v903_v41 = vpop.f32.mrf.mxu0 }
 0x121   : > { %v951_v42 = vpop.f32.mrf.mxu1  ;;  %v1083_v43 = vpop.eup %1082  ;;  %706 = vst [vmem:[%s1256_s30 + $0x40] sm:$0xff] %v1081_v40  ;;  %v588_v44 = vadd.f32 %v902_v38, %v1241_v50 }
 0x122   : > { %v652_v45 = vadd.f32 %v950_v39, %v1241_v50  ;;  %722 = vst [vmem:[%s1256_s30 + $0xc0] sm:$0xff] %v1083_v43  ;;  %v904_v46 = vpop.f32.mrf.mxu0 }
 0x123   : > { %v952_v47 = vpop.f32.mrf.mxu1  ;;  %1096 = vtanh.f32 %v588_v44  ;;  %v905_v48 = vadd.f32 %v904_v46, %v903_v41 }
 0x124   : > { %v953_v49 = vadd.f32 %v952_v47, %v951_v42  ;;  %v1085_v51 = vpop.eup %1084  ;;  %1098 = vtanh.f32 %v652_v45  ;;  %v906_v52 = vpop.f32.mrf.mxu0 }
 0x125   : > { %v954_v53 = vpop.f32.mrf.mxu1  ;;  %v1087_v54 = vpop.eup %1086  ;;  %707 = vst [vmem:[%s1256_s30 + $0x48] sm:$0xff] %v1085_v51  ;;  %v591_v55 = vadd.f32 %v905_v48, %v1241_v50 }
 0x126   : > { %v655_v56 = vadd.f32 %v953_v49, %v1241_v50  ;;  %723 = vst [vmem:[%s1256_s30 + $0xc8] sm:$0xff] %v1087_v54  ;;  %v907_v57 = vpop.f32.mrf.mxu0 }
 0x127   : > { %v955_v58 = vpop.f32.mrf.mxu1  ;;  %1100 = vtanh.f32 %v591_v55  ;;  %v908_v59 = vadd.f32 %v907_v57, %v906_v52 }
 0x128   : > { %v956_v60 = vadd.f32 %v955_v58, %v954_v53  ;;  %v1089_v61 = vpop.eup %1088  ;;  %1102 = vtanh.f32 %v655_v56  ;;  %v909_v62 = vpop.f32.mrf.mxu0 }
 0x129   : > { %v957_v63 = vpop.f32.mrf.mxu1  ;;  %v1091_v0 = vpop.eup %1090  ;;  %708 = vst [vmem:[%s1256_s30 + $0x50] sm:$0xff] %v1089_v61  ;;  %v596_v1 = vadd.f32 %v908_v59, %v1241_v50 }
 0x12a   : > { %v660_v2 = vadd.f32 %v956_v60, %v1241_v50  ;;  %724 = vst [vmem:[%s1256_s30 + $0xd0] sm:$0xff] %v1091_v0  ;;  %v910_v3 = vpop.f32.mrf.mxu0 }
 0x12b   : > { %v958_v4 = vpop.f32.mrf.mxu1  ;;  %1104 = vtanh.f32 %v596_v1  ;;  %v911_v5 = vadd.f32 %v910_v3, %v909_v62 }
 0x12c   : > { %v959_v6 = vadd.f32 %v958_v4, %v957_v63  ;;  %v1093_v7 = vpop.eup %1092  ;;  %1106 = vtanh.f32 %v660_v2 }
 0x12d   : > { %v1095_v8 = vpop.eup %1094  ;;  %709 = vst [vmem:[%s1256_s30 + $0x58] sm:$0xff] %v1093_v7  ;;  %v599_v9 = vadd.f32 %v911_v5, %v1241_v50 }
 0x12e   : > { %v663_v10 = vadd.f32 %v959_v6, %v1241_v50  ;;  %725 = vst [vmem:[%s1256_s30 + $0xd8] sm:$0xff] %v1095_v8 }
 0x12f   : > { %1108 = vtanh.f32 %v599_v9 }
 0x130   : > { %v1097_v11 = vpop.eup %1096  ;;  %1110 = vtanh.f32 %v663_v10 }
 0x131   : > { %v1099_v12 = vpop.eup %1098  ;;  %710 = vst [vmem:[%s1256_s30 + $0x60] sm:$0xff] %v1097_v11 }
 0x132   : > { %726 = vst [vmem:[%s1256_s30 + $0xe0] sm:$0xff] %v1099_v12 }
 0x134   : > { %v1101_v13 = vpop.eup %1100 }
 0x135   : > { %v1103_v14 = vpop.eup %1102  ;;  %711 = vst [vmem:[%s1256_s30 + $0x68] sm:$0xff] %v1101_v13 }
 0x136   : > { %727 = vst [vmem:[%s1256_s30 + $0xe8] sm:$0xff] %v1103_v14 }
 0x138   : > { %v1105_v15 = vpop.eup %1104 }
 0x139   : > { %v1107_v16 = vpop.eup %1106  ;;  %712 = vst [vmem:[%s1256_s30 + $0x70] sm:$0xff] %v1105_v15 }
 0x13a   : > { %728 = vst [vmem:[%s1256_s30 + $0xf0] sm:$0xff] %v1107_v16 }
 0x13c   : > { %v1109_v17 = vpop.eup %1108 }
 0x13d   : > { %v1111_v18 = vpop.eup %1110  ;;  %713 = vst [vmem:[%s1256_s30 + $0x78] sm:$0xff] %v1109_v17 }
 0x13e   : > { %729 = vst [vmem:[%s1256_s30 + $0xf8] sm:$0xff] %v1111_v18 }
 0x13f PF: > { %s13_s12 = sadd.s32 1, %s1118_s12  }
 0x140   : > { %p10_p4 = scmp.ge.s32.totalorder %s13_s12, 5  }
 0x142   :  { %12 = sbr.rel (!%p10_p4) target bundleno = 1 (0x1), region = 62 }

</bundles_post_ra>
